<compile_context>
chip_gen: v6e
topology: v6e:2x2x1
jax: 0.10.0
libtpu: 0.0.40
codegen_flags: <defaults>
</compile_context>

<pallas_src>
import jax
import jax.numpy as jnp
from jax.experimental import pallas as pl
from jax.experimental.pallas import tpu as pltpu

LANES = 128


def _round_up(n, m):
    return ((n + m - 1) // m) * m


# ---------------------------------------------------------------------------
# Kernel factory: fused (im2col + dual matmul + reparameterization) tile body
# ---------------------------------------------------------------------------
def _make_kernel(offsets, n_win, tile_m, cout_pad):
    """offsets[idx] = ki*W + kj row shift of weight tap idx (static Python ints)."""

    def kernel(noise_ref, *args):
        x_refs = args[:n_win]          # n_win x (tile_m, Cin) bf16 (tile + halo blocks)
        wm_ref = args[n_win]           # (kh*kw, Cin, Cout_pad) bf16   mean * aux
        wv_ref = args[n_win + 1]       # (kh*kw, Cin, Cout_pad) bf16   exp(log_variance)
        out_ref = args[n_win + 2]      # (tile_m, Cout_pad) out_dtype

        # Halo window: this tile's rows plus the leading rows of the next
        # tile(s).  Upcast once to f32 so the per-tap row slices stay on the
        # well-supported 32-bit sublane path.
        if n_win == 1:
            xw = x_refs[0][...].astype(jnp.float32)
        else:
            xw = jnp.concatenate([r[...] for r in x_refs],
                                 axis=0).astype(jnp.float32)

        acc_m = jnp.zeros((tile_m, cout_pad), jnp.float32)
        acc_v = jnp.zeros((tile_m, cout_pad), jnp.float32)
        for idx, off in enumerate(offsets):
            xs = xw[off:off + tile_m, :]                       # (tile_m, Cin) f32
            acc_m = acc_m + jnp.dot(xs.astype(jnp.bfloat16), wm_ref[idx],
                                    preferred_element_type=jnp.float32)
            xsq = (xs * xs).astype(jnp.bfloat16)               # square in f32 (v5e-safe)
            acc_v = acc_v + jnp.dot(xsq, wv_ref[idx],
                                    preferred_element_type=jnp.float32)

        # f32 epilogue; padded Cout columns and zero-padded tail rows give
        # acc_v == 0 -> sqrt(0) == 0 (no NaNs anywhere).
        out = acc_m + jnp.sqrt(acc_v) * noise_ref[...].astype(jnp.float32)
        out_ref[...] = out.astype(out_ref.dtype)

    return kernel


# ---------------------------------------------------------------------------
# Tiling plan (shared by the wrapper and the verification reference)
# ---------------------------------------------------------------------------
def _plan(n, h, w, cin, cout, kh, kw, tile_m=None):
    r = n * h * w                                    # dense (stride-1) output rows
    ovl = (kh - 1) * w + (kw - 1)                    # halo rows beyond the tile
    cout_pad = _round_up(cout, LANES)
    if tile_m is None:
        kind = jax.devices()[0].device_kind.lower()
        tile_m = 1024 if "v6" in kind else 512       # 512 on v5e / v7x, 1024 on v6e
    # Keep >= 2 grid steps so ("parallel",) can shard across both v7x TensorCores.
    tile_m = max(8, min(_round_up(tile_m, 8), _round_up(pl.cdiv(r, 2), 8)))
    num_tiles = pl.cdiv(r, tile_m)
    r_pad = num_tiles * tile_m
    n_win = (1 + pl.cdiv(ovl, tile_m)) if ovl > 0 else 1
    x_rows_pad = (num_tiles + n_win - 1) * tile_m
    return dict(r=r, r_pad=r_pad, ovl=ovl, cout_pad=cout_pad, tile_m=tile_m,
                num_tiles=num_tiles, n_win=n_win, x_rows_pad=x_rows_pad)


def prepare_weights(mean, log_variance, aux, cout_pad):
    """(kh*kw, Cin, Cout_pad) bf16 weights for the two matmuls (zero lane pad)."""
    kh, kw, cin, cout = mean.shape
    wm = (mean * aux[None, None, :, None]).reshape(kh * kw, cin, cout)
    wv = jnp.exp(log_variance).reshape(kh * kw, cin, cout)
    pad = cout_pad - cout
    if pad:
        wm = jnp.pad(wm, ((0, 0), (0, 0), (0, pad)))
        wv = jnp.pad(wv, ((0, 0), (0, 0), (0, pad)))
    return wm.astype(jnp.bfloat16), wv.astype(jnp.bfloat16)


# ---------------------------------------------------------------------------
# Forward wrapper (MNFConv2D.forward)
# ---------------------------------------------------------------------------
def mnf_conv2d_forward(features, mean, log_variance, aux, noise_key,
                       stride=1, tile_m=None, out_dtype=jnp.bfloat16):
    """features: (N, Cin, H, W) f32; mean/log_variance: (kh, kw, Cin, Cout);
    aux: (Cin,); noise_key: PRNG key for the reparameterization noise."""
    kh, kw, cin, cout = mean.shape
    n, c, h, w = features.shape
    assert c == cin

    plan = _plan(n, h, w, cin, cout, kh, kw, tile_m)
    tile_m = plan["tile_m"]
    cout_pad = plan["cout_pad"]
    n_win = plan["n_win"]
    num_tiles = plan["num_tiles"]
    r, r_pad, x_rows_pad = plan["r"], plan["r_pad"], plan["x_rows_pad"]
    assert tile_m % 8 == 0

    wm, wv = prepare_weights(mean, log_variance, aux, cout_pad)

    # Flat NHWC features (single 1x copy in HBM; no im2col materialization).
    x_flat = jnp.transpose(features, (0, 2, 3, 1)).reshape(r, cin).astype(jnp.bfloat16)
    x_flat = jnp.pad(x_flat, ((0, x_rows_pad - r), (0, 0)))

    # Streamed bf16 noise, aliased onto the output buffer (interim vs in-kernel PRNG).
    noise = jax.random.normal(noise_key, (r_pad, cout_pad),
                              dtype=jnp.float32).astype(out_dtype)

    offsets = tuple(ki * w + kj for ki in range(kh) for kj in range(kw))
    kernel = _make_kernel(offsets, n_win, tile_m, cout_pad)

    io_block = (tile_m, cout_pad)
    in_specs = ([pl.BlockSpec(io_block, lambda t: (t, 0))]                       # noise
                + [pl.BlockSpec((tile_m, cin), (lambda t, d=d: (t + d, 0)))      # x tile + halo
                   for d in range(n_win)]
                + [pl.BlockSpec((kh * kw, cin, cout_pad), lambda t: (0, 0, 0))]  # wm
                + [pl.BlockSpec((kh * kw, cin, cout_pad), lambda t: (0, 0, 0))]) # wv
    out_spec = pl.BlockSpec(io_block, lambda t: (t, 0))

    out_bytes = jnp.dtype(out_dtype).itemsize
    k_total = kh * kw * cin
    cost = pl.CostEstimate(
        flops=int(4 * r_pad * k_total * cout_pad),        # two matmuls
        transcendentals=int(r_pad * cout_pad),            # sqrt in the epilogue
        bytes_accessed=int(n_win * x_flat.size * 2 + noise.size * out_bytes
                           + (wm.size + wv.size) * 2 + r_pad * cout_pad * out_bytes),
    )

    # Per-step VMEM footprint (double-buffered tiles + resident weights + f32 temps).
    cin_lanes = _round_up(cin, LANES)
    tile_bytes = (n_win * tile_m * cin_lanes * 2
                  + tile_m * cout_pad * out_bytes          # noise block
                  + tile_m * cout_pad * out_bytes)         # out block
    w_bytes = 2 * (kh * kw) * _round_up(cin, 8) * cout_pad * 2
    f32_tmp = (n_win * tile_m * cin_lanes + 2 * tile_m * cout_pad) * 4
    vmem_limit = int(min(56 * 2**20,
                         max(16 * 2**20, 2 * (2 * tile_bytes + w_bytes) + f32_tmp)))

    out_dense = pl.pallas_call(
        kernel,
        out_shape=jax.ShapeDtypeStruct((r_pad, cout_pad), out_dtype),
        grid_spec=pltpu.PrefetchScalarGridSpec(
            num_scalar_prefetch=0,
            grid=(num_tiles,),
            in_specs=in_specs,
            out_specs=out_spec,
        ),
        input_output_aliases={0: 0},                       # noise buffer becomes the output
        compiler_params=pltpu.CompilerParams(
            dimension_semantics=("parallel",),
            vmem_limit_bytes=vmem_limit,
        ),
        cost_estimate=cost,
    )(noise, *([x_flat] * n_win), wm, wv)

    # Host-side extraction of the valid (strided) output positions, NCHW out.
    oh = (h - kh) // stride + 1
    ow = (w - kw) // stride + 1
    out = out_dense[:r].reshape(n, h, w, cout_pad)
    out = out[:, ::stride, ::stride, :][:, :oh, :ow, :cout]
    return jnp.transpose(out, (0, 3, 1, 2))


# ---------------------------------------------------------------------------
# Pure-JAX reference (conv-based) mirroring the kernel's numerics
# ---------------------------------------------------------------------------
def mnf_conv2d_reference(features, mean, log_variance, aux, noise_key,
                         stride=1, tile_m=None, out_dtype=jnp.bfloat16):
    kh, kw, cin, cout = mean.shape
    n, c, h, w = features.shape
    plan = _plan(n, h, w, cin, cout, kh, kw, tile_m)

    xb = features.astype(jnp.bfloat16).astype(jnp.float32)
    wm = (mean * aux[None, None, :, None]).astype(jnp.bfloat16).astype(jnp.float32)
    wv = jnp.exp(log_variance).astype(jnp.bfloat16).astype(jnp.float32)
    sq = (xb * xb).astype(jnp.bfloat16).astype(jnp.float32)

    dn = ("NCHW", "OIHW", "NCHW")
    lm = jax.lax.conv_general_dilated(
        xb, jnp.transpose(wm, (3, 2, 0, 1)), (stride, stride), "VALID",
        dimension_numbers=dn, precision=jax.lax.Precision.HIGHEST)
    lv = jax.lax.conv_general_dilated(
        sq, jnp.transpose(wv, (3, 2, 0, 1)), (stride, stride), "VALID",
        dimension_numbers=dn, precision=jax.lax.Precision.HIGHEST)

    oh = (h - kh) // stride + 1
    ow = (w - kw) // stride + 1
    noise = jax.random.normal(noise_key, (plan["r_pad"], plan["cout_pad"]),
                              dtype=jnp.float32).astype(out_dtype).astype(jnp.float32)
    noise = noise[:n * h * w].reshape(n, h, w, plan["cout_pad"])
    noise = noise[:, ::stride, ::stride, :][:, :oh, :ow, :cout]
    noise = jnp.transpose(noise, (0, 3, 1, 2))

    return (lm + jnp.sqrt(lv) * noise).astype(out_dtype)


# ---------------------------------------------------------------------------
# Aux construction (mirrors push_forward with identity bijections)
# ---------------------------------------------------------------------------
def identity_bijection(aux, sample_mask=True):
    return aux, jnp.float32(0.0)


def push_forward(aux0, forward_bijections):
    aux = aux0
    log_det = jnp.float32(0.0)
    for fn in forward_bijections:
        aux, log_det = fn(aux)
    return aux, log_det


if __name__ == "__main__":
    key = jax.random.PRNGKey(0)
    k_feat, k_mean, k_logvar, k_aux, k_noise = jax.random.split(key, 5)

    N, CIN, H, W = 2, 4, 16, 16
    KH, KW, COUT = 3, 3, 8
    STRIDE = 1

    features = jax.random.normal(k_feat, (N, CIN, H, W), dtype=jnp.float32)

    fan_in, fan_out = KH * KW * CIN, KH * KW * COUT
    std = (2.0 / (fan_in + fan_out)) ** 0.5
    mean = std * jax.random.normal(k_mean, (KH, KW, CIN, COUT), dtype=jnp.float32)
    # NOTE: the torch module literally uses Normal(exp(-9), 0.001) as the *loc*
    # of log_variance (variance ~= 1); reproduced as-is.
    log_variance = (jnp.exp(jnp.float32(-9.0))
                    + 0.001 * jax.random.normal(k_logvar, (KH, KW, CIN, COUT),
                                                dtype=jnp.float32))

    aux0 = 1.0 + jax.random.normal(k_aux, (CIN,), dtype=jnp.float32)
    aux, _ = push_forward(aux0, [identity_bijection])

    fwd = jax.jit(mnf_conv2d_forward, static_argnames=("stride", "tile_m", "out_dtype"))
    out = fwd(features, mean, log_variance, aux, k_noise, stride=STRIDE)
    out = jax.block_until_ready(out)

    OH = (H - KH) // STRIDE + 1
    OW = (W - KW) // STRIDE + 1
    assert out.shape == (N, COUT, OH, OW)

    ref = mnf_conv2d_reference(features, mean, log_variance, aux, k_noise, stride=STRIDE)
    out_f = out.astype(jnp.float32)
    ref_f = ref.astype(jnp.float32)
    assert bool(jnp.all(jnp.isfinite(out_f)))
    assert jnp.allclose(out_f, ref_f, atol=3e-2, rtol=3e-2), (
        float(jnp.max(jnp.abs(out_f - ref_f))))

    print("KERNEL_OK")
</pallas_src>

<mosaic_0001>
module attributes {stable_mosaic.version = 11 : i64} {
  func.func @kernel(%arg0: i32, %arg1: memref<256x128xbf16, #tpu.memory_space<vmem>>, %arg2: memref<256x4xbf16, #tpu.memory_space<vmem>>, %arg3: memref<256x4xbf16, #tpu.memory_space<vmem>>, %arg4: memref<9x4x128xbf16, #tpu.memory_space<vmem>>, %arg5: memref<9x4x128xbf16, #tpu.memory_space<vmem>>, %arg6: memref<256x128xbf16, #tpu.memory_space<vmem>>) attributes {dimension_semantics = [#tpu.dimension_semantics<parallel>], iteration_bounds = array<i64: 2>, scalar_prefetch = 0 : i64, scratch_operands = 0 : i64, tpu.core_type = #tpu.core_type<tc>, window_params = [{transform_indices = @transform_0, window_bounds = array<i64: 256, 128>}, {transform_indices = @transform_1, window_bounds = array<i64: 256, 4>}, {transform_indices = @transform_2, window_bounds = array<i64: 256, 4>}, {pipeline_mode = #tpu.pipeline_mode<synchronous>, transform_indices = @transform_3, window_bounds = array<i64: 9, 4, 128>}, {pipeline_mode = #tpu.pipeline_mode<synchronous>, transform_indices = @transform_4, window_bounds = array<i64: 9, 4, 128>}, {transform_indices = @transform_5, window_bounds = array<i64: 256, 128>}]} {
    %c0 = arith.constant 0 : index
    %c0_0 = arith.constant 0 : index
    %0 = vector.load %arg2[%c0, %c0_0] : memref<256x4xbf16, #tpu.memory_space<vmem>>, vector<256x4xbf16>
    %c0_1 = arith.constant 0 : index
    %c0_2 = arith.constant 0 : index
    %1 = vector.load %arg3[%c0_1, %c0_2] : memref<256x4xbf16, #tpu.memory_space<vmem>>, vector<256x4xbf16>
    %2 = tpu.concatenate %0, %1 in 0 : vector<256x4xbf16>, vector<256x4xbf16> -> vector<512x4xbf16>
    %3 = arith.extf %2 : vector<512x4xbf16> to vector<512x4xf32>
    %cst = arith.constant 0.000000e+00 : f32
    %4 = vector.broadcast %cst : f32 to vector<256x128xf32>
    %cst_3 = arith.constant 0.000000e+00 : f32
    %5 = vector.broadcast %cst_3 : f32 to vector<256x128xf32>
    %6 = vector.extract_strided_slice %3 {offsets = [0, 0], sizes = [256, 4], strides = [1, 1]} : vector<512x4xf32> to vector<256x4xf32>
    %7 = arith.truncf %6 : vector<256x4xf32> to vector<256x4xbf16>
    %c0_4 = arith.constant 0 : index
    %c0_5 = arith.constant 0 : index
    %c0_6 = arith.constant 0 : index
    %8 = vector.load %arg4[%c0_4, %c0_5, %c0_6] : memref<9x4x128xbf16, #tpu.memory_space<vmem>>, vector<1x4x128xbf16>
    %9 = vector.shape_cast %8 : vector<1x4x128xbf16> to vector<4x128xbf16>
    %cst_7 = arith.constant dense<0.000000e+00> : vector<256x128xf32>
    %10 = tpu.matmul %7, %9, %cst_7 {dimension_numbers = #tpu.dot_dimension_numbers<[1], [0], [0], [1], [0, 0, 1, 1], [], []>} : vector<256x4xbf16>, vector<4x128xbf16>, vector<256x128xf32> -> vector<256x128xf32>
    %11 = arith.addf %4, %10 : vector<256x128xf32>
    %12 = arith.mulf %6, %6 : vector<256x4xf32>
    %13 = arith.truncf %12 : vector<256x4xf32> to vector<256x4xbf16>
    %c0_8 = arith.constant 0 : index
    %c0_9 = arith.constant 0 : index
    %c0_10 = arith.constant 0 : index
    %14 = vector.load %arg5[%c0_8, %c0_9, %c0_10] : memref<9x4x128xbf16, #tpu.memory_space<vmem>>, vector<1x4x128xbf16>
    %15 = vector.shape_cast %14 : vector<1x4x128xbf16> to vector<4x128xbf16>
    %cst_11 = arith.constant dense<0.000000e+00> : vector<256x128xf32>
    %16 = tpu.matmul %13, %15, %cst_11 {dimension_numbers = #tpu.dot_dimension_numbers<[1], [0], [0], [1], [0, 0, 1, 1], [], []>} : vector<256x4xbf16>, vector<4x128xbf16>, vector<256x128xf32> -> vector<256x128xf32>
    %17 = arith.addf %5, %16 : vector<256x128xf32>
    %18 = vector.extract_strided_slice %3 {offsets = [1, 0], sizes = [256, 4], strides = [1, 1]} : vector<512x4xf32> to vector<256x4xf32>
    %19 = arith.truncf %18 : vector<256x4xf32> to vector<256x4xbf16>
    %c1 = arith.constant 1 : index
    %c0_12 = arith.constant 0 : index
    %c0_13 = arith.constant 0 : index
    %20 = vector.load %arg4[%c1, %c0_12, %c0_13] : memref<9x4x128xbf16, #tpu.memory_space<vmem>>, vector<1x4x128xbf16>
    %21 = vector.shape_cast %20 : vector<1x4x128xbf16> to vector<4x128xbf16>
    %cst_14 = arith.constant dense<0.000000e+00> : vector<256x128xf32>
    %22 = tpu.matmul %19, %21, %cst_14 {dimension_numbers = #tpu.dot_dimension_numbers<[1], [0], [0], [1], [0, 0, 1, 1], [], []>} : vector<256x4xbf16>, vector<4x128xbf16>, vector<256x128xf32> -> vector<256x128xf32>
    %23 = arith.addf %11, %22 : vector<256x128xf32>
    %24 = arith.mulf %18, %18 : vector<256x4xf32>
    %25 = arith.truncf %24 : vector<256x4xf32> to vector<256x4xbf16>
    %c1_15 = arith.constant 1 : index
    %c0_16 = arith.constant 0 : index
    %c0_17 = arith.constant 0 : index
    %26 = vector.load %arg5[%c1_15, %c0_16, %c0_17] : memref<9x4x128xbf16, #tpu.memory_space<vmem>>, vector<1x4x128xbf16>
    %27 = vector.shape_cast %26 : vector<1x4x128xbf16> to vector<4x128xbf16>
    %cst_18 = arith.constant dense<0.000000e+00> : vector<256x128xf32>
    %28 = tpu.matmul %25, %27, %cst_18 {dimension_numbers = #tpu.dot_dimension_numbers<[1], [0], [0], [1], [0, 0, 1, 1], [], []>} : vector<256x4xbf16>, vector<4x128xbf16>, vector<256x128xf32> -> vector<256x128xf32>
    %29 = arith.addf %17, %28 : vector<256x128xf32>
    %30 = vector.extract_strided_slice %3 {offsets = [2, 0], sizes = [256, 4], strides = [1, 1]} : vector<512x4xf32> to vector<256x4xf32>
    %31 = arith.truncf %30 : vector<256x4xf32> to vector<256x4xbf16>
    %c2 = arith.constant 2 : index
    %c0_19 = arith.constant 0 : index
    %c0_20 = arith.constant 0 : index
    %32 = vector.load %arg4[%c2, %c0_19, %c0_20] : memref<9x4x128xbf16, #tpu.memory_space<vmem>>, vector<1x4x128xbf16>
    %33 = vector.shape_cast %32 : vector<1x4x128xbf16> to vector<4x128xbf16>
    %cst_21 = arith.constant dense<0.000000e+00> : vector<256x128xf32>
    %34 = tpu.matmul %31, %33, %cst_21 {dimension_numbers = #tpu.dot_dimension_numbers<[1], [0], [0], [1], [0, 0, 1, 1], [], []>} : vector<256x4xbf16>, vector<4x128xbf16>, vector<256x128xf32> -> vector<256x128xf32>
    %35 = arith.addf %23, %34 : vector<256x128xf32>
    %36 = arith.mulf %30, %30 : vector<256x4xf32>
    %37 = arith.truncf %36 : vector<256x4xf32> to vector<256x4xbf16>
    %c2_22 = arith.constant 2 : index
    %c0_23 = arith.constant 0 : index
    %c0_24 = arith.constant 0 : index
    %38 = vector.load %arg5[%c2_22, %c0_23, %c0_24] : memref<9x4x128xbf16, #tpu.memory_space<vmem>>, vector<1x4x128xbf16>
    %39 = vector.shape_cast %38 : vector<1x4x128xbf16> to vector<4x128xbf16>
    %cst_25 = arith.constant dense<0.000000e+00> : vector<256x128xf32>
    %40 = tpu.matmul %37, %39, %cst_25 {dimension_numbers = #tpu.dot_dimension_numbers<[1], [0], [0], [1], [0, 0, 1, 1], [], []>} : vector<256x4xbf16>, vector<4x128xbf16>, vector<256x128xf32> -> vector<256x128xf32>
    %41 = arith.addf %29, %40 : vector<256x128xf32>
    %42 = vector.extract_strided_slice %3 {offsets = [16, 0], sizes = [256, 4], strides = [1, 1]} : vector<512x4xf32> to vector<256x4xf32>
    %43 = arith.truncf %42 : vector<256x4xf32> to vector<256x4xbf16>
    %c3 = arith.constant 3 : index
    %c0_26 = arith.constant 0 : index
    %c0_27 = arith.constant 0 : index
    %44 = vector.load %arg4[%c3, %c0_26, %c0_27] : memref<9x4x128xbf16, #tpu.memory_space<vmem>>, vector<1x4x128xbf16>
    %45 = vector.shape_cast %44 : vector<1x4x128xbf16> to vector<4x128xbf16>
    %cst_28 = arith.constant dense<0.000000e+00> : vector<256x128xf32>
    %46 = tpu.matmul %43, %45, %cst_28 {dimension_numbers = #tpu.dot_dimension_numbers<[1], [0], [0], [1], [0, 0, 1, 1], [], []>} : vector<256x4xbf16>, vector<4x128xbf16>, vector<256x128xf32> -> vector<256x128xf32>
    %47 = arith.addf %35, %46 : vector<256x128xf32>
    %48 = arith.mulf %42, %42 : vector<256x4xf32>
    %49 = arith.truncf %48 : vector<256x4xf32> to vector<256x4xbf16>
    %c3_29 = arith.constant 3 : index
    %c0_30 = arith.constant 0 : index
    %c0_31 = arith.constant 0 : index
    %50 = vector.load %arg5[%c3_29, %c0_30, %c0_31] : memref<9x4x128xbf16, #tpu.memory_space<vmem>>, vector<1x4x128xbf16>
    %51 = vector.shape_cast %50 : vector<1x4x128xbf16> to vector<4x128xbf16>
    %cst_32 = arith.constant dense<0.000000e+00> : vector<256x128xf32>
    %52 = tpu.matmul %49, %51, %cst_32 {dimension_numbers = #tpu.dot_dimension_numbers<[1], [0], [0], [1], [0, 0, 1, 1], [], []>} : vector<256x4xbf16>, vector<4x128xbf16>, vector<256x128xf32> -> vector<256x128xf32>
    %53 = arith.addf %41, %52 : vector<256x128xf32>
    %54 = vector.extract_strided_slice %3 {offsets = [17, 0], sizes = [256, 4], strides = [1, 1]} : vector<512x4xf32> to vector<256x4xf32>
    %55 = arith.truncf %54 : vector<256x4xf32> to vector<256x4xbf16>
    %c4 = arith.constant 4 : index
    %c0_33 = arith.constant 0 : index
    %c0_34 = arith.constant 0 : index
    %56 = vector.load %arg4[%c4, %c0_33, %c0_34] : memref<9x4x128xbf16, #tpu.memory_space<vmem>>, vector<1x4x128xbf16>
    %57 = vector.shape_cast %56 : vector<1x4x128xbf16> to vector<4x128xbf16>
    %cst_35 = arith.constant dense<0.000000e+00> : vector<256x128xf32>
    %58 = tpu.matmul %55, %57, %cst_35 {dimension_numbers = #tpu.dot_dimension_numbers<[1], [0], [0], [1], [0, 0, 1, 1], [], []>} : vector<256x4xbf16>, vector<4x128xbf16>, vector<256x128xf32> -> vector<256x128xf32>
    %59 = arith.addf %47, %58 : vector<256x128xf32>
    %60 = arith.mulf %54, %54 : vector<256x4xf32>
    %61 = arith.truncf %60 : vector<256x4xf32> to vector<256x4xbf16>
    %c4_36 = arith.constant 4 : index
    %c0_37 = arith.constant 0 : index
    %c0_38 = arith.constant 0 : index
    %62 = vector.load %arg5[%c4_36, %c0_37, %c0_38] : memref<9x4x128xbf16, #tpu.memory_space<vmem>>, vector<1x4x128xbf16>
    %63 = vector.shape_cast %62 : vector<1x4x128xbf16> to vector<4x128xbf16>
    %cst_39 = arith.constant dense<0.000000e+00> : vector<256x128xf32>
    %64 = tpu.matmul %61, %63, %cst_39 {dimension_numbers = #tpu.dot_dimension_numbers<[1], [0], [0], [1], [0, 0, 1, 1], [], []>} : vector<256x4xbf16>, vector<4x128xbf16>, vector<256x128xf32> -> vector<256x128xf32>
    %65 = arith.addf %53, %64 : vector<256x128xf32>
    %66 = vector.extract_strided_slice %3 {offsets = [18, 0], sizes = [256, 4], strides = [1, 1]} : vector<512x4xf32> to vector<256x4xf32>
    %67 = arith.truncf %66 : vector<256x4xf32> to vector<256x4xbf16>
    %c5 = arith.constant 5 : index
    %c0_40 = arith.constant 0 : index
    %c0_41 = arith.constant 0 : index
    %68 = vector.load %arg4[%c5, %c0_40, %c0_41] : memref<9x4x128xbf16, #tpu.memory_space<vmem>>, vector<1x4x128xbf16>
    %69 = vector.shape_cast %68 : vector<1x4x128xbf16> to vector<4x128xbf16>
    %cst_42 = arith.constant dense<0.000000e+00> : vector<256x128xf32>
    %70 = tpu.matmul %67, %69, %cst_42 {dimension_numbers = #tpu.dot_dimension_numbers<[1], [0], [0], [1], [0, 0, 1, 1], [], []>} : vector<256x4xbf16>, vector<4x128xbf16>, vector<256x128xf32> -> vector<256x128xf32>
    %71 = arith.addf %59, %70 : vector<256x128xf32>
    %72 = arith.mulf %66, %66 : vector<256x4xf32>
    %73 = arith.truncf %72 : vector<256x4xf32> to vector<256x4xbf16>
    %c5_43 = arith.constant 5 : index
    %c0_44 = arith.constant 0 : index
    %c0_45 = arith.constant 0 : index
    %74 = vector.load %arg5[%c5_43, %c0_44, %c0_45] : memref<9x4x128xbf16, #tpu.memory_space<vmem>>, vector<1x4x128xbf16>
    %75 = vector.shape_cast %74 : vector<1x4x128xbf16> to vector<4x128xbf16>
    %cst_46 = arith.constant dense<0.000000e+00> : vector<256x128xf32>
    %76 = tpu.matmul %73, %75, %cst_46 {dimension_numbers = #tpu.dot_dimension_numbers<[1], [0], [0], [1], [0, 0, 1, 1], [], []>} : vector<256x4xbf16>, vector<4x128xbf16>, vector<256x128xf32> -> vector<256x128xf32>
    %77 = arith.addf %65, %76 : vector<256x128xf32>
    %78 = vector.extract_strided_slice %3 {offsets = [32, 0], sizes = [256, 4], strides = [1, 1]} : vector<512x4xf32> to vector<256x4xf32>
    %79 = arith.truncf %78 : vector<256x4xf32> to vector<256x4xbf16>
    %c6 = arith.constant 6 : index
    %c0_47 = arith.constant 0 : index
    %c0_48 = arith.constant 0 : index
    %80 = vector.load %arg4[%c6, %c0_47, %c0_48] : memref<9x4x128xbf16, #tpu.memory_space<vmem>>, vector<1x4x128xbf16>
    %81 = vector.shape_cast %80 : vector<1x4x128xbf16> to vector<4x128xbf16>
    %cst_49 = arith.constant dense<0.000000e+00> : vector<256x128xf32>
    %82 = tpu.matmul %79, %81, %cst_49 {dimension_numbers = #tpu.dot_dimension_numbers<[1], [0], [0], [1], [0, 0, 1, 1], [], []>} : vector<256x4xbf16>, vector<4x128xbf16>, vector<256x128xf32> -> vector<256x128xf32>
    %83 = arith.addf %71, %82 : vector<256x128xf32>
    %84 = arith.mulf %78, %78 : vector<256x4xf32>
    %85 = arith.truncf %84 : vector<256x4xf32> to vector<256x4xbf16>
    %c6_50 = arith.constant 6 : index
    %c0_51 = arith.constant 0 : index
    %c0_52 = arith.constant 0 : index
    %86 = vector.load %arg5[%c6_50, %c0_51, %c0_52] : memref<9x4x128xbf16, #tpu.memory_space<vmem>>, vector<1x4x128xbf16>
    %87 = vector.shape_cast %86 : vector<1x4x128xbf16> to vector<4x128xbf16>
    %cst_53 = arith.constant dense<0.000000e+00> : vector<256x128xf32>
    %88 = tpu.matmul %85, %87, %cst_53 {dimension_numbers = #tpu.dot_dimension_numbers<[1], [0], [0], [1], [0, 0, 1, 1], [], []>} : vector<256x4xbf16>, vector<4x128xbf16>, vector<256x128xf32> -> vector<256x128xf32>
    %89 = arith.addf %77, %88 : vector<256x128xf32>
    %90 = vector.extract_strided_slice %3 {offsets = [33, 0], sizes = [256, 4], strides = [1, 1]} : vector<512x4xf32> to vector<256x4xf32>
    %91 = arith.truncf %90 : vector<256x4xf32> to vector<256x4xbf16>
    %c7 = arith.constant 7 : index
    %c0_54 = arith.constant 0 : index
    %c0_55 = arith.constant 0 : index
    %92 = vector.load %arg4[%c7, %c0_54, %c0_55] : memref<9x4x128xbf16, #tpu.memory_space<vmem>>, vector<1x4x128xbf16>
    %93 = vector.shape_cast %92 : vector<1x4x128xbf16> to vector<4x128xbf16>
    %cst_56 = arith.constant dense<0.000000e+00> : vector<256x128xf32>
    %94 = tpu.matmul %91, %93, %cst_56 {dimension_numbers = #tpu.dot_dimension_numbers<[1], [0], [0], [1], [0, 0, 1, 1], [], []>} : vector<256x4xbf16>, vector<4x128xbf16>, vector<256x128xf32> -> vector<256x128xf32>
    %95 = arith.addf %83, %94 : vector<256x128xf32>
    %96 = arith.mulf %90, %90 : vector<256x4xf32>
    %97 = arith.truncf %96 : vector<256x4xf32> to vector<256x4xbf16>
    %c7_57 = arith.constant 7 : index
    %c0_58 = arith.constant 0 : index
    %c0_59 = arith.constant 0 : index
    %98 = vector.load %arg5[%c7_57, %c0_58, %c0_59] : memref<9x4x128xbf16, #tpu.memory_space<vmem>>, vector<1x4x128xbf16>
    %99 = vector.shape_cast %98 : vector<1x4x128xbf16> to vector<4x128xbf16>
    %cst_60 = arith.constant dense<0.000000e+00> : vector<256x128xf32>
    %100 = tpu.matmul %97, %99, %cst_60 {dimension_numbers = #tpu.dot_dimension_numbers<[1], [0], [0], [1], [0, 0, 1, 1], [], []>} : vector<256x4xbf16>, vector<4x128xbf16>, vector<256x128xf32> -> vector<256x128xf32>
    %101 = arith.addf %89, %100 : vector<256x128xf32>
    %102 = vector.extract_strided_slice %3 {offsets = [34, 0], sizes = [256, 4], strides = [1, 1]} : vector<512x4xf32> to vector<256x4xf32>
    %103 = arith.truncf %102 : vector<256x4xf32> to vector<256x4xbf16>
    %c8 = arith.constant 8 : index
    %c0_61 = arith.constant 0 : index
    %c0_62 = arith.constant 0 : index
    %104 = vector.load %arg4[%c8, %c0_61, %c0_62] : memref<9x4x128xbf16, #tpu.memory_space<vmem>>, vector<1x4x128xbf16>
    %105 = vector.shape_cast %104 : vector<1x4x128xbf16> to vector<4x128xbf16>
    %cst_63 = arith.constant dense<0.000000e+00> : vector<256x128xf32>
    %106 = tpu.matmul %103, %105, %cst_63 {dimension_numbers = #tpu.dot_dimension_numbers<[1], [0], [0], [1], [0, 0, 1, 1], [], []>} : vector<256x4xbf16>, vector<4x128xbf16>, vector<256x128xf32> -> vector<256x128xf32>
    %107 = arith.addf %95, %106 : vector<256x128xf32>
    %108 = arith.mulf %102, %102 : vector<256x4xf32>
    %109 = arith.truncf %108 : vector<256x4xf32> to vector<256x4xbf16>
    %c8_64 = arith.constant 8 : index
    %c0_65 = arith.constant 0 : index
    %c0_66 = arith.constant 0 : index
    %110 = vector.load %arg5[%c8_64, %c0_65, %c0_66] : memref<9x4x128xbf16, #tpu.memory_space<vmem>>, vector<1x4x128xbf16>
    %111 = vector.shape_cast %110 : vector<1x4x128xbf16> to vector<4x128xbf16>
    %cst_67 = arith.constant dense<0.000000e+00> : vector<256x128xf32>
    %112 = tpu.matmul %109, %111, %cst_67 {dimension_numbers = #tpu.dot_dimension_numbers<[1], [0], [0], [1], [0, 0, 1, 1], [], []>} : vector<256x4xbf16>, vector<4x128xbf16>, vector<256x128xf32> -> vector<256x128xf32>
    %113 = arith.addf %101, %112 : vector<256x128xf32>
    %114 = math.sqrt %113 : vector<256x128xf32>
    %c0_68 = arith.constant 0 : index
    %c0_69 = arith.constant 0 : index
    %115 = vector.load %arg1[%c0_68, %c0_69] : memref<256x128xbf16, #tpu.memory_space<vmem>>, vector<256x128xbf16>
    %116 = arith.extf %115 : vector<256x128xbf16> to vector<256x128xf32>
    %117 = arith.mulf %114, %116 : vector<256x128xf32>
    %118 = arith.addf %107, %117 : vector<256x128xf32>
    %119 = arith.truncf %118 : vector<256x128xf32> to vector<256x128xbf16>
    %c0_70 = arith.constant 0 : index
    %c0_71 = arith.constant 0 : index
    %120 = vector.load %arg6[%c0_70, %c0_71] : memref<256x128xbf16, #tpu.memory_space<vmem>>, vector<256x128xbf16>
    tpu.vector_store %arg6[%c0_70, %c0_71], %119 {strides = array<i32>} : memref<256x128xbf16, #tpu.memory_space<vmem>>, vector<256x128xbf16>,
    return
  }
  func.func @transform_0(%arg0: i32) -> (i32, i32) {
    %c0_i32 = arith.constant 0 : i32
    %c0_i32_0 = arith.constant 0 : i32
    return %arg0, %c0_i32 : i32, i32
  }
  func.func @transform_1(%arg0: i32) -> (i32, i32) {
    %c0_i32 = arith.constant 0 : i32
    %0 = arith.addi %arg0, %c0_i32 : i32
    %c0_i32_0 = arith.constant 0 : i32
    %c0_i32_1 = arith.constant 0 : i32
    return %0, %c0_i32_0 : i32, i32
  }
  func.func @transform_2(%arg0: i32) -> (i32, i32) {
    %c1_i32 = arith.constant 1 : i32
    %0 = arith.addi %arg0, %c1_i32 : i32
    %c0_i32 = arith.constant 0 : i32
    %c0_i32_0 = arith.constant 0 : i32
    return %0, %c0_i32 : i32, i32
  }
  func.func @transform_3(%arg0: i32) -> (i32, i32, i32) {
    %c0_i32 = arith.constant 0 : i32
    %c0_i32_0 = arith.constant 0 : i32
    %c0_i32_1 = arith.constant 0 : i32
    %c0_i32_2 = arith.constant 0 : i32
    return %c0_i32, %c0_i32_0, %c0_i32_1 : i32, i32, i32
  }
  func.func @transform_4(%arg0: i32) -> (i32, i32, i32) {
    %c0_i32 = arith.constant 0 : i32
    %c0_i32_0 = arith.constant 0 : i32
    %c0_i32_1 = arith.constant 0 : i32
    %c0_i32_2 = arith.constant 0 : i32
    return %c0_i32, %c0_i32_0, %c0_i32_1 : i32, i32, i32
  }
  func.func @transform_5(%arg0: i32) -> (i32, i32) {
    %c0_i32 = arith.constant 0 : i32
    %c0_i32_0 = arith.constant 0 : i32
    return %arg0, %c0_i32 : i32, i32
  }
}

</mosaic_0001>

<bundles_post_ra>
// kernel: mnf_conv2d_forward.1
= control target key start
LH: loop header
LB: loop body
LE: loop exit
PB: predicated region body
PF: predicated region fallthrough
CT: control target
= control target key end

     0   :  { %s6996_s18 = smov 0   ;;  %s10175_s0 = inlined_call_operand.vmem [shape: bf16[512,128], index: 0, kind: input, shape index: {}, may-alias: {0,5}]   ;;  %s10176_s1 = inlined_call_operand.vmem [shape: bf16[768,4], index: 1, kind: input, shape index: {}, may-alias: {1,2}]   ;;  %s10177_s2 = inlined_call_operand.vmem [shape: bf16[768,4], index: 2, kind: input, shape index: {}, may-alias: {1,2}]   ;;  %s10178_s3 = inlined_call_operand.vmem [shape: bf16[9,4,128], index: 3, kind: input, shape index: {}]   ;;  %s10179_s4 = inlined_call_operand.vmem [shape: bf16[9,4,128], index: 4, kind: input, shape index: {}]   ;;  %s10180_s5 = inlined_call_operand.vmem [shape: bf16[512,128], index: 5, kind: output, shape index: {}, may-alias: {0,5}]  }
   0x1 LB: > { %s5330_s19 = sadd.s32 4294967295, %s6964_s18   ;;  %p5334_p0 = scmp.ge.s32.totalorder %s6964_s18, 1  ;;  %s6964_s18 = sphi %s6996_s18, %s15_s18  }
   0x2   : > { %p214_p1 = scmp.lt.s32.totalorder %s6964_s18, 3 }
   0x4   : > { %p215_p2 = pnand %p5334_p0, %p214_p1 }
   0x6   : > { %218 = sbr.rel (%p215_p2) target bundleno = 843 (0x34b), region = 40 }
   0xb   : > { %v485_v0 = vld [vmem:[%s10178_s3] sm:$0x3]  ;;  %vm720_vm0 = vcmask 1041408   ;;  %s7007_s22 = sshll.u32 %s5330_s19, 5  ;;  %v5363_v3 = vld [vmem:[%s10178_s3 + $0x2] sm:$0x3] }
   0xc   : > { %6833 = vmatprep.subr.msk.bf16.mxu1 %vm720_vm0, %v485_v0  ;;  %v918_v1 = vsel %vm720_vm0, %v485_v0, 0  ;;  %p260_p3 = scmp.lt.s32.totalorder %s7007_s22, 95  ;;  %v534_v2 = vld [vmem:[%s10179_s4] sm:$0x3]  ;;  %6832 = vmatprep.subr.msk.bf16.mxu0 %vm720_vm0, %v5363_v3  ;;  %v722_v4 = vsel %vm720_vm0, %v5363_v3, 0  ;;  %vm671_vm1 = vcmask 31744  }
   0xd   : > { %6255 = vmatpush3.bf16.msra.mxu1 %v918_v1  ;;  %v5396_v5 = vld [vmem:[%s10179_s4 + $0x2] sm:$0x3]  ;;  %6221 = vmatpush3.bf16.msra.mxu0 %v722_v4  ;;  %vm538_vm2 = vsmask.f32 7424  ;;  %v7037_v7 = vld [vmem:[%s10179_s4 + $0x4] sm:$0x3] }
   0xe   : > { %s261_s29 = scalar_select %p260_p3, %s7007_s22, 95  ;;  %6835 = vmatprep.subr.msk.bf16.mxu1 %vm720_vm0, %v534_v2  ;;  %6834 = vmatprep.subr.msk.bf16.mxu0 %vm720_vm0, %v5396_v5  ;;  %v1462_v9 = vsel %vm720_vm0, %v534_v2, 0  ;;  %v1266_v30 = vsel %vm720_vm0, %v5396_v5, 0  ;;  %v7088_v37 = vld [vmem:[%s10178_s3 + $0x4] sm:$0x3]  ;;  %vm1644_vm3 = vcmask 1046528  }
   0xf   : > { %s5704_s13 = sadd.s32 32, %s7007_s22  ;;  %p254_p5 = scmp.lt.s32.totalorder %s7007_s22, 63 }
  0x10   : > { %s5338_s30 = sshll.u32 %s261_s29, 2  ;;  %p267_p4 = scmp.lt.s32.totalorder %s5704_s13, 95 }
  0x11   : > { %s7029_s8 = scalar_lea.vmem %s10176_s1, %s5338_s30  ;;  %s10809_s22 = smov (!%p254_p5, %s7007_s22), 63 }
  0x12   : > { %v7032_v6 = vld [vmem:[%s7029_s8] sm:$0xff]   ;;  %v7040_v8 = vld [vmem:[%s7029_s8 + $0x8] sm:$0xff]   ;;  %v7052_v14 = vld [vmem:[%s7029_s8 + $0x10] sm:$0xff]   ;;  %s10807_s13 = smov (!%p267_p4, %s5704_s13), 95 }
  0x13   : > { %6256 = vmatprep.mubr.msk.bf16.mxu1 %vm671_vm1, %v7032_v6  ;;  %v540_v10 = vshrl.u32 %v7032_v6, 16  ;;  %v542_v11 = vshll.u32 %v7032_v6, 16  ;;  %v547_v12 = vshll.u32 %v7040_v8, 16  ;;  %v551_v13 = vshrl.u32 %v7040_v8, 16  ;;  %v7055_v15 = vld [vmem:[%s7029_s8 + $0x18] sm:$0xff]   ;;  %v7058_v17 = vld [vmem:[%s7029_s8 + $0x20] sm:$0xff]  }
  0x14   : > { %6257 = vmatmul.mubr.msk.bf16.vlgmr.msra.gmra.mxu1 %vm671_vm1, %v7040_v8  ;;  %v555_v19 = vshll.u32 %v7052_v14, 16  ;;  %v559_v20 = vshrl.u32 %v7052_v14, 16  ;;  %v563_v21 = vshll.u32 %v7055_v15, 16  ;;  %v571_v23 = vshll.u32 %v7058_v17, 16  ;;  %v7070_v28 = vld [vmem:[%s7029_s8 + $0x28] sm:$0xff]   ;;  %v7083_v36 = vld [vmem:[%s7029_s8 + $0x30] sm:$0xff]  }
  0x15   : > { %6323 = vmatpush3.bf16.msra.mxu1 %v1462_v9  ;;  %v544_v16 = vrot.slane %v542_v11, 1  ;;  %v549_v18 = vrot.slane %v547_v12, 1  ;;  %6260 = vmatprep.mubr.msk.bf16.mxu1 %vm671_vm1, %v7052_v14  ;;  %v567_v27 = vshrl.u32 %v7055_v15, 16  ;;  %v575_v31 = vshrl.u32 %v7058_v17, 16  ;;  %v7100_v42 = vld [vmem:[%s7029_s8 + $0x38] sm:$0xff]   ;;  %v7117_v50 = vld [vmem:[%s7029_s8 + $0x40] sm:$0xff]  }
  0x16   : > { %6837 = vmatprep.subr.msk.bf16.mxu1 %vm720_vm0, %v7037_v7  ;;  %v557_v25 = vrot.slane %v555_v19, 1  ;;  %v565_v26 = vrot.slane %v563_v21, 1  ;;  %v579_v34 = vshll.u32 %v7070_v28, 16  ;;  %v573_v35 = vrot.slane %v571_v23, 1  ;;  %v7126_v54 = vld [vmem:[%s7029_s8 + $0x48] sm:$0xff]   ;;  %v7141_v62 = vld [vmem:[%s7029_s8 + $0x50] sm:$0xff]  }
  0x17   : > { %v545_v22 = vor.u32 %v544_v16, %v540_v10  ;;  %v553_v24 = vor.u32 %v551_v13, %v549_v18  ;;  %v587_v43 = vshll.u32 %v7083_v36, 16  ;;  %v583_v45 = vshrl.u32 %v7070_v28, 16  ;;  %v7150_v2 = vld [vmem:[%s7029_s8 + $0x58] sm:$0xff]   ;;  %v7166_v13 = vld [vmem:[%s7029_s8 + $0x60] sm:$0xff]   ;;  %s5340_s14 = sshll.u32 %s10807_s13, 2 }
  0x18   : > { %v561_v33 = vor.u32 %v559_v20, %v557_v25  ;;  %v569_v39 = vor.u32 %v567_v27, %v565_v26  ;;  %v577_v40 = vor.u32 %v575_v31, %v573_v35  ;;  %v581_v41 = vrot.slane %v579_v34, 1  ;;  %v7175_v20 = vld [vmem:[%s7029_s8 + $0x68] sm:$0xff]   ;;  %v7192_v31 = vld [vmem:[%s7029_s8 + $0x70] sm:$0xff]   ;;  %s7208_s17 = scalar_lea.vmem %s10177_s2, %s5340_s14 }
  0x19   : > { %v550_v29 = vsel %vm538_vm2, %v545_v22, %v549_v18  ;;  %v7077_v32 = vsel %vm538_vm2, %v553_v24, %v557_v25  ;;  %v591_v47 = vshrl.u32 %v7083_v36, 16  ;;  %v595_v48 = vshll.u32 %v7100_v42, 16 }
  0x1a   : > { %6222 = vmatprep.mubr.msk.bf16.mxu0 %vm671_vm1, %v550_v29  ;;  %v7093_v38 = vsel %vm538_vm2, %v561_v33, %v565_v26  ;;  %v7106_v44 = vsel %vm538_vm2, %v569_v39, %v573_v35  ;;  %v7110_v46 = vsel %vm538_vm2, %v577_v40, %v581_v41  ;;  %v589_v49 = vrot.slane %v587_v43, 1 }
  0x1b   : > { %6223 = vmatmul.mubr.msk.bf16.vlgmr.msra.gmra.mxu0 %vm671_vm1, %v7077_v32  ;;  %10313 = vst [vmem:[#allocation2_spill] sm:$0xff] %v7093_v38  ;;  %10314 = vst [vmem:[#allocation3_spill] sm:$0xff] %v7106_v44  ;;  %v585_v51 = vor.u32 %v583_v45, %v581_v41  ;;  %v597_v53 = vrot.slane %v595_v48, 1  ;;  %v603_v55 = vshll.u32 %v7117_v50, 16  ;;  %v599_v57 = vshrl.u32 %v7100_v42, 16  ;;  %v7203_v45 = vld [vmem:[%s7029_s8 + $0x78] sm:$0xff]  }
  0x1c   : > { %6261 = vmatmul.mubr.msk.bf16.gmra.mxu1 %vm671_vm1, %v7055_v15  ;;  %6289 = vmatpush3.bf16.msra.mxu0 %v1266_v30  ;;  %10315 = vst [vmem:[#allocation4_spill] sm:$0xff] %v7110_v46  ;;  %v593_v52 = vor.u32 %v591_v47, %v589_v49  ;;  %v607_v59 = vshrl.u32 %v7117_v50, 16  ;;  %v611_v60 = vshll.u32 %v7126_v54, 16  ;;  %v619_v3 = vshll.u32 %v7141_v62, 16 }
  0x1d   : > { %6226 = vmatprep.mubr.msk.bf16.mxu0 %vm671_vm1, %v7093_v38  ;;  %6264 = vmatprep.mubr.msk.bf16.mxu1 %vm671_vm1, %v7058_v17  ;;  %v7130_v56 = vsel %vm538_vm2, %v585_v51, %v589_v49  ;;  %v605_v61 = vrot.slane %v603_v55, 1  ;;  %v601_v63 = vor.u32 %v599_v57, %v597_v53  ;;  %v615_v5 = vshrl.u32 %v7126_v54, 16 }
  0x1e   : > { %6836 = vmatprep.subr.msk.bf16.mxu0 %vm720_vm0, %v7088_v37  ;;  %10316 = vst [vmem:[#allocation5_spill] sm:$0xff] %v7130_v56  ;;  %v7134_v58 = vsel %vm538_vm2, %v593_v52, %v597_v53  ;;  %v613_v1 = vrot.slane %v611_v60, 1  ;;  %v623_v10 = vshrl.u32 %v7141_v62, 16  ;;  %v627_v11 = vshll.u32 %v7150_v2, 16  ;;  %v7223_v60 = vld [vmem:[%s7208_s17] sm:$0xf] }
  0x1f   : > { %10317 = vst [vmem:[#allocation6_spill] sm:$0xff] %v7134_v58  ;;  %v609_v0 = vor.u32 %v607_v59, %v605_v61  ;;  %v7154_v4 = vsel %vm538_vm2, %v601_v63, %v605_v61  ;;  %v621_v12 = vrot.slane %v619_v3, 1  ;;  %v635_v21 = vshll.u32 %v7166_v13, 16 }
  0x20   : > { %10318 = vst [vmem:[#allocation7_spill] sm:$0xff] %v7154_v4  ;;  %v617_v16 = vor.u32 %v615_v5, %v613_v1  ;;  %v629_v19 = vrot.slane %v627_v11, 1  ;;  %v432_v22 = vunpack.c.l.bf16 %v7032_v6  ;;  %v433_v23 = vunpack.c.h.bf16 %v7032_v6 }
  0x21   : > { %v7159_v9 = vsel %vm538_vm2, %v609_v0, %v613_v1  ;;  %v625_v18 = vor.u32 %v623_v10, %v621_v12  ;;  %v631_v25 = vshrl.u32 %v7150_v2, 16  ;;  %v639_v27 = vshrl.u32 %v7166_v13, 16 }
  0x22   : > { %10319 = vst [vmem:[#allocation8_spill] sm:$0xff] %v7159_v9  ;;  %v7181_v24 = vsel %vm538_vm2, %v617_v16, %v621_v12  ;;  %v643_v29 = vshll.u32 %v7175_v20, 16  ;;  %v637_v30 = vrot.slane %v635_v21, 1  ;;  %v486_v33 = vmul.f32 %v432_v22, %v432_v22 }
  0x23   : > { %6227 = vmatmul.mubr.msk.bf16.gmra.mxu0 %vm671_vm1, %v7106_v44  ;;  %10320 = vst [vmem:[#allocation9_spill] sm:$0xff] %v7181_v24  ;;  %v7185_v26 = vsel %vm538_vm2, %v625_v18, %v629_v19  ;;  %v487_v34 = vmul.f32 %v433_v23, %v433_v23  ;;  %v633_v35 = vor.u32 %v631_v25, %v629_v19  ;;  %v434_v39 = vunpack.c.l.bf16 %v7040_v8 }
  0x24   : > { %6265 = vmatmul.mubr.msk.bf16.gmra.mxu1 %vm671_vm1, %v7070_v28  ;;  %6230 = vmatprep.mubr.msk.bf16.mxu0 %vm671_vm1, %v7110_v46  ;;  %10321 = vst [vmem:[#allocation10_spill] sm:$0xff] %v7185_v26  ;;  %v435_v40 = vunpack.c.h.bf16 %v7040_v8  ;;  %v641_v41 = vor.u32 %v639_v27, %v637_v30  ;;  %v645_v43 = vrot.slane %v643_v29, 1  ;;  %v651_v47 = vshll.u32 %v7192_v31, 16 }
  0x25   : > { %6268 = vmatprep.mubr.msk.bf16.mxu1 %vm671_vm1, %v7083_v36  ;;  %v7211_v48 = vpack.c.bf16 %v487_v34, %v486_v33  ;;  %v7214_v49 = vsel %vm538_vm2, %v633_v35, %v637_v30  ;;  %v647_v51 = vshrl.u32 %v7175_v20, 16  ;;  %v488_v52 = vmul.f32 %v434_v39, %v434_v39 }
  0x26   : > { %10322 = vst [vmem:[#allocation11_spill] sm:$0xff] %v7214_v49  ;;  %v489_v53 = vmul.f32 %v435_v40, %v435_v40  ;;  %v7218_v55 = vsel %vm538_vm2, %v641_v41, %v645_v43  ;;  %v655_v57 = vshrl.u32 %v7192_v31, 16  ;;  %v659_v59 = vshll.u32 %v7203_v45, 16 }
  0x27   : > { %10323 = vst [vmem:[#allocation12_spill] sm:$0xff] %v7218_v55  ;;  %v653_v61 = vrot.slane %v651_v47, 1  ;;  %v436_v63 = vunpack.c.l.bf16 %v7052_v14  ;;  %v437_v0 = vunpack.c.h.bf16 %v7052_v14  ;;  %v649_v1 = vor.u32 %v647_v51, %v645_v43 }
  0x28   : > { %v7235_v3 = vcombine.low %v7223_v60, %v7223_v60  ;;  %v7237_v5 = vpack.c.bf16 %v489_v53, %v488_v52  ;;  %v1088_v10 = vshll.u32 %v7211_v48, 16  ;;  %v661_v12 = vrot.slane %v659_v59, 1 }
  0x29   : > { %v657_v11 = vor.u32 %v655_v57, %v653_v61  ;;  %v438_v16 = vunpack.c.l.bf16 %v7055_v15  ;;  %v439_v18 = vunpack.c.h.bf16 %v7055_v15  ;;  %v1086_v19 = vshrl.u32 %v7211_v48, 16 }
  0x2a   : > { %v490_v21 = vmul.f32 %v436_v63, %v436_v63  ;;  %v491_v22 = vmul.f32 %v437_v0, %v437_v0  ;;  %v7246_v23 = vsel %vm538_vm2, %v649_v1, %v653_v61  ;;  %v663_v25 = vshrl.u32 %v7203_v45, 16 }
  0x2b   : > { %6231 = vmatmul.mubr.msk.bf16.gmra.mxu0 %vm671_vm1, %v7130_v56  ;;  %10324 = vst [vmem:[#allocation13_spill] sm:$0xff] %v7246_v23  ;;  %v667_v27 = vshll.u32 %v7235_v3, 16  ;;  %v1090_v29 = vrot.slane %v1088_v10, 1  ;;  %v7251_v30 = vsel %vm538_vm2, %v657_v11, %v661_v12  ;;  %v1093_v33 = vshll.u32 %v7237_v5, 16 }
  0x2c   : > { %6269 = vmatmul.mubr.msk.bf16.gmra.mxu1 %vm671_vm1, %v7100_v42  ;;  %6234 = vmatprep.mubr.msk.bf16.mxu0 %vm671_vm1, %v7134_v58  ;;  %10325 = vst [vmem:[#allocation14_spill] sm:$0xff] %v7251_v30  ;;  %v492_v34 = vmul.f32 %v438_v16, %v438_v16  ;;  %v493_v35 = vmul.f32 %v439_v18, %v439_v18  ;;  %v440_v39 = vunpack.c.l.bf16 %v7058_v17  ;;  %v441_v40 = vunpack.c.h.bf16 %v7058_v17 }
  0x2d   : > { %6272 = vmatprep.mubr.msk.bf16.mxu1 %vm671_vm1, %v7117_v50  ;;  %v7258_v41 = vpack.c.bf16 %v491_v22, %v490_v21  ;;  %v7264_v43 = vor.u32 %v663_v25, %v661_v12  ;;  %v669_v47 = vrot.slane %v667_v27, 1  ;;  %v442_v51 = vunpack.c.l.bf16 %v7070_v28 }
  0x2e   : > { %v443_v52 = vunpack.c.h.bf16 %v7070_v28  ;;  %v1091_v53 = vor.u32 %v1090_v29, %v1086_v19  ;;  %v1095_v57 = vrot.slane %v1093_v33, 1  ;;  %v7270_v59 = vpack.c.bf16 %v493_v35, %v492_v34  ;;  %v7289_v33 = vld [vmem:[%s10179_s4 + $0x6] sm:$0x3] }
  0x2f   : > { %10326 = vst [vmem:[#allocation15_spill] sm:$0xff] %v7258_v41  ;;  %10327 = vst [vmem:[#allocation16_spill] sm:$0xff] %v7264_v43  ;;  %v494_v61 = vmul.f32 %v440_v39, %v440_v39  ;;  %v495_v63 = vmul.f32 %v441_v40, %v441_v40  ;;  %v1101_v0 = vshll.u32 %v7258_v41, 16  ;;  %v670_v1 = vsel %vm538_vm2, %v7264_v43, %v669_v47 }
  0x30   : > { %10328 = vst [vmem:[#allocation17_spill] sm:$0xff] %v7270_v59  ;;  %v1097_v10 = vshrl.u32 %v7237_v5, 16  ;;  %v496_v11 = vmul.f32 %v442_v51, %v442_v51  ;;  %v497_v12 = vmul.f32 %v443_v52, %v443_v52  ;;  %v1096_v16 = vsel %vm538_vm2, %v1091_v53, %v1095_v57 }
  0x31   : > { %v1105_v18 = vshrl.u32 %v7258_v41, 16  ;;  %v1109_v19 = vshll.u32 %v7270_v59, 16  ;;  %v2023_v21 = vsel %vm720_vm0, %v7037_v7, 0  ;;  %v7281_v22 = vpack.c.bf16 %v495_v63, %v494_v61 }
  0x32   : > { %v1103_v25 = vrot.slane %v1101_v0, 1  ;;  %v444_v27 = vunpack.c.l.bf16 %v7083_v36  ;;  %v445_v29 = vunpack.c.h.bf16 %v7083_v36  ;;  %v1099_v34 = vor.u32 %v1097_v10, %v1095_v57 }
  0x33   : > { %6235 = vmatmul.mubr.msk.bf16.gmra.mxu0 %vm671_vm1, %v7154_v4  ;;  %10329 = vst [vmem:[#allocation18_spill] sm:$0xff] %v7281_v22  ;;  %v7294_v7 = vpack.c.bf16 %v497_v12, %v496_v11  ;;  %v1111_v39 = vrot.slane %v1109_v19, 1  ;;  %v446_v40 = vunpack.c.l.bf16 %v7100_v42  ;;  %v447_v47 = vunpack.c.h.bf16 %v7100_v42 }
  0x34   : > { %6273 = vmatmul.mubr.msk.bf16.gmra.mxu1 %vm671_vm1, %v7126_v54  ;;  %6238 = vmatprep.mubr.msk.bf16.mxu0 %vm671_vm1, %v7159_v9  ;;  %v1107_v35 = vor.u32 %v1105_v18, %v1103_v25  ;;  %v1117_v51 = vshll.u32 %v7281_v22, 16  ;;  %v498_v52 = vmul.f32 %v444_v27, %v444_v27  ;;  %v499_v53 = vmul.f32 %v445_v29, %v445_v29 }
  0x35   : > { %6276 = vmatprep.mubr.msk.bf16.mxu1 %vm671_vm1, %v7141_v62  ;;  %10330 = vst [vmem:[#allocation19_spill] sm:$0xff] %v7294_v7  ;;  %v7304_v57 = vsel %vm538_vm2, %v1099_v34, %v1103_v25  ;;  %v1113_v61 = vshrl.u32 %v7270_v59, 16  ;;  %v1121_v63 = vshrl.u32 %v7281_v22, 16  ;;  %v500_v10 = vmul.f32 %v446_v40, %v446_v40  ;;  %v7323_v25 = vld [vmem:[%s10178_s3 + $0x6] sm:$0x3] }
  0x36   : > { %v7309_v0 = vsel %vm538_vm2, %v1107_v35, %v1111_v39  ;;  %v501_v11 = vmul.f32 %v447_v47, %v447_v47  ;;  %v1119_v12 = vrot.slane %v1117_v51, 1  ;;  %v7316_v18 = vpack.c.bf16 %v499_v53, %v498_v52 }
  0x37   : > { %10331 = vst [vmem:[#allocation20_spill] sm:$0xff] %v7309_v0  ;;  %v448_v19 = vunpack.c.l.bf16 %v7117_v50  ;;  %v450_v35 = vunpack.c.l.bf16 %v7126_v54  ;;  %v451_v40 = vunpack.c.h.bf16 %v7126_v54  ;;  %v1129_v53 = vshrl.u32 %v7294_v7, 16 }
  0x38   : > { %10332 = vst [vmem:[#allocation21_spill] sm:$0xff] %v7316_v18  ;;  %v1123_v27 = vor.u32 %v1121_v63, %v1119_v12  ;;  %v7331_v34 = vpack.c.bf16 %v501_v11, %v500_v10  ;;  %v1133_v47 = vshll.u32 %v7316_v18, 16 }
  0x39   : > { %v502_v51 = vmul.f32 %v448_v19, %v448_v19  ;;  %v504_v10 = vmul.f32 %v450_v35, %v450_v35  ;;  %v505_v11 = vmul.f32 %v451_v40, %v451_v40  ;;  %v455_v35 = vunpack.c.h.bf16 %v7150_v2 }
  0x3a   : > { %10333 = vst [vmem:[#allocation22_spill] sm:$0xff] %v7331_v34 }
  0x3b   : > { %6239 = vmatmul.mubr.msk.bf16.gmra.mxu0 %vm671_vm1, %v7181_v24 }
  0x3c   : > { %6277 = vmatmul.mubr.msk.bf16.gmra.mxu1 %vm671_vm1, %v7150_v2  ;;  %6242 = vmatprep.mubr.msk.bf16.mxu0 %vm671_vm1, %v7185_v26 }
  0x3d   : > { %6280 = vmatprep.mubr.msk.bf16.mxu1 %vm671_vm1, %v7166_v13 }
  0x43   : > { %6243 = vmatmul.mubr.msk.bf16.gmra.mxu0 %vm671_vm1, %v7214_v49 }
  0x44   : > { %6281 = vmatmul.mubr.msk.bf16.gmra.mxu1 %vm671_vm1, %v7175_v20  ;;  %6246 = vmatprep.mubr.msk.bf16.mxu0 %vm671_vm1, %v7218_v55  ;;  %v509_v55 = vmul.f32 %v455_v35, %v455_v35 }
  0x45   : > { %6284 = vmatprep.mubr.msk.bf16.mxu1 %vm671_vm1, %v7192_v31 }
  0x4b   : > { %6247 = vmatmul.mubr.msk.bf16.gmra.mxu0 %vm671_vm1, %v7246_v23 }
  0x4c   : > { %6285 = vmatmul.mubr.msk.bf16.gmra.mxu1 %vm671_vm1, %v7203_v45  ;;  %6250 = vmatprep.mubr.msk.bf16.mxu0 %vm671_vm1, %v7251_v30 }
  0x4d   : > { %6324 = vmatprep.mubr.msk.bf16.mxu1 %vm671_vm1, %v7211_v48 }
  0x53   : > { %6251 = vmatmul.mubr.msk.bf16.gmra.mxu0 %vm671_vm1, %v670_v1  ;;  %v1125_v1 = vshll.u32 %v7294_v7, 16 }
  0x54   : > { %6325 = vmatmul.mubr.msk.bf16.vlgmr.msra.gmra.mxu1 %vm671_vm1, %v7237_v5  ;;  %6290 = vmatprep.mubr.msk.bf16.mxu0 %vm671_vm1, %v1096_v16  ;;  %v1727_v16 = vsel %vm720_vm0, %v7088_v37, 0  ;;  %v1115_v37 = vor.u32 %v1113_v61, %v1111_v39  ;;  %v1137_v61 = vshrl.u32 %v7316_v18, 16 }
  0x55   : > { %6391 = vmatpush3.bf16.msra.mxu1 %v2023_v21  ;;  %6328 = vmatprep.mubr.msk.bf16.mxu1 %vm671_vm1, %v7258_v41  ;;  %v449_v21 = vunpack.c.h.bf16 %v7117_v50  ;;  %v1127_v29 = vrot.slane %v1125_v1, 1  ;;  %v1141_v1 = vshll.u32 %v7331_v34, 16 }
  0x56   : > { %6839 = vmatprep.subr.msk.bf16.mxu1 %vm720_vm0, %v7289_v33  ;;  %v7339_v39 = vsel %vm538_vm2, %v1115_v37, %v1119_v12  ;;  %v452_v12 = vunpack.c.l.bf16 %v7141_v62 }
  0x57   : > { %v503_v52 = vmul.f32 %v449_v21, %v449_v21  ;;  %10334 = vst [vmem:[#allocation23_spill] sm:$0xff] %v7339_v39  ;;  %v7344_v63 = vsel %vm538_vm2, %v1123_v27, %v1127_v29  ;;  %v453_v21 = vunpack.c.h.bf16 %v7141_v62  ;;  %v1131_v37 = vor.u32 %v1129_v53, %v1127_v29 }
  0x58   : > { %10335 = vst [vmem:[#allocation24_spill] sm:$0xff] %v7344_v63  ;;  %v454_v27 = vunpack.c.l.bf16 %v7150_v2  ;;  %v506_v30 = vmul.f32 %v452_v12, %v452_v12  ;;  %v1145_v29 = vshrl.u32 %v7331_v34, 16 }
  0x59   : > { %v7349_v19 = vpack.c.bf16 %v503_v52, %v502_v51  ;;  %v7361_v51 = vpack.c.bf16 %v505_v11, %v504_v10  ;;  %v507_v43 = vmul.f32 %v453_v21, %v453_v21  ;;  %v456_v11 = vunpack.c.l.bf16 %v7166_v13 }
  0x5a   : > { %v508_v53 = vmul.f32 %v454_v27, %v454_v27 }
  0x5b   : > { %6291 = vmatmul.mubr.msk.bf16.vlgmr.msra.gmra.mxu0 %vm671_vm1, %v7304_v57  ;;  %10336 = vst [vmem:[#allocation25_spill] sm:$0xff] %v7349_v19  ;;  %10337 = vst [vmem:[#allocation26_spill] sm:$0xff] %v7361_v51  ;;  %v1149_v52 = vshll.u32 %v7349_v19, 16  ;;  %v1153_v26 = vshrl.u32 %v7349_v19, 16  ;;  %v7375_v10 = vpack.c.bf16 %v507_v43, %v506_v30  ;;  %v458_v30 = vunpack.c.l.bf16 %v7175_v20 }
  0x5c   : > { %6329 = vmatmul.mubr.msk.bf16.gmra.mxu1 %vm671_vm1, %v7270_v59  ;;  %6294 = vmatprep.mubr.msk.bf16.mxu0 %vm671_vm1, %v7309_v0  ;;  %v7383_v21 = vpack.c.bf16 %v509_v55, %v508_v53  ;;  %v459_v43 = vunpack.c.h.bf16 %v7175_v20  ;;  %v1161_v55 = vshrl.u32 %v7361_v51, 16 }
  0x5d   : > { %6332 = vmatprep.mubr.msk.bf16.mxu1 %vm671_vm1, %v7281_v22  ;;  %6357 = vmatpush3.bf16.msra.mxu0 %v1727_v16  ;;  %v1135_v16 = vrot.slane %v1133_v47, 1  ;;  %v1143_v47 = vrot.slane %v1141_v1, 1  ;;  %v1151_v1 = vrot.slane %v1149_v52, 1  ;;  %10340 = vst [vmem:[#allocation29_spill] sm:$0xff] %v7375_v10  ;;  %v1165_v35 = vshll.u32 %v7375_v10, 16 }
  0x5e   : > { %6838 = vmatprep.subr.msk.bf16.mxu0 %vm720_vm0, %v7323_v25  ;;  %10341 = vst [vmem:[#allocation30_spill] sm:$0xff] %v7383_v21  ;;  %v512_v53 = vmul.f32 %v458_v30, %v458_v30  ;;  %v313_v30 = vld [vmem:[%s7208_s17 + $0x4] sm:$0xf] }
  0x5f   : > { %v1139_v40 = vor.u32 %v1137_v61, %v1135_v16  ;;  %v7365_v23 = vsel %vm538_vm2, %v1131_v37, %v1135_v16  ;;  %v1157_v61 = vshll.u32 %v7361_v51, 16  ;;  %v457_v16 = vunpack.c.h.bf16 %v7166_v13 }
  0x60   : > { %10338 = vst [vmem:[#allocation27_spill] sm:$0xff] %v7365_v23  ;;  %v1147_v12 = vor.u32 %v1145_v29, %v1143_v47  ;;  %v1155_v37 = vor.u32 %v1153_v26, %v1151_v1  ;;  %v1169_v26 = vshrl.u32 %v7375_v10, 16  ;;  %v7418_v56 = vcombine.low %v7223_v60, %v313_v30 }
  0x61   : > { %v7369_v49 = vsel %vm538_vm2, %v1139_v40, %v1143_v47  ;;  %v1159_v27 = vrot.slane %v1157_v61, 1  ;;  %v510_v40 = vmul.f32 %v456_v11, %v456_v11  ;;  %v511_v52 = vmul.f32 %v457_v16, %v457_v16 }
  0x62   : > { %10339 = vst [vmem:[#allocation28_spill] sm:$0xff] %v7369_v49  ;;  %v7391_v24 = vsel %vm538_vm2, %v1147_v12, %v1151_v1  ;;  %v1173_v47 = vshll.u32 %v7383_v21, 16  ;;  %v513_v61 = vmul.f32 %v459_v43, %v459_v43  ;;  %v1167_v11 = vrot.slane %v1165_v35, 1  ;;  %10346 = vst [vmem:[#allocation35_spill] sm:$0xff] %v7418_v56 }
  0x63   : > { %6295 = vmatmul.mubr.msk.bf16.gmra.mxu0 %vm671_vm1, %v7339_v39  ;;  %10342 = vst [vmem:[#allocation31_spill] sm:$0xff] %v7391_v24  ;;  %v7396_v29 = vsel %vm538_vm2, %v1155_v37, %v1159_v27  ;;  %v7401_v16 = vpack.c.bf16 %v511_v52, %v510_v40  ;;  %v460_v1 = vunpack.c.l.bf16 %v7192_v31  ;;  %v461_v12 = vunpack.c.h.bf16 %v7192_v31 }
  0x64   : > { %6333 = vmatmul.mubr.msk.bf16.gmra.mxu1 %vm671_vm1, %v7294_v7  ;;  %6298 = vmatprep.mubr.msk.bf16.mxu0 %vm671_vm1, %v7344_v63  ;;  %10343 = vst [vmem:[#allocation32_spill] sm:$0xff] %v7396_v29  ;;  %v1163_v37 = vor.u32 %v1161_v55, %v1159_v27  ;;  %v1175_v9 = vrot.slane %v1173_v47, 1  ;;  %v1171_v43 = vor.u32 %v1169_v26, %v1167_v11  ;;  %v462_v40 = vunpack.c.l.bf16 %v7203_v45 }
  0x65   : > { %6336 = vmatprep.mubr.msk.bf16.mxu1 %vm671_vm1, %v7316_v18  ;;  %10344 = vst [vmem:[#allocation33_spill] sm:$0xff] %v7401_v16  ;;  %v7412_v35 = vpack.c.bf16 %v513_v61, %v512_v53  ;;  %v463_v52 = vunpack.c.h.bf16 %v7203_v45  ;;  %v1181_v4 = vshll.u32 %v7401_v16, 16  ;;  %v514_v58 = vmul.f32 %v460_v1, %v460_v1 }
  0x66   : > { %v7421_v27 = vsel %vm538_vm2, %v1163_v37, %v1167_v11  ;;  %v1177_v55 = vshrl.u32 %v7383_v21, 16  ;;  %v1185_v47 = vshrl.u32 %v7401_v16, 16  ;;  %v7426_v26 = vsel %vm538_vm2, %v1171_v43, %v1175_v9 }
  0x67   : > { %10345 = vst [vmem:[#allocation34_spill] sm:$0xff] %v7412_v35  ;;  %10347 = vst [vmem:[#allocation36_spill] sm:$0xff] %v7421_v27  ;;  %v1189_v53 = vshll.u32 %v7412_v35, 16  ;;  %v516_v61 = vmul.f32 %v462_v40, %v462_v40  ;;  %v1183_v1 = vrot.slane %v1181_v4, 1 }
  0x68   : > { %10348 = vst [vmem:[#allocation37_spill] sm:$0xff] %v7426_v26  ;;  %v1179_v11 = vor.u32 %v1177_v55, %v1175_v9 }
  0x69   : > { %v1187_v37 = vor.u32 %v1185_v47, %v1183_v1  ;;  %v1191_v30 = vrot.slane %v1189_v53, 1 }
  0x6b   : > { %6299 = vmatmul.mubr.msk.bf16.gmra.mxu0 %vm671_vm1, %v7365_v23  ;;  %v7450_v9 = vsel %vm538_vm2, %v1187_v37, %v1191_v30 }
  0x6c   : > { %6337 = vmatmul.mubr.msk.bf16.gmra.mxu1 %vm671_vm1, %v7331_v34  ;;  %6302 = vmatprep.mubr.msk.bf16.mxu0 %vm671_vm1, %v7369_v49  ;;  %10352 = vst [vmem:[#allocation41_spill] sm:$0xff] %v7450_v9 }
  0x6d   : > { %6340 = vmatprep.mubr.msk.bf16.mxu1 %vm671_vm1, %v7349_v19 }
  0x73   : > { %6303 = vmatmul.mubr.msk.bf16.gmra.mxu0 %vm671_vm1, %v7391_v24  ;;  %v515_v24 = vmul.f32 %v461_v12, %v461_v12  ;;  %v464_v12 = vunpack.c.l.bf16 %v7418_v56 }
  0x74   : > { %6341 = vmatmul.mubr.msk.bf16.gmra.mxu1 %vm671_vm1, %v7361_v51  ;;  %6306 = vmatprep.mubr.msk.bf16.mxu0 %vm671_vm1, %v7396_v29  ;;  %v517_v29 = vmul.f32 %v463_v52, %v463_v52 }
  0x75   : > { %6344 = vmatprep.mubr.msk.bf16.mxu1 %vm671_vm1, %v7375_v10  ;;  %v7431_v60 = vpack.c.bf16 %v515_v24, %v514_v58  ;;  %v7444_v58 = vsel %vm538_vm2, %v1179_v11, %v1183_v1  ;;  %v1193_v24 = vshrl.u32 %v7412_v35, 16  ;;  %v7447_v40 = vmul.f32 %v464_v12, %v464_v12 }
  0x76   : > { %v7440_v43 = vpack.c.bf16 %v517_v29, %v516_v61  ;;  %10351 = vst [vmem:[#allocation40_spill] sm:$0xff] %v7444_v58  ;;  %v1941_v11 = vrot.slane %v7211_v48, 1  ;;  %v1942_v12 = vrot.slane %v7237_v5, 1 }
  0x77   : > { %10349 = vst [vmem:[#allocation38_spill] sm:$0xff] %v7431_v60  ;;  %v1197_v4 = vshll.u32 %v7431_v60, 16  ;;  %v1201_v52 = vshrl.u32 %v7431_v60, 16  ;;  %v1195_v47 = vor.u32 %v1193_v24, %v1191_v30  ;;  %v7462_v53 = vpack.c.bf16 %v7447_v40, %v7447_v40 }
  0x78   : > { %10350 = vst [vmem:[#allocation39_spill] sm:$0xff] %v7440_v43  ;;  %v1205_v55 = vshll.u32 %v7440_v43, 16 }
  0x79   : > { %v1199_v29 = vrot.slane %v1197_v4, 1  ;;  %v1209_v4 = vshrl.u32 %v7440_v43, 16  ;;  %v1213_v30 = vshll.u32 %v7462_v53, 16 }
  0x7a   : > { %v1207_v1 = vrot.slane %v1205_v55, 1  ;;  %v1944_v55 = vrot.slane %v7258_v41, 1 }
  0x7b   : > { %6307 = vmatmul.mubr.msk.bf16.gmra.mxu0 %vm671_vm1, %v7421_v27  ;;  %v1203_v61 = vor.u32 %v1201_v52, %v1199_v29  ;;  %v7469_v37 = vsel %vm538_vm2, %v1195_v47, %v1199_v29  ;;  %v1215_v52 = vrot.slane %v1213_v30, 1  ;;  %v1645_v29 = vrot.slane %v7032_v6, 1  ;;  %v7505_v6 = vld [vmem:[%s10179_s4 + $0x8] sm:$0x3] }
  0x7c   : > { %6345 = vmatmul.mubr.msk.bf16.gmra.mxu1 %vm671_vm1, %v7383_v21  ;;  %6310 = vmatprep.mubr.msk.bf16.mxu0 %vm671_vm1, %v7426_v26  ;;  %10353 = vst [vmem:[#allocation42_spill] sm:$0xff] %v7469_v37  ;;  %v7483_v48 = vor.u32 %v1209_v4, %v1207_v1  ;;  %v1646_v47 = vrot.slane %v7040_v8, 1  ;;  %v2428_v4 = vsel %vm720_vm0, %v7289_v33, 0  ;;  %v1948_v33 = vrot.slane %v7281_v22, 1 }
  0x7d   : > { %6348 = vmatprep.mubr.msk.bf16.mxu1 %vm671_vm1, %v7401_v16  ;;  %v7474_v24 = vsel %vm538_vm2, %v1203_v61, %v1207_v1  ;;  %v1946_v61 = vrot.slane %v7270_v59, 1  ;;  %v1650_v30 = vrot.slane %v7055_v15, 1 }
  0x7e   : > { %10354 = vst [vmem:[#allocation43_spill] sm:$0xff] %v7474_v24  ;;  %v1647_v1 = vsel %vm1644_vm3, %v1645_v29, %v1646_v47 }
  0x7f   : > { %v7522_v29 = vsel %vm1644_vm3, %v1946_v61, %v1948_v33 }
  0x80   : > { %10357 = vst [vmem:[#allocation46_spill] sm:$0xff] %v7522_v29 }
  0x83   : > { %6311 = vmatmul.mubr.msk.bf16.gmra.mxu0 %vm671_vm1, %v7444_v58 }
  0x84   : > { %6349 = vmatmul.mubr.msk.bf16.gmra.mxu1 %vm671_vm1, %v7412_v35  ;;  %6314 = vmatprep.mubr.msk.bf16.mxu0 %vm671_vm1, %v7450_v9  ;;  %v1943_v9 = vsel %vm1644_vm3, %v1941_v11, %v1942_v12  ;;  %v1216_v11 = vsel %vm538_vm2, %v7483_v48, %v1215_v52  ;;  %v1950_v52 = vrot.slane %v7294_v7, 1 }
  0x85   : > { %6352 = vmatprep.mubr.msk.bf16.mxu1 %vm671_vm1, %v7431_v60 }
  0x8b   : > { %6315 = vmatmul.mubr.msk.bf16.gmra.mxu0 %vm671_vm1, %v7469_v37  ;;  %v7493_v37 = vsel %vm1644_vm3, %v1942_v12, %v1944_v55  ;;  %v1648_v12 = vrot.slane %v7052_v14, 1 }
  0x8c   : > { %6353 = vmatmul.mubr.msk.bf16.gmra.mxu1 %vm671_vm1, %v7440_v43  ;;  %6318 = vmatprep.mubr.msk.bf16.mxu0 %vm671_vm1, %v7474_v24 }
  0x8d   : > { %6392 = vmatprep.mubr.msk.bf16.mxu1 %vm671_vm1, %v1943_v9  ;;  %v7499_v9 = vsel %vm1644_vm3, %v1944_v55, %v1946_v61  ;;  %v7519_v55 = vsel %vm1644_vm3, %v1646_v47, %v1648_v12  ;;  %v7537_v47 = vld [vmem:[%s10178_s3 + $0x8] sm:$0x3]  ;;  %v1652_v61 = vrot.slane %v7058_v17, 1 }
  0x8e   : > { %10355 = vst [vmem:[#allocation44_spill] sm:$0xff] %v7499_v9  ;;  %10356 = vst [vmem:[#allocation45_spill] sm:$0xff] %v7519_v55 }
  0x93   : > { %6319 = vmatmul.mubr.msk.bf16.gmra.mxu0 %vm671_vm1, %v1216_v11  ;;  %v7525_v11 = vsel %vm1644_vm3, %v1648_v12, %v1650_v30  ;;  %v1654_v12 = vrot.slane %v7070_v28, 1 }
  0x94   : > { %6393 = vmatmul.mubr.msk.bf16.vlgmr.msra.gmra.mxu1 %vm671_vm1, %v7493_v37  ;;  %6358 = vmatprep.mubr.msk.bf16.mxu0 %vm671_vm1, %v1647_v1  ;;  %10358 = vst [vmem:[#allocation47_spill] sm:$0xff] %v7525_v11  ;;  %v7528_v1 = vsel %vm1644_vm3, %v1948_v33, %v1950_v52  ;;  %v1954_v33 = vrot.slane %v7331_v34, 1 }
  0x95   : > { %6459 = vmatpush3.bf16.msra.mxu1 %v2428_v4  ;;  %6396 = vmatprep.mubr.msk.bf16.mxu1 %vm671_vm1, %v7499_v9  ;;  %10359 = vst [vmem:[#allocation48_spill] sm:$0xff] %v7528_v1  ;;  %v2225_v4 = vsel %vm720_vm0, %v7323_v25, 0  ;;  %v1952_v25 = vrot.slane %v7316_v18, 1 }
  0x96   : > { %6841 = vmatprep.subr.msk.bf16.mxu1 %vm720_vm0, %v7505_v6 }
  0x9b   : > { %6359 = vmatmul.mubr.msk.bf16.vlgmr.msra.gmra.mxu0 %vm671_vm1, %v7519_v55  ;;  %v7558_v55 = vsel %vm1644_vm3, %v1652_v61, %v1654_v12 }
  0x9c   : > { %6397 = vmatmul.mubr.msk.bf16.gmra.mxu1 %vm671_vm1, %v7522_v29  ;;  %6362 = vmatprep.mubr.msk.bf16.mxu0 %vm671_vm1, %v7525_v11  ;;  %v7552_v29 = vsel %vm1644_vm3, %v1650_v30, %v1652_v61  ;;  %v7555_v11 = vsel %vm1644_vm3, %v1950_v52, %v1952_v25  ;;  %10362 = vst [vmem:[#allocation51_spill] sm:$0xff] %v7558_v55  ;;  %v1656_v30 = vrot.slane %v7083_v36, 1  ;;  %v1956_v52 = vrot.slane %v7349_v19, 1 }
  0x9d   : > { %6400 = vmatprep.mubr.msk.bf16.mxu1 %vm671_vm1, %v7528_v1  ;;  %6425 = vmatpush3.bf16.msra.mxu0 %v2225_v4  ;;  %10360 = vst [vmem:[#allocation49_spill] sm:$0xff] %v7552_v29  ;;  %10361 = vst [vmem:[#allocation50_spill] sm:$0xff] %v7555_v11  ;;  %v7561_v1 = vsel %vm1644_vm3, %v1952_v25, %v1954_v33  ;;  %v1658_v4 = vrot.slane %v7100_v42, 1  ;;  %v1958_v61 = vrot.slane %v7361_v51, 1 }
  0x9e   : > { %6840 = vmatprep.subr.msk.bf16.mxu0 %vm720_vm0, %v7537_v47  ;;  %10363 = vst [vmem:[#allocation52_spill] sm:$0xff] %v7561_v1  ;;  %v7576_v25 = vsel %vm1644_vm3, %v1654_v12, %v1656_v30  ;;  %v1660_v12 = vrot.slane %v7117_v50, 1 }
  0x9f   : > { %10364 = vst [vmem:[#allocation53_spill] sm:$0xff] %v7576_v25 }
  0xa3   : > { %6363 = vmatmul.mubr.msk.bf16.gmra.mxu0 %vm671_vm1, %v7552_v29  ;;  %v7579_v29 = vsel %vm1644_vm3, %v1954_v33, %v1956_v52  ;;  %v1960_v33 = vrot.slane %v7375_v10, 1 }
  0xa4   : > { %6401 = vmatmul.mubr.msk.bf16.gmra.mxu1 %vm671_vm1, %v7555_v11  ;;  %6366 = vmatprep.mubr.msk.bf16.mxu0 %vm671_vm1, %v7558_v55  ;;  %10365 = vst [vmem:[#allocation54_spill] sm:$0xff] %v7579_v29  ;;  %v7582_v11 = vsel %vm1644_vm3, %v1656_v30, %v1658_v4  ;;  %v7585_v55 = vsel %vm1644_vm3, %v1956_v52, %v1958_v61  ;;  %v1662_v30 = vrot.slane %v7126_v54, 1  ;;  %v1962_v52 = vrot.slane %v7383_v21, 1 }
  0xa5   : > { %6404 = vmatprep.mubr.msk.bf16.mxu1 %vm671_vm1, %v7561_v1  ;;  %10366 = vst [vmem:[#allocation55_spill] sm:$0xff] %v7582_v11  ;;  %10367 = vst [vmem:[#allocation56_spill] sm:$0xff] %v7585_v55  ;;  %v7600_v1 = vsel %vm1644_vm3, %v1658_v4, %v1660_v12  ;;  %v1664_v4 = vrot.slane %v7141_v62, 1 }
  0xa6   : > { %10368 = vst [vmem:[#allocation57_spill] sm:$0xff] %v7600_v1 }
  0xab   : > { %6367 = vmatmul.mubr.msk.bf16.gmra.mxu0 %vm671_vm1, %v7576_v25  ;;  %v7603_v25 = vsel %vm1644_vm3, %v1958_v61, %v1960_v33  ;;  %v1964_v61 = vrot.slane %v7401_v16, 1 }
  0xac   : > { %6405 = vmatmul.mubr.msk.bf16.gmra.mxu1 %vm671_vm1, %v7579_v29  ;;  %6370 = vmatprep.mubr.msk.bf16.mxu0 %vm671_vm1, %v7582_v11  ;;  %10369 = vst [vmem:[#allocation58_spill] sm:$0xff] %v7603_v25  ;;  %v7606_v29 = vsel %vm1644_vm3, %v1660_v12, %v1662_v30  ;;  %v7609_v11 = vsel %vm1644_vm3, %v1960_v33, %v1962_v52  ;;  %v1666_v12 = vrot.slane %v7150_v2, 1  ;;  %v1966_v33 = vrot.slane %v7412_v35, 1 }
  0xad   : > { %6408 = vmatprep.mubr.msk.bf16.mxu1 %vm671_vm1, %v7585_v55  ;;  %10370 = vst [vmem:[#allocation59_spill] sm:$0xff] %v7606_v29  ;;  %10371 = vst [vmem:[#allocation60_spill] sm:$0xff] %v7609_v11  ;;  %v7624_v55 = vsel %vm1644_vm3, %v1662_v30, %v1664_v4  ;;  %v1668_v30 = vrot.slane %v7166_v13, 1 }
  0xae   : > { %10372 = vst [vmem:[#allocation61_spill] sm:$0xff] %v7624_v55 }
  0xb3   : > { %6371 = vmatmul.mubr.msk.bf16.gmra.mxu0 %vm671_vm1, %v7600_v1  ;;  %v7627_v1 = vsel %vm1644_vm3, %v1962_v52, %v1964_v61  ;;  %v1968_v52 = vrot.slane %v7431_v60, 1 }
  0xb4   : > { %6409 = vmatmul.mubr.msk.bf16.gmra.mxu1 %vm671_vm1, %v7603_v25  ;;  %6374 = vmatprep.mubr.msk.bf16.mxu0 %vm671_vm1, %v7606_v29  ;;  %10373 = vst [vmem:[#allocation62_spill] sm:$0xff] %v7627_v1  ;;  %v7630_v25 = vsel %vm1644_vm3, %v1664_v4, %v1666_v12  ;;  %v7633_v29 = vsel %vm1644_vm3, %v1964_v61, %v1966_v33  ;;  %v1670_v4 = vrot.slane %v7175_v20, 1  ;;  %v7647_v61 = vrot.slane %v7440_v43, 1 }
  0xb5   : > { %6412 = vmatprep.mubr.msk.bf16.mxu1 %vm671_vm1, %v7609_v11  ;;  %10374 = vst [vmem:[#allocation63_spill] sm:$0xff] %v7630_v25  ;;  %10375 = vst [vmem:[#allocation64_spill] sm:$0xff] %v7633_v29 }
  0xb6   : > { %10376 = vst [vmem:[#allocation65_spill] sm:$0xff] %v7647_v61  ;;  %v7660_v11 = vsel %vm1644_vm3, %v1968_v52, %v7647_v61 }
  0xb7   : > { %10380 = vst [vmem:[#allocation69_spill] sm:$0xff] %v7660_v11 }
  0xbb   : > { %6375 = vmatmul.mubr.msk.bf16.gmra.mxu0 %vm671_vm1, %v7624_v55  ;;  %v7650_v55 = vsel %vm1644_vm3, %v1666_v12, %v1668_v30  ;;  %v1672_v12 = vrot.slane %v7192_v31, 1 }
  0xbc   : > { %6413 = vmatmul.mubr.msk.bf16.gmra.mxu1 %vm671_vm1, %v7627_v1  ;;  %6378 = vmatprep.mubr.msk.bf16.mxu0 %vm671_vm1, %v7630_v25  ;;  %10377 = vst [vmem:[#allocation66_spill] sm:$0xff] %v7650_v55  ;;  %v7653_v1 = vsel %vm1644_vm3, %v1966_v33, %v1968_v52  ;;  %v7656_v25 = vsel %vm1644_vm3, %v1668_v30, %v1670_v4  ;;  %v1972_v33 = vrot.slane %v7462_v53, 1  ;;  %v7673_v30 = vrot.slane %v7203_v45, 1 }
  0xbd   : > { %6416 = vmatprep.mubr.msk.bf16.mxu1 %vm671_vm1, %v7633_v29  ;;  %10378 = vst [vmem:[#allocation67_spill] sm:$0xff] %v7653_v1  ;;  %10379 = vst [vmem:[#allocation68_spill] sm:$0xff] %v7656_v25  ;;  %v7676_v52 = vsel %vm1644_vm3, %v1670_v4, %v1672_v12  ;;  %v1676_v53 = vrot.slane %v7235_v3, 1  ;;  %v2630_v29 = vshrl.u32 %v7418_v56, 16 }
  0xbe   : > { %10381 = vst [vmem:[#allocation70_spill] sm:$0xff] %v7673_v30  ;;  %10382 = vst [vmem:[#allocation71_spill] sm:$0xff] %v7676_v52 }
  0xbf   : > { %v1677_v4 = vsel %vm1644_vm3, %v7673_v30, %v1676_v53  ;;  %v2645_v53 = vsel %vm720_vm0, %v7537_v47, 0 }
  0xc3   : > { %6379 = vmatmul.mubr.msk.bf16.gmra.mxu0 %vm671_vm1, %v7650_v55  ;;  %v1973_v55 = vsel %vm1644_vm3, %v7647_v61, %v1972_v33 }
  0xc4   : > { %6417 = vmatmul.mubr.msk.bf16.gmra.mxu1 %vm671_vm1, %v7653_v1  ;;  %6382 = vmatprep.mubr.msk.bf16.mxu0 %vm671_vm1, %v7656_v25  ;;  %v7682_v1 = vsel %vm1644_vm3, %v1672_v12, %v7673_v30  ;;  %v2863_v12 = vsel %vm720_vm0, %v7505_v6, 0  ;;  %v10409_v25 = vld [vmem:[#allocation10_spill] sm:$0xff] }
  0xc5   : > { %6420 = vmatprep.mubr.msk.bf16.mxu1 %vm671_vm1, %v7660_v11  ;;  %10383 = vst [vmem:[#allocation72_spill] sm:$0xff] %v7682_v1 }
  0xcb   : > { %6383 = vmatmul.mubr.msk.bf16.gmra.mxu0 %vm671_vm1, %v7676_v52 }
  0xcc   : > { %6421 = vmatmul.mubr.msk.bf16.gmra.mxu1 %vm671_vm1, %v1973_v55  ;;  %6386 = vmatprep.mubr.msk.bf16.mxu0 %vm671_vm1, %v7682_v1  ;;  %v7700_v55 = vld [vmem:[%s10179_s4 + $0xa] sm:$0x3] }
  0xcd   : > { %6460 = vmatprep.mubr.msk.bf16.mxu1 %vm671_vm1, %v7237_v5 }
  0xd3   : > { %6387 = vmatmul.mubr.msk.bf16.gmra.mxu0 %vm671_vm1, %v1677_v4 }
  0xd4   : > { %v6258_v33 = vpop.f32.mrf.mxu1  ;;  %6461 = vmatmul.mubr.msk.bf16.vlgmr.msra.gmra.mxu1 %vm671_vm1, %v7258_v41  ;;  %6426 = vmatprep.mubr.msk.bf16.mxu0 %vm671_vm1, %v7040_v8  ;;  %v7717_v8 = vld [vmem:[%s10178_s3 + $0xa] sm:$0x3] }
  0xd5   : > { %6527 = vmatpush3.bf16.msra.mxu1 %v2863_v12  ;;  %6464 = vmatprep.mubr.msk.bf16.mxu1 %vm671_vm1, %v7270_v59 }
  0xd6   : > { %v954_v3 = vpop.f32.mrf.mxu1  ;;  %6843 = vmatprep.subr.msk.bf16.mxu1 %vm720_vm0, %v7700_v55 }
  0xd8   : > { %v6259_v5 = vpop.f32.mrf.mxu1 }
  0xda   : > { %v957_v6 = vpop.f32.mrf.mxu1 }
  0xdb   : > { %v6224_v4 = vpop.f32.mrf.mxu0  ;;  %6427 = vmatmul.mubr.msk.bf16.vlgmr.msra.gmra.mxu0 %vm671_vm1, %v7052_v14 }
  0xdc   : > { %v7719_v12 = vadd.f32 %v6258_v33, %v6224_v4  ;;  %v6262_v59 = vpop.f32.mrf.mxu1  ;;  %6465 = vmatmul.mubr.msk.bf16.gmra.mxu1 %vm671_vm1, %v7281_v22  ;;  %6430 = vmatprep.mubr.msk.bf16.mxu0 %vm671_vm1, %v7055_v15 }
  0xdd   : > { %v758_v41 = vpop.f32.mrf.mxu0  ;;  %6468 = vmatprep.mubr.msk.bf16.mxu1 %vm671_vm1, %v7294_v7  ;;  %6493 = vmatpush3.bf16.msra.mxu0 %v2645_v53 }
  0xde   : > { %v7727_v14 = vadd.f32 %v954_v3, %v758_v41  ;;  %v970_v47 = vpop.f32.mrf.mxu1  ;;  %6842 = vmatprep.subr.msk.bf16.mxu0 %vm720_vm0, %v7717_v8 }
  0xdf   : > { %v6225_v33 = vpop.f32.mrf.mxu0 }
  0xe0   : > { %v7731_v4 = vadd.f32 %v6259_v5, %v6225_v33  ;;  %v6263_v1 = vpop.f32.mrf.mxu1 }
  0xe1   : > { %v761_v30 = vpop.f32.mrf.mxu0 }
  0xe2   : > { %v7733_v22 = vadd.f32 %v957_v6, %v761_v30  ;;  %v973_v52 = vpop.f32.mrf.mxu1 }
  0xe3   : > { %v6228_v15 = vpop.f32.mrf.mxu0  ;;  %6431 = vmatmul.mubr.msk.bf16.gmra.mxu0 %vm671_vm1, %v7058_v17 }
  0xe4   : > { %v7737_v7 = vadd.f32 %v6262_v59, %v6228_v15  ;;  %v6266_v41 = vpop.f32.mrf.mxu1  ;;  %6469 = vmatmul.mubr.msk.bf16.gmra.mxu1 %vm671_vm1, %v7316_v18  ;;  %6434 = vmatprep.mubr.msk.bf16.mxu0 %vm671_vm1, %v7070_v28 }
  0xe5   : > { %v774_v3 = vpop.f32.mrf.mxu0  ;;  %6472 = vmatprep.mubr.msk.bf16.mxu1 %vm671_vm1, %v7331_v34 }
  0xe6   : > { %v7745_v30 = vadd.f32 %v970_v47, %v774_v3  ;;  %v986_v5 = vpop.f32.mrf.mxu1 }
  0xe7   : > { %v6229_v6 = vpop.f32.mrf.mxu0 }
  0xe8   : > { %v7747_v53 = vadd.f32 %v6263_v1, %v6229_v6  ;;  %v6267_v17 = vpop.f32.mrf.mxu1 }
  0xe9   : > { %v777_v59 = vpop.f32.mrf.mxu0 }
  0xea   : > { %v7749_v33 = vadd.f32 %v973_v52, %v777_v59  ;;  %v989_v15 = vpop.f32.mrf.mxu1 }
  0xeb   : > { %v6232_v11 = vpop.f32.mrf.mxu0  ;;  %6435 = vmatmul.mubr.msk.bf16.gmra.mxu0 %vm671_vm1, %v7083_v36 }
  0xec   : > { %v7753_v28 = vadd.f32 %v6266_v41, %v6232_v11  ;;  %v6270_v18 = vpop.f32.mrf.mxu1  ;;  %6473 = vmatmul.mubr.msk.bf16.gmra.mxu1 %vm671_vm1, %v7349_v19  ;;  %6438 = vmatprep.mubr.msk.bf16.mxu0 %vm671_vm1, %v7100_v42 }
  0xed   : > { %v790_v1 = vpop.f32.mrf.mxu0  ;;  %6476 = vmatprep.mubr.msk.bf16.mxu1 %vm671_vm1, %v7361_v51 }
  0xee   : > { %v7761_v52 = vadd.f32 %v986_v5, %v790_v1  ;;  %v1002_v47 = vpop.f32.mrf.mxu1 }
  0xef   : > { %v6233_v3 = vpop.f32.mrf.mxu0 }
  0xf0   : > { %v7763_v6 = vadd.f32 %v6267_v17, %v6233_v3  ;;  %v6271_v36 = vpop.f32.mrf.mxu1 }
  0xf1   : > { %v793_v11 = vpop.f32.mrf.mxu0 }
  0xf2   : > { %v7765_v41 = vadd.f32 %v989_v15, %v793_v11  ;;  %v1005_v59 = vpop.f32.mrf.mxu1 }
  0xf3   : > { %v6236_v34 = vpop.f32.mrf.mxu0  ;;  %6439 = vmatmul.mubr.msk.bf16.gmra.mxu0 %vm671_vm1, %v7117_v50 }
  0xf4   : > { %v7769_v42 = vadd.f32 %v6270_v18, %v6236_v34  ;;  %v6274_v19 = vpop.f32.mrf.mxu1  ;;  %6477 = vmatmul.mubr.msk.bf16.gmra.mxu1 %vm671_vm1, %v7375_v10  ;;  %6442 = vmatprep.mubr.msk.bf16.mxu0 %vm671_vm1, %v7126_v54 }
  0xf5   : > { %v806_v5 = vpop.f32.mrf.mxu0  ;;  %6480 = vmatprep.mubr.msk.bf16.mxu1 %vm671_vm1, %v7383_v21 }
  0xf6   : > { %v7777_v17 = vadd.f32 %v1002_v47, %v806_v5  ;;  %v1018_v15 = vpop.f32.mrf.mxu1 }
  0xf7   : > { %v6237_v1 = vpop.f32.mrf.mxu0 }
  0xf8   : > { %v7779_v3 = vadd.f32 %v6271_v36, %v6237_v1  ;;  %v6275_v50 = vpop.f32.mrf.mxu1 }
  0xf9   : > { %v809_v18 = vpop.f32.mrf.mxu0 }
  0xfa   : > { %v7781_v34 = vadd.f32 %v1005_v59, %v809_v18  ;;  %v1021_v11 = vpop.f32.mrf.mxu1 }
  0xfb   : > { %v6240_v51 = vpop.f32.mrf.mxu0  ;;  %6443 = vmatmul.mubr.msk.bf16.gmra.mxu0 %vm671_vm1, %v7141_v62 }
  0xfc   : > { %v7785_v54 = vadd.f32 %v6274_v19, %v6240_v51  ;;  %v6278_v10 = vpop.f32.mrf.mxu1  ;;  %6481 = vmatmul.mubr.msk.bf16.gmra.mxu1 %vm671_vm1, %v7401_v16  ;;  %6446 = vmatprep.mubr.msk.bf16.mxu0 %vm671_vm1, %v7150_v2  ;;  %v465_v19 = vunpack.c.h.bf16 %v7418_v56 }
  0xfd   : > { %v822_v47 = vpop.f32.mrf.mxu0  ;;  %6484 = vmatprep.mubr.msk.bf16.mxu1 %vm671_vm1, %v7412_v35 }
  0xfe   : > { %v7793_v36 = vadd.f32 %v1018_v15, %v822_v47  ;;  %v1034_v59 = vpop.f32.mrf.mxu1  ;;  %v2420_v15 = vmul.f32 %v465_v19, %v465_v19 }
  0xff   : > { %v6241_v5 = vpop.f32.mrf.mxu0 }
 0x100   : > { %10384 = vst [vmem:[#allocation73_spill] sm:$0xff] %v7793_v36  ;;  %v7795_v1 = vadd.f32 %v6275_v50, %v6241_v5  ;;  %v6279_v62 = vpop.f32.mrf.mxu1 }
 0x101   : > { %v825_v51 = vpop.f32.mrf.mxu0 }
 0x102   : > { %10385 = vst [vmem:[#allocation74_spill] sm:$0xff] %v7795_v1  ;;  %v7798_v18 = vadd.f32 %v1021_v11, %v825_v51  ;;  %v1037_v16 = vpop.f32.mrf.mxu1  ;;  %v2626_v1 = vshll.u32 %v7418_v56, 16 }
 0x103   : > { %v6244_v21 = vpop.f32.mrf.mxu0  ;;  %6447 = vmatmul.mubr.msk.bf16.gmra.mxu0 %vm671_vm1, %v7166_v13 }
 0x104   : > { %10386 = vst [vmem:[#allocation75_spill] sm:$0xff] %v7798_v18  ;;  %v7802_v2 = vadd.f32 %v6278_v10, %v6244_v21  ;;  %v6282_v35 = vpop.f32.mrf.mxu1  ;;  %6485 = vmatmul.mubr.msk.bf16.gmra.mxu1 %vm671_vm1, %v7431_v60  ;;  %6450 = vmatprep.mubr.msk.bf16.mxu0 %vm671_vm1, %v7175_v20  ;;  %v7815_v10 = vpack.c.bf16 %v2420_v15, %v7447_v40 }
 0x105   : > { %v838_v50 = vpop.f32.mrf.mxu0  ;;  %6488 = vmatprep.mubr.msk.bf16.mxu1 %vm671_vm1, %v7440_v43 }
 0x106   : > { %10387 = vst [vmem:[#allocation76_spill] sm:$0xff] %v7802_v2  ;;  %v7810_v11 = vadd.f32 %v1034_v59, %v838_v50  ;;  %v1050_v47 = vpop.f32.mrf.mxu1  ;;  %10390 = vst [vmem:[#allocation79_spill] sm:$0xff] %v7815_v10  ;;  %v2848_v18 = vshrl.u32 %v7815_v10, 16 }
 0x107   : > { %v6245_v5 = vpop.f32.mrf.mxu0 }
 0x108   : > { %10388 = vst [vmem:[#allocation77_spill] sm:$0xff] %v7810_v11  ;;  %v7812_v51 = vadd.f32 %v6279_v62, %v6245_v5  ;;  %v6283_v13 = vpop.f32.mrf.mxu1 }
 0x109   : > { %v841_v21 = vpop.f32.mrf.mxu0 }
 0x10a   : > { %10389 = vst [vmem:[#allocation78_spill] sm:$0xff] %v7812_v51  ;;  %v7817_v60 = vadd.f32 %v1037_v16, %v841_v21  ;;  %v1053_v2 = vpop.f32.mrf.mxu1 }
 0x10b   : > { %v6248_v20 = vpop.f32.mrf.mxu0  ;;  %6451 = vmatmul.mubr.msk.bf16.gmra.mxu0 %vm671_vm1, %v7192_v31 }
 0x10c   : > { %10391 = vst [vmem:[#allocation80_spill] sm:$0xff] %v7817_v60  ;;  %v7821_v19 = vadd.f32 %v6282_v35, %v6248_v20  ;;  %v6286_v59 = vpop.f32.mrf.mxu1  ;;  %6489 = vmatmul.mubr.msk.bf16.gmra.mxu1 %vm671_vm1, %v7815_v10  ;;  %6454 = vmatprep.mubr.msk.bf16.mxu0 %vm671_vm1, %v7203_v45  ;;  %v3283_v20 = vsel %vm720_vm0, %v7700_v55, 0  ;;  %v7842_v45 = vld [vmem:[%s10179_s4 + $0xc] sm:$0x3] }
 0x10d   : > { %v854_v62 = vpop.f32.mrf.mxu0  ;;  %6528 = vmatprep.mubr.msk.bf16.mxu1 %vm671_vm1, %v7304_v57 }
 0x10e   : > { %10392 = vst [vmem:[#allocation81_spill] sm:$0xff] %v7821_v19  ;;  %v7829_v16 = vadd.f32 %v1050_v47, %v854_v62  ;;  %v1066_v40 = vpop.f32.mrf.mxu1  ;;  %v10406_v19 = vld [vmem:[#allocation8_spill] sm:$0xff] }
 0x10f   : > { %v6249_v15 = vpop.f32.mrf.mxu0 }
 0x110   : > { %10393 = vst [vmem:[#allocation82_spill] sm:$0xff] %v7829_v16  ;;  %v7831_v50 = vadd.f32 %v6283_v13, %v6249_v15  ;;  %v6287_v31 = vpop.f32.mrf.mxu1 }
 0x111   : > { %v857_v35 = vpop.f32.mrf.mxu0 }
 0x112   : > { %10394 = vst [vmem:[#allocation83_spill] sm:$0xff] %v7831_v50  ;;  %v7833_v5 = vadd.f32 %v1053_v2, %v857_v35  ;;  %v1069_v21 = vpop.f32.mrf.mxu1 }
 0x113   : > { %v6252_v43 = vpop.f32.mrf.mxu0  ;;  %6455 = vmatmul.mubr.msk.bf16.gmra.mxu0 %vm671_vm1, %v7418_v56 }
 0x114   : > { %10395 = vst [vmem:[#allocation84_spill] sm:$0xff] %v7833_v5  ;;  %v7844_v57 = vadd.f32 %v6286_v59, %v6252_v43  ;;  %v6326_v47 = vpop.f32.mrf.mxu1  ;;  %6529 = vmatmul.mubr.msk.bf16.vlgmr.msra.gmra.mxu1 %vm671_vm1, %v7309_v0  ;;  %6494 = vmatprep.mubr.msk.bf16.mxu0 %vm671_vm1, %v7077_v32  ;;  %v3073_v32 = vsel %vm720_vm0, %v7717_v8, 0 }
 0x115   : > { %6595 = vmatpush3.bf16.msra.mxu1 %v3283_v20  ;;  %v870_v55 = vpop.f32.mrf.mxu0  ;;  %6532 = vmatprep.mubr.msk.bf16.mxu1 %vm671_vm1, %v7339_v39 }
 0x116   : > { %10396 = vst [vmem:[#allocation85_spill] sm:$0xff] %v7844_v57  ;;  %v7852_v2 = vadd.f32 %v1066_v40, %v870_v55  ;;  %v1498_v13 = vpop.f32.mrf.mxu1  ;;  %6845 = vmatprep.subr.msk.bf16.mxu1 %vm720_vm0, %v7842_v45  ;;  %v7867_v40 = vld [vmem:[%s10178_s3 + $0xc] sm:$0x3] }
 0x117   : > { %v6253_v43 = vpop.f32.mrf.mxu0 }
 0x118   : > { %10397 = vst [vmem:[#allocation86_spill] sm:$0xff] %v7852_v2  ;;  %v7856_v59 = vadd.f32 %v6287_v31, %v6253_v43  ;;  %v6327_v62 = vpop.f32.mrf.mxu1  ;;  %v10402_v2 = vld [vmem:[#allocation6_spill] sm:$0xff] }
 0x119   : > { %v873_v15 = vpop.f32.mrf.mxu0 }
 0x11a   : > { %10398 = vst [vmem:[#allocation87_spill] sm:$0xff] %v7856_v59  ;;  %v7858_v35 = vadd.f32 %v1069_v21, %v873_v15  ;;  %v1501_v0 = vpop.f32.mrf.mxu1 }
 0x11b   : > { %v6292_v20 = vpop.f32.mrf.mxu0  ;;  %6495 = vmatmul.mubr.msk.bf16.vlgmr.msra.gmra.mxu0 %vm671_vm1, %v7093_v38 }
 0x11c   : > { %10399 = vst [vmem:[#allocation88_spill] sm:$0xff] %v7858_v35  ;;  %v7869_v55 = vadd.f32 %v6326_v47, %v6292_v20  ;;  %v6330_v31 = vpop.f32.mrf.mxu1  ;;  %6533 = vmatmul.mubr.msk.bf16.gmra.mxu1 %vm671_vm1, %v7344_v63  ;;  %6498 = vmatprep.mubr.msk.bf16.mxu0 %vm671_vm1, %v7106_v44 }
 0x11d   : > { %v1302_v21 = vpop.f32.mrf.mxu0  ;;  %6536 = vmatprep.mubr.msk.bf16.mxu1 %vm671_vm1, %v7365_v23  ;;  %6561 = vmatpush3.bf16.msra.mxu0 %v3073_v32  ;;  %v10400_v32 = vld [vmem:[#allocation5_spill] sm:$0xff] }
 0x11e   : > { %v7877_v8 = vadd.f32 %v1498_v13, %v1302_v21  ;;  %v1514_v43 = vpop.f32.mrf.mxu1  ;;  %6844 = vmatprep.subr.msk.bf16.mxu0 %vm720_vm0, %v7867_v40  ;;  %v10401_v21 = vld [vmem:[#allocation31_spill] sm:$0xff] }
 0x11f   : > { %v6293_v47 = vpop.f32.mrf.mxu0 }
 0x120   : > { %v7881_v15 = vadd.f32 %v6327_v62, %v6293_v47  ;;  %v6331_v20 = vpop.f32.mrf.mxu1 }
 0x121   : > { %v1305_v38 = vpop.f32.mrf.mxu0 }
 0x122   : > { %v7883_v63 = vadd.f32 %v1501_v0, %v1305_v38  ;;  %v1517_v39 = vpop.f32.mrf.mxu1 }
 0x123   : > { %v6296_v44 = vpop.f32.mrf.mxu0  ;;  %6499 = vmatmul.mubr.msk.bf16.gmra.mxu0 %vm671_vm1, %v7110_v46 }
 0x124   : > { %v7887_v23 = vadd.f32 %v6330_v31, %v6296_v44  ;;  %v6334_v13 = vpop.f32.mrf.mxu1  ;;  %6537 = vmatmul.mubr.msk.bf16.gmra.mxu1 %vm671_vm1, %v7369_v49  ;;  %6502 = vmatprep.mubr.msk.bf16.mxu0 %vm671_vm1, %v10400_v32 }
 0x125   : > { %v1318_v62 = vpop.f32.mrf.mxu0  ;;  %6540 = vmatprep.mubr.msk.bf16.mxu1 %vm671_vm1, %v10401_v21 }
 0x126   : > { %v7895_v38 = vadd.f32 %v1514_v43, %v1318_v62  ;;  %v1530_v0 = vpop.f32.mrf.mxu1  ;;  %v10403_v43 = vld [vmem:[#allocation32_spill] sm:$0xff]  ;;  %v10404_v62 = vld [vmem:[#allocation7_spill] sm:$0xff] }
 0x127   : > { %v6297_v47 = vpop.f32.mrf.mxu0 }
 0x128   : > { %v7897_v46 = vadd.f32 %v6331_v20, %v6297_v47  ;;  %v6335_v44 = vpop.f32.mrf.mxu1  ;;  %v315_v47 = vld [vmem:[%s7208_s17 + $0xc] sm:$0xf] }
 0x129   : > { %v1321_v31 = vpop.f32.mrf.mxu0 }
 0x12a   : > { %v7899_v35 = vadd.f32 %v1517_v39, %v1321_v31  ;;  %v1533_v49 = vpop.f32.mrf.mxu1  ;;  %v314_v39 = vld [vmem:[%s7208_s17 + $0x8] sm:$0xf] }
 0x12b   : > { %v6300_v59 = vpop.f32.mrf.mxu0  ;;  %6503 = vmatmul.mubr.msk.bf16.gmra.mxu0 %vm671_vm1, %v10402_v2 }
 0x12c   : > { %v7903_v32 = vadd.f32 %v6334_v13, %v6300_v59  ;;  %v6338_v21 = vpop.f32.mrf.mxu1  ;;  %6541 = vmatmul.mubr.msk.bf16.gmra.mxu1 %vm671_vm1, %v10403_v43  ;;  %6506 = vmatprep.mubr.msk.bf16.mxu0 %vm671_vm1, %v10404_v62  ;;  %v7917_v13 = vcombine.low %v314_v39, %v315_v47 }
 0x12d   : > { %v1334_v20 = vpop.f32.mrf.mxu0  ;;  %6544 = vmatprep.mubr.msk.bf16.mxu1 %vm671_vm1, %v7421_v27 }
 0x12e   : > { %v7913_v31 = vadd.f32 %v1530_v0, %v1334_v20  ;;  %v1546_v57 = vpop.f32.mrf.mxu1  ;;  %10405 = vst [vmem:[#allocation89_spill] sm:$0xff] %v7917_v13  ;;  %v10407_v0 = vld [vmem:[#allocation9_spill] sm:$0xff] }
 0x12f   : > { %v6301_v5 = vpop.f32.mrf.mxu0 }
 0x130   : > { %v7915_v2 = vadd.f32 %v6335_v44, %v6301_v5  ;;  %v6339_v59 = vpop.f32.mrf.mxu1 }
 0x131   : > { %v1337_v50 = vpop.f32.mrf.mxu0 }
 0x132   : > { %v7919_v43 = vadd.f32 %v1533_v49, %v1337_v50  ;;  %v1549_v16 = vpop.f32.mrf.mxu1  ;;  %v466_v49 = vunpack.c.l.bf16 %v7917_v13 }
 0x133   : > { %v6304_v62 = vpop.f32.mrf.mxu0  ;;  %6507 = vmatmul.mubr.msk.bf16.gmra.mxu0 %vm671_vm1, %v10406_v19 }
 0x134   : > { %v7923_v27 = vadd.f32 %v6338_v21, %v6304_v62  ;;  %v6342_v60 = vpop.f32.mrf.mxu1  ;;  %6545 = vmatmul.mubr.msk.bf16.gmra.mxu1 %vm671_vm1, %v7426_v26  ;;  %6510 = vmatprep.mubr.msk.bf16.mxu0 %vm671_vm1, %v10407_v0  ;;  %v7936_v19 = vmul.f32 %v466_v49, %v466_v49  ;;  %v2844_v0 = vshll.u32 %v7815_v10, 16  ;;  %v2628_v10 = vrot.slane %v2626_v1, 1 }
 0x135   : > { %v1350_v5 = vpop.f32.mrf.mxu0  ;;  %6548 = vmatprep.mubr.msk.bf16.mxu1 %vm671_vm1, %v7444_v58 }
 0x136   : > { %v7932_v50 = vadd.f32 %v1546_v57, %v1350_v5  ;;  %v1562_v44 = vpop.f32.mrf.mxu1  ;;  %10408 = vst [vmem:[#allocation90_spill] sm:$0xff] %v7936_v19  ;;  %v10410_v5 = vld [vmem:[#allocation41_spill] sm:$0xff] }
 0x137   : > { %v6305_v20 = vpop.f32.mrf.mxu0 }
 0x138   : > { %v7934_v47 = vadd.f32 %v6339_v59, %v6305_v20  ;;  %v6343_v21 = vpop.f32.mrf.mxu1  ;;  %v10411_v59 = vld [vmem:[#allocation11_spill] sm:$0xff]  ;;  %v10412_v20 = vld [vmem:[#allocation42_spill] sm:$0xff] }
 0x139   : > { %v1353_v62 = vpop.f32.mrf.mxu0 }
 0x13a   : > { %v7938_v26 = vadd.f32 %v1549_v16, %v1353_v62  ;;  %v1565_v51 = vpop.f32.mrf.mxu1  ;;  %v7953_v16 = vpack.c.bf16 %v7936_v19, %v7936_v19  ;;  %v10417_v19 = vld [vmem:[#allocation13_spill] sm:$0xff] }
 0x13b   : > { %v6308_v11 = vpop.f32.mrf.mxu0  ;;  %6511 = vmatmul.mubr.msk.bf16.gmra.mxu0 %vm671_vm1, %v10409_v25 }
 0x13c   : > { %v7943_v58 = vadd.f32 %v6342_v60, %v6308_v11  ;;  %v6346_v57 = vpop.f32.mrf.mxu1  ;;  %6549 = vmatmul.mubr.msk.bf16.gmra.mxu1 %vm671_vm1, %v10410_v5  ;;  %6514 = vmatprep.mubr.msk.bf16.mxu0 %vm671_vm1, %v10411_v59  ;;  %10413 = vst [vmem:[#allocation91_spill] sm:$0xff] %v7953_v16  ;;  %v2846_v60 = vrot.slane %v2844_v0, 1  ;;  %v2852_v59 = vshll.u32 %v7953_v16, 16  ;;  %v10415_v0 = vld [vmem:[#allocation12_spill] sm:$0xff] }
 0x13d   : > { %v1366_v49 = vpop.f32.mrf.mxu0  ;;  %6552 = vmatprep.mubr.msk.bf16.mxu1 %vm671_vm1, %v10412_v20 }
 0x13e   : > { %v7955_v62 = vadd.f32 %v1562_v44, %v1366_v49  ;;  %v1578_v25 = vpop.f32.mrf.mxu1  ;;  %v7966_v44 = vsel %vm538_vm2, %v7483_v48, %v2846_v60  ;;  %v7978_v16 = vor.u32 %v2848_v18, %v2846_v60  ;;  %v2854_v48 = vrot.slane %v2852_v59, 1  ;;  %v10420_v60 = vld [vmem:[#allocation16_spill] sm:$0xff] }
 0x13f   : > { %v6309_v11 = vpop.f32.mrf.mxu0  ;;  %10414 = vst [vmem:[#allocation92_spill] sm:$0xff] %v7966_v44 }
 0x140   : > { %v7957_v13 = vadd.f32 %v6343_v21, %v6309_v11  ;;  %v6347_v61 = vpop.f32.mrf.mxu1  ;;  %10419 = vst [vmem:[#allocation95_spill] sm:$0xff] %v7978_v16  ;;  %v2855_v18 = vsel %vm538_vm2, %v7978_v16, %v2854_v48 }
 0x141   : > { %v1369_v5 = vpop.f32.mrf.mxu0 }
 0x142   : > { %v7962_v20 = vadd.f32 %v1565_v51, %v1369_v5  ;;  %v1581_v36 = vpop.f32.mrf.mxu1  ;;  %v7976_v51 = vcombine.low %v314_v39, %v314_v39 }
 0x143   : > { %v6312_v49 = vpop.f32.mrf.mxu0  ;;  %6515 = vmatmul.mubr.msk.bf16.gmra.mxu0 %vm671_vm1, %v10415_v0 }
 0x144   : > { %v7970_v21 = vadd.f32 %v6346_v57, %v6312_v49  ;;  %v6350_v11 = vpop.f32.mrf.mxu1  ;;  %6553 = vmatmul.mubr.msk.bf16.gmra.mxu1 %vm671_vm1, %v7474_v24  ;;  %6518 = vmatprep.mubr.msk.bf16.mxu0 %vm671_vm1, %v10417_v19  ;;  %10418 = vst [vmem:[#allocation94_spill] sm:$0xff] %v7976_v51  ;;  %v2634_v39 = vshll.u32 %v7976_v51, 16  ;;  %v8001_v51 = vor.u32 %v2630_v29, %v2628_v10 }
 0x145   : > { %v1382_v5 = vpop.f32.mrf.mxu0  ;;  %6556 = vmatprep.mubr.msk.bf16.mxu1 %vm671_vm1, %v7966_v44  ;;  %v7992_v44 = vsel %vm538_vm2, %v10420_v60, %v2628_v10 }
 0x146   : > { %10416 = vst [vmem:[#allocation93_spill] sm:$0xff] %v7970_v21  ;;  %v7982_v0 = vadd.f32 %v1578_v25, %v1382_v5  ;;  %v1594_v57 = vpop.f32.mrf.mxu1  ;;  %10421 = vst [vmem:[#allocation16_spill] sm:$0xff] %v7992_v44  ;;  %v10422_v5 = vld [vmem:[#allocation14_spill] sm:$0xff]  ;;  %v2636_v48 = vrot.slane %v2634_v39, 1  ;;  %v3688_v39 = vsel %vm720_vm0, %v7842_v45, 0 }
 0x147   : > { %v6313_v49 = vpop.f32.mrf.mxu0  ;;  %10423 = vst [vmem:[#allocation96_spill] sm:$0xff] %v8001_v51 }
 0x148   : > { %v7984_v21 = vadd.f32 %v6347_v61, %v6313_v49  ;;  %v6351_v24 = vpop.f32.mrf.mxu1 }
 0x149   : > { %v1385_v19 = vpop.f32.mrf.mxu0 }
 0x14a   : > { %v7994_v1 = vadd.f32 %v1581_v36, %v1385_v19  ;;  %v1597_v25 = vpop.f32.mrf.mxu1 }
 0x14b   : > { %v6316_v59 = vpop.f32.mrf.mxu0  ;;  %6519 = vmatmul.mubr.msk.bf16.gmra.mxu0 %vm671_vm1, %v10422_v5 }
 0x14c   : > { %v7998_v61 = vadd.f32 %v6350_v11, %v6316_v59  ;;  %v6354_v49 = vpop.f32.mrf.mxu1  ;;  %6557 = vmatmul.mubr.msk.bf16.gmra.mxu1 %vm671_vm1, %v2855_v18  ;;  %6522 = vmatprep.mubr.msk.bf16.mxu0 %vm671_vm1, %v7992_v44  ;;  %v2637_v18 = vsel %vm538_vm2, %v8001_v51, %v2636_v48  ;;  %v10425_v48 = vld [vmem:[#allocation46_spill] sm:$0xff] }
 0x14d   : > { %v1398_v60 = vpop.f32.mrf.mxu0  ;;  %6596 = vmatprep.mubr.msk.bf16.mxu1 %vm671_vm1, %v7493_v37  ;;  %v8021_v37 = vld [vmem:[%s10179_s4 + $0xe] sm:$0x3] }
 0x14e   : > { %v8007_v36 = vadd.f32 %v1594_v57, %v1398_v60  ;;  %v1610_v19 = vpop.f32.mrf.mxu1  ;;  %v10424_v57 = vld [vmem:[#allocation45_spill] sm:$0xff] }
 0x14f   : > { %v6317_v16 = vpop.f32.mrf.mxu0 }
 0x150   : > { %v8009_v5 = vadd.f32 %v6351_v24, %v6317_v16  ;;  %v6355_v11 = vpop.f32.mrf.mxu1 }
 0x151   : > { %v1401_v29 = vpop.f32.mrf.mxu0 }
 0x152   : > { %v8013_v10 = vadd.f32 %v1597_v25, %v1401_v29  ;;  %v1613_v59 = vpop.f32.mrf.mxu1 }
 0x153   : > { %v6320_v44 = vpop.f32.mrf.mxu0  ;;  %6523 = vmatmul.mubr.msk.bf16.gmra.mxu0 %vm671_vm1, %v2637_v18 }
 0x154   : > { %v8023_v24 = vadd.f32 %v6354_v49, %v6320_v44  ;;  %v6394_v16 = vpop.f32.mrf.mxu1  ;;  %6597 = vmatmul.mubr.msk.bf16.vlgmr.msra.gmra.mxu1 %vm671_vm1, %v7499_v9  ;;  %6562 = vmatprep.mubr.msk.bf16.mxu0 %vm671_vm1, %v10424_v57 }
 0x155   : > { %v8030_v25 = vadd.f32 %v6394_v16, %v7869_v55  ;;  %6663 = vmatpush3.bf16.msra.mxu1 %v3688_v39  ;;  %v1414_v45 = vpop.f32.mrf.mxu0  ;;  %6600 = vmatprep.mubr.msk.bf16.mxu1 %vm671_vm1, %v10425_v48 }
 0x156   : > { %v8034_v60 = vadd.f32 %v1610_v19, %v1414_v45  ;;  %v2059_v18 = vpop.f32.mrf.mxu1  ;;  %6847 = vmatprep.subr.msk.bf16.mxu1 %vm720_vm0, %v8021_v37  ;;  %v3485_v19 = vsel %vm720_vm0, %v7867_v40, 0  ;;  %v10428_v40 = vld [vmem:[#allocation49_spill] sm:$0xff] }
 0x157   : > { %v8039_v44 = vadd.f32 %v2059_v18, %v7877_v8  ;;  %v6321_v49 = vpop.f32.mrf.mxu0  ;;  %v10426_v8 = vld [vmem:[#allocation47_spill] sm:$0xff]  ;;  %v10427_v18 = vld [vmem:[#allocation48_spill] sm:$0xff] }
 0x158   : > { %v8041_v29 = vadd.f32 %v6355_v11, %v6321_v49  ;;  %v6395_v57 = vpop.f32.mrf.mxu1  ;;  %v8058_v11 = vld [vmem:[%s10178_s3 + $0xe] sm:$0x3]  ;;  %v10429_v49 = vld [vmem:[#allocation50_spill] sm:$0xff] }
 0x159   : > { %v8044_v55 = vadd.f32 %v6395_v57, %v7881_v15  ;;  %v1417_v39 = vpop.f32.mrf.mxu0 }
 0x15a   : > { %v8046_v16 = vadd.f32 %v1613_v59, %v1417_v39  ;;  %v2062_v48 = vpop.f32.mrf.mxu1 }
 0x15b   : > { %v8051_v45 = vadd.f32 %v2062_v48, %v7883_v63  ;;  %v6360_v9 = vpop.f32.mrf.mxu0  ;;  %6563 = vmatmul.mubr.msk.bf16.vlgmr.msra.gmra.mxu0 %vm671_vm1, %v10426_v8  ;;  %v10430_v8 = vld [vmem:[#allocation51_spill] sm:$0xff] }
 0x15c   : > { %v8061_v15 = vadd.f32 %v6360_v9, %v7719_v12  ;;  %v6398_v59 = vpop.f32.mrf.mxu1  ;;  %6601 = vmatmul.mubr.msk.bf16.gmra.mxu1 %vm671_vm1, %v10427_v18  ;;  %6566 = vmatprep.mubr.msk.bf16.mxu0 %vm671_vm1, %v10428_v40 }
 0x15d   : > { %v8068_v63 = vadd.f32 %v6398_v59, %v7887_v23  ;;  %v1763_v48 = vpop.f32.mrf.mxu0  ;;  %6604 = vmatprep.mubr.msk.bf16.mxu1 %vm671_vm1, %v10429_v49  ;;  %6629 = vmatpush3.bf16.msra.mxu0 %v3485_v19 }
 0x15e   : > { %v8073_v57 = vadd.f32 %v1763_v48, %v7727_v14  ;;  %v2075_v9 = vpop.f32.mrf.mxu1  ;;  %6846 = vmatprep.subr.msk.bf16.mxu0 %vm720_vm0, %v8058_v11 }
 0x15f   : > { %v8078_v12 = vadd.f32 %v2075_v9, %v7895_v38  ;;  %v6361_v39 = vpop.f32.mrf.mxu0  ;;  %v10431_v9 = vld [vmem:[#allocation52_spill] sm:$0xff] }
 0x160   : > { %v8081_v40 = vadd.f32 %v6361_v39, %v7731_v4  ;;  %v6399_v23 = vpop.f32.mrf.mxu1 }
 0x161   : > { %v8084_v59 = vadd.f32 %v6399_v23, %v7897_v46  ;;  %v1766_v49 = vpop.f32.mrf.mxu0  ;;  %v10432_v46 = vld [vmem:[#allocation53_spill] sm:$0xff] }
 0x162   : > { %v8087_v19 = vadd.f32 %v1766_v49, %v7733_v22  ;;  %v2078_v14 = vpop.f32.mrf.mxu1 }
 0x163   : > { %v8090_v48 = vadd.f32 %v2078_v14, %v7899_v35  ;;  %v6364_v18 = vpop.f32.mrf.mxu0  ;;  %6567 = vmatmul.mubr.msk.bf16.gmra.mxu0 %vm671_vm1, %v10430_v8  ;;  %v10433_v35 = vld [vmem:[#allocation54_spill] sm:$0xff]  ;;  %v10434_v8 = vld [vmem:[#allocation55_spill] sm:$0xff] }
 0x164   : > { %v8095_v38 = vadd.f32 %v6364_v18, %v7737_v7  ;;  %v6402_v4 = vpop.f32.mrf.mxu1  ;;  %6605 = vmatmul.mubr.msk.bf16.gmra.mxu1 %vm671_vm1, %v10431_v9  ;;  %6570 = vmatprep.mubr.msk.bf16.mxu0 %vm671_vm1, %v10432_v46 }
 0x165   : > { %v8102_v22 = vadd.f32 %v6402_v4, %v7903_v32  ;;  %v1779_v49 = vpop.f32.mrf.mxu0  ;;  %6608 = vmatprep.mubr.msk.bf16.mxu1 %vm671_vm1, %v10433_v35 }
 0x166   : > { %v8107_v39 = vadd.f32 %v1779_v49, %v7745_v30  ;;  %v2091_v23 = vpop.f32.mrf.mxu1 }
 0x167   : > { %v8110_v7 = vadd.f32 %v2091_v23, %v7913_v31  ;;  %v6365_v18 = vpop.f32.mrf.mxu0  ;;  %v10435_v23 = vld [vmem:[#allocation56_spill] sm:$0xff] }
 0x168   : > { %v8113_v14 = vadd.f32 %v6365_v18, %v7747_v53  ;;  %v6403_v9 = vpop.f32.mrf.mxu1 }
 0x169   : > { %v8116_v46 = vadd.f32 %v6403_v9, %v7915_v2  ;;  %v1782_v32 = vpop.f32.mrf.mxu0  ;;  %v10436_v2 = vld [vmem:[#allocation57_spill] sm:$0xff] }
 0x16a   : > { %v8119_v4 = vadd.f32 %v1782_v32, %v7749_v33  ;;  %v2094_v35 = vpop.f32.mrf.mxu1 }
 0x16b   : > { %v8122_v30 = vadd.f32 %v2094_v35, %v7919_v43  ;;  %v6368_v49 = vpop.f32.mrf.mxu0  ;;  %6571 = vmatmul.mubr.msk.bf16.gmra.mxu0 %vm671_vm1, %v10434_v8  ;;  %v10437_v43 = vld [vmem:[#allocation58_spill] sm:$0xff]  ;;  %v10438_v8 = vld [vmem:[#allocation59_spill] sm:$0xff] }
 0x16c   : > { %v8127_v31 = vadd.f32 %v6368_v49, %v7753_v28  ;;  %v6406_v53 = vpop.f32.mrf.mxu1  ;;  %6609 = vmatmul.mubr.msk.bf16.gmra.mxu1 %vm671_vm1, %v10435_v23  ;;  %6574 = vmatprep.mubr.msk.bf16.mxu0 %vm671_vm1, %v10436_v2 }
 0x16d   : > { %v8134_v33 = vadd.f32 %v6406_v53, %v7923_v27  ;;  %v1795_v9 = vpop.f32.mrf.mxu0  ;;  %6612 = vmatprep.mubr.msk.bf16.mxu1 %vm671_vm1, %v10437_v43 }
 0x16e   : > { %v8139_v35 = vadd.f32 %v1795_v9, %v7761_v52  ;;  %v2107_v18 = vpop.f32.mrf.mxu1 }
 0x16f   : > { %v8142_v28 = vadd.f32 %v2107_v18, %v7932_v50  ;;  %v6369_v32 = vpop.f32.mrf.mxu0  ;;  %v10439_v18 = vld [vmem:[#allocation60_spill] sm:$0xff] }
 0x170   : > { %v8145_v49 = vadd.f32 %v6369_v32, %v7763_v6  ;;  %v6407_v23 = vpop.f32.mrf.mxu1 }
 0x171   : > { %v8148_v2 = vadd.f32 %v6407_v23, %v7934_v47  ;;  %v1798_v27 = vpop.f32.mrf.mxu0  ;;  %v10440_v47 = vld [vmem:[#allocation61_spill] sm:$0xff] }
 0x172   : > { %v8151_v53 = vadd.f32 %v1798_v27, %v7765_v41  ;;  %v2110_v43 = vpop.f32.mrf.mxu1 }
 0x173   : > { %v8154_v52 = vadd.f32 %v2110_v43, %v7938_v26  ;;  %v6372_v9 = vpop.f32.mrf.mxu0  ;;  %6575 = vmatmul.mubr.msk.bf16.gmra.mxu0 %vm671_vm1, %v10438_v8  ;;  %v10441_v26 = vld [vmem:[#allocation62_spill] sm:$0xff]  ;;  %v10443_v8 = vld [vmem:[#allocation63_spill] sm:$0xff] }
 0x174   : > { %v8159_v50 = vadd.f32 %v6372_v9, %v7769_v42  ;;  %v6410_v6 = vpop.f32.mrf.mxu1  ;;  %6613 = vmatmul.mubr.msk.bf16.gmra.mxu1 %vm671_vm1, %v10439_v18  ;;  %6578 = vmatprep.mubr.msk.bf16.mxu0 %vm671_vm1, %v10440_v47 }
 0x175   : > { %v8166_v41 = vadd.f32 %v6410_v6, %v7943_v58  ;;  %v1811_v23 = vpop.f32.mrf.mxu0  ;;  %6616 = vmatprep.mubr.msk.bf16.mxu1 %vm671_vm1, %v10441_v26 }
 0x176   : > { %v8171_v43 = vadd.f32 %v1811_v23, %v7777_v17  ;;  %v2123_v32 = vpop.f32.mrf.mxu1 }
 0x177   : > { %v8174_v42 = vadd.f32 %v2123_v32, %v7955_v62  ;;  %v6373_v27 = vpop.f32.mrf.mxu0  ;;  %v10445_v32 = vld [vmem:[#allocation64_spill] sm:$0xff] }
 0x178   : > { %v8177_v9 = vadd.f32 %v6373_v27, %v7779_v3  ;;  %v6411_v18 = vpop.f32.mrf.mxu1 }
 0x179   : > { %v8180_v47 = vadd.f32 %v6411_v18, %v7957_v13  ;;  %v1814_v58 = vpop.f32.mrf.mxu0  ;;  %v10446_v13 = vld [vmem:[#allocation66_spill] sm:$0xff] }
 0x17a   : > { %v8183_v6 = vadd.f32 %v1814_v58, %v7781_v34  ;;  %v2126_v26 = vpop.f32.mrf.mxu1  ;;  %v10447_v34 = vld [vmem:[#allocation93_spill] sm:$0xff] }
 0x17b   : > { %v8186_v17 = vadd.f32 %v2126_v26, %v7962_v20  ;;  %v6376_v23 = vpop.f32.mrf.mxu0  ;;  %6579 = vmatmul.mubr.msk.bf16.gmra.mxu0 %vm671_vm1, %v10443_v8  ;;  %v10449_v20 = vld [vmem:[#allocation67_spill] sm:$0xff]  ;;  %v10450_v26 = vld [vmem:[#allocation73_spill] sm:$0xff] }
 0x17c   : > { %v8191_v62 = vadd.f32 %v6376_v23, %v7785_v54  ;;  %v6414_v3 = vpop.f32.mrf.mxu1  ;;  %6617 = vmatmul.mubr.msk.bf16.gmra.mxu1 %vm671_vm1, %v10445_v32  ;;  %6582 = vmatprep.mubr.msk.bf16.mxu0 %vm671_vm1, %v10446_v13  ;;  %v10451_v54 = vld [vmem:[#allocation79_spill] sm:$0xff] }
 0x17d   : > { %10442 = vst [vmem:[#allocation45_spill] sm:$0xff] %v8186_v17  ;;  %v8198_v18 = vadd.f32 %v6414_v3, %v10447_v34  ;;  %v1827_v27 = vpop.f32.mrf.mxu0  ;;  %6620 = vmatprep.mubr.msk.bf16.mxu1 %vm671_vm1, %v10449_v20  ;;  %v8206_v23 = vrot.slane %v10451_v54, 1  ;;  %v10455_v20 = vld [vmem:[#allocation75_spill] sm:$0xff] }
 0x17e   : > { %10444 = vst [vmem:[#allocation97_spill] sm:$0xff] %v8191_v62  ;;  %v8203_v58 = vadd.f32 %v1827_v27, %v10450_v26  ;;  %v2139_v8 = vpop.f32.mrf.mxu1  ;;  %v10453_v62 = vld [vmem:[#allocation74_spill] sm:$0xff]  ;;  %v10456_v26 = vld [vmem:[#allocation65_spill] sm:$0xff] }
 0x17f   : > { %10448 = vst [vmem:[#allocation93_spill] sm:$0xff] %v8198_v18  ;;  %10452 = vst [vmem:[#allocation73_spill] sm:$0xff] %v8206_v23  ;;  %v8209_v51 = vadd.f32 %v2139_v8, %v7982_v0  ;;  %v6377_v32 = vpop.f32.mrf.mxu0  ;;  %v8223_v54 = vsel %vm1644_vm3, %v10456_v26, %v8206_v23 }
 0x180   : > { %v8212_v13 = vadd.f32 %v6377_v32, %v10453_v62  ;;  %v6415_v3 = vpop.f32.mrf.mxu1  ;;  %10457 = vst [vmem:[#allocation75_spill] sm:$0xff] %v8223_v54  ;;  %v10459_v62 = vld [vmem:[#allocation68_spill] sm:$0xff] }
 0x181   : > { %v8215_v34 = vadd.f32 %v6415_v3, %v7984_v21  ;;  %v1830_v18 = vpop.f32.mrf.mxu0  ;;  %v10460_v32 = vld [vmem:[#allocation76_spill] sm:$0xff] }
 0x182   : > { %v8218_v17 = vadd.f32 %v1830_v18, %v10455_v20  ;;  %v2142_v27 = vpop.f32.mrf.mxu1  ;;  %v10463_v18 = vld [vmem:[#allocation71_spill] sm:$0xff] }
 0x183   : > { %10454 = vst [vmem:[#allocation74_spill] sm:$0xff] %v8215_v34  ;;  %v8226_v0 = vadd.f32 %v2142_v27, %v7994_v1  ;;  %v6380_v8 = vpop.f32.mrf.mxu0  ;;  %6583 = vmatmul.mubr.msk.bf16.gmra.mxu0 %vm671_vm1, %v10459_v62  ;;  %v10462_v34 = vld [vmem:[#allocation69_spill] sm:$0xff]  ;;  %v10465_v1 = vld [vmem:[#allocation91_spill] sm:$0xff]  ;;  %v8244_v62 = vrot.slane %v7418_v56, 1  ;;  %v10470_v56 = vld [vmem:[#allocation70_spill] sm:$0xff] }
 0x184   : > { %v8231_v21 = vadd.f32 %v6380_v8, %v10460_v32  ;;  %v6418_v3 = vpop.f32.mrf.mxu1  ;;  %6621 = vmatmul.mubr.msk.bf16.gmra.mxu1 %vm671_vm1, %v10462_v34  ;;  %6586 = vmatprep.mubr.msk.bf16.mxu0 %vm671_vm1, %v10463_v18  ;;  %v3274_v27 = vrot.slane %v10465_v1, 1  ;;  %v10467_v8 = vld [vmem:[#allocation77_spill] sm:$0xff] }
 0x185   : > { %10458 = vst [vmem:[#allocation65_spill] sm:$0xff] %v8226_v0  ;;  %v8238_v20 = vadd.f32 %v6418_v3, %v7998_v61  ;;  %v1843_v26 = vpop.f32.mrf.mxu0  ;;  %6624 = vmatprep.mubr.msk.bf16.mxu1 %vm671_vm1, %v8223_v54  ;;  %10466 = vst [vmem:[#allocation91_spill] sm:$0xff] %v8244_v62  ;;  %v10468_v0 = vld [vmem:[#allocation78_spill] sm:$0xff] }
 0x186   : > { %10461 = vst [vmem:[#allocation76_spill] sm:$0xff] %v8231_v21  ;;  %v8247_v32 = vadd.f32 %v1843_v26, %v10467_v8  ;;  %v2155_v21 = vpop.f32.mrf.mxu1  ;;  %v3275_v1 = vsel %vm1644_vm3, %v8206_v23, %v3274_v27  ;;  %v8263_v26 = vsel %vm1644_vm3, %v10470_v56, %v8244_v62  ;;  %v10472_v8 = vld [vmem:[#allocation80_spill] sm:$0xff]  ;;  %v10476_v56 = vld [vmem:[#allocation94_spill] sm:$0xff] }
 0x187   : > { %10464 = vst [vmem:[#allocation98_spill] sm:$0xff] %v8238_v20  ;;  %v8250_v34 = vadd.f32 %v2155_v21, %v8007_v36  ;;  %v6381_v18 = vpop.f32.mrf.mxu0  ;;  %10471 = vst [vmem:[#allocation78_spill] sm:$0xff] %v8263_v26  ;;  %v10479_v23 = vld [vmem:[#allocation82_spill] sm:$0xff] }
 0x188   : > { %v8253_v61 = vadd.f32 %v6381_v18, %v10468_v0  ;;  %v6419_v3 = vpop.f32.mrf.mxu1 }
 0x189   : > { %v8256_v20 = vadd.f32 %v6419_v3, %v8009_v5  ;;  %v1846_v54 = vpop.f32.mrf.mxu0  ;;  %v10474_v5 = vld [vmem:[#allocation81_spill] sm:$0xff] }
 0x18a   : > { %10469 = vst [vmem:[#allocation77_spill] sm:$0xff] %v8253_v61  ;;  %v8266_v36 = vadd.f32 %v1846_v54, %v10472_v8  ;;  %v2158_v21 = vpop.f32.mrf.mxu1  ;;  %v10473_v61 = vld [vmem:[#allocation72_spill] sm:$0xff]  ;;  %v3064_v54 = vrot.slane %v10476_v56, 1 }
 0x18b   : > { %v8269_v0 = vadd.f32 %v2158_v21, %v8013_v10  ;;  %v6384_v18 = vpop.f32.mrf.mxu0  ;;  %6587 = vmatmul.mubr.msk.bf16.gmra.mxu0 %vm671_vm1, %v10473_v61  ;;  %v10478_v21 = vld [vmem:[#allocation15_spill] sm:$0xff] }
 0x18c   : > { %v8274_v3 = vadd.f32 %v6384_v18, %v10474_v5  ;;  %v6422_v27 = vpop.f32.mrf.mxu1  ;;  %6625 = vmatmul.mubr.msk.bf16.gmra.mxu1 %vm671_vm1, %v3275_v1  ;;  %6590 = vmatprep.mubr.msk.bf16.mxu0 %vm671_vm1, %v8263_v26 }
 0x18d   : > { %v8281_v8 = vadd.f32 %v6422_v27, %v8023_v24  ;;  %v1859_v10 = vpop.f32.mrf.mxu0  ;;  %6664 = vmatprep.mubr.msk.bf16.mxu1 %vm671_vm1, %v10478_v21  ;;  %v3065_v24 = vsel %vm1644_vm3, %v8244_v62, %v3064_v54  ;;  %v8311_v54 = vld [vmem:[%s10179_s4 + $0x10] sm:$0x3] }
 0x18e   : > { %10475 = vst [vmem:[#allocation70_spill] sm:$0xff] %v8274_v3  ;;  %v8286_v61 = vadd.f32 %v1859_v10, %v10479_v23  ;;  %v2171_v18 = vpop.f32.mrf.mxu1  ;;  %v10480_v3 = vld [vmem:[#allocation83_spill] sm:$0xff] }
 0x18f   : > { %10477 = vst [vmem:[#allocation80_spill] sm:$0xff] %v8281_v8  ;;  %v8289_v5 = vadd.f32 %v2171_v18, %v8034_v60  ;;  %v6385_v1 = vpop.f32.mrf.mxu0  ;;  %v10481_v8 = vld [vmem:[#allocation84_spill] sm:$0xff]  ;;  %v4123_v60 = vsel %vm720_vm0, %v8021_v37, 0 }
 0x190   : > { %v8292_v26 = vadd.f32 %v6385_v1, %v10480_v3  ;;  %v6423_v56 = vpop.f32.mrf.mxu1 }
 0x191   : > { %v8297_v27 = vadd.f32 %v6423_v56, %v8041_v29  ;;  %v1862_v21 = vpop.f32.mrf.mxu0  ;;  %v10482_v29 = vld [vmem:[#allocation85_spill] sm:$0xff] }
 0x192   : > { %v8300_v23 = vadd.f32 %v1862_v21, %v10481_v8  ;;  %v2174_v10 = vpop.f32.mrf.mxu1  ;;  %v10483_v56 = vld [vmem:[#allocation17_spill] sm:$0xff]  ;;  %v6944_v21 = vld [vmem:[%s7029_s8 + $0x10] sm:$0xff]  }
 0x193   : > { %v8305_v18 = vadd.f32 %v2174_v10, %v8046_v16  ;;  %v6388_v3 = vpop.f32.mrf.mxu0  ;;  %6591 = vmatmul.mubr.msk.bf16.gmra.mxu0 %vm671_vm1, %v3065_v24  ;;  %v10485_v24 = vld [vmem:[#allocation18_spill] sm:$0xff] }
 0x194   : > { %v8314_v1 = vadd.f32 %v6388_v3, %v10482_v29  ;;  %v6462_v8 = vpop.f32.mrf.mxu1  ;;  %6665 = vmatmul.mubr.msk.bf16.vlgmr.msra.gmra.mxu1 %vm671_vm1, %v10483_v56  ;;  %6630 = vmatprep.mubr.msk.bf16.mxu0 %vm671_vm1, %v6944_v21  ;;  %v10486_v10 = vld [vmem:[#allocation86_spill] sm:$0xff]  ;;  %v10489_v21 = vld [vmem:[#allocation87_spill] sm:$0xff] }
 0x195   : > { %v8321_v37 = vadd.f32 %v6462_v8, %v8030_v25  ;;  %6731 = vmatpush3.bf16.msra.mxu1 %v4123_v60  ;;  %v1875_v16 = vpop.f32.mrf.mxu0  ;;  %6668 = vmatprep.mubr.msk.bf16.mxu1 %vm671_vm1, %v10485_v24 }
 0x196   : > { %v8326_v62 = vadd.f32 %v1875_v16, %v10486_v10  ;;  %v2464_v3 = vpop.f32.mrf.mxu1  ;;  %6849 = vmatprep.subr.msk.bf16.mxu1 %vm720_vm0, %v8311_v54 }
 0x197   : > { %10484 = vst [vmem:[#allocation81_spill] sm:$0xff] %v8321_v37  ;;  %v8331_v29 = vadd.f32 %v2464_v3, %v8039_v44  ;;  %v6389_v56 = vpop.f32.mrf.mxu0  ;;  %v10490_v37 = vld [vmem:[#allocation88_spill] sm:$0xff] }
 0x198   : > { %10487 = vst [vmem:[#allocation94_spill] sm:$0xff] %v8326_v62  ;;  %v8334_v25 = vadd.f32 %v6389_v56, %v10489_v21  ;;  %v6463_v60 = vpop.f32.mrf.mxu1  ;;  %v3905_v62 = vsel %vm720_vm0, %v8058_v11, 0  ;;  %v10491_v21 = vld [vmem:[#allocation19_spill] sm:$0xff]  ;;  %v6946_v11 = vld [vmem:[%s7029_s8 + $0x20] sm:$0xff]  }
 0x199   : > { %10488 = vst [vmem:[#allocation15_spill] sm:$0xff] %v8331_v29  ;;  %v8337_v8 = vadd.f32 %v6463_v60, %v8044_v55  ;;  %v1878_v24 = vpop.f32.mrf.mxu0  ;;  %v6945_v29 = vld [vmem:[%s7029_s8 + $0x18] sm:$0xff]   ;;  %v8352_v55 = vld [vmem:[%s10178_s3 + $0x10] sm:$0x3] }
 0x19a   : > { %v8340_v16 = vadd.f32 %v1878_v24, %v10490_v37  ;;  %v2467_v10 = vpop.f32.mrf.mxu1 }
 0x19b   : > { %v8345_v44 = vadd.f32 %v2467_v10, %v8051_v45  ;;  %v6428_v3 = vpop.f32.mrf.mxu0  ;;  %6631 = vmatmul.mubr.msk.bf16.vlgmr.msra.gmra.mxu0 %vm671_vm1, %v6945_v29  ;;  %v10492_v29 = vld [vmem:[#allocation21_spill] sm:$0xff] }
 0x19c   : > { %v8355_v56 = vadd.f32 %v6428_v3, %v8061_v15  ;;  %v6466_v37 = vpop.f32.mrf.mxu1  ;;  %6669 = vmatmul.mubr.msk.bf16.gmra.mxu1 %vm671_vm1, %v10491_v21  ;;  %6634 = vmatprep.mubr.msk.bf16.mxu0 %vm671_vm1, %v6946_v11 }
 0x19d   : > { %v8362_v45 = vadd.f32 %v6466_v37, %v8068_v63  ;;  %v2261_v60 = vpop.f32.mrf.mxu0  ;;  %6672 = vmatprep.mubr.msk.bf16.mxu1 %vm671_vm1, %v10492_v29  ;;  %6697 = vmatpush3.bf16.msra.mxu0 %v3905_v62 }
 0x19e   : > { %v8367_v24 = vadd.f32 %v2261_v60, %v8073_v57  ;;  %v2480_v15 = vpop.f32.mrf.mxu1  ;;  %6848 = vmatprep.subr.msk.bf16.mxu0 %vm720_vm0, %v8352_v55 }
 0x19f   : > { %v8372_v10 = vadd.f32 %v2480_v15, %v8078_v12  ;;  %v6429_v3 = vpop.f32.mrf.mxu0  ;;  %v10494_v15 = vld [vmem:[#allocation22_spill] sm:$0xff] }
 0x1a0   : > { %10493 = vst [vmem:[#allocation82_spill] sm:$0xff] %v8367_v24  ;;  %v8375_v63 = vadd.f32 %v6429_v3, %v8081_v40  ;;  %v6467_v37 = vpop.f32.mrf.mxu1  ;;  %v6947_v24 = vld [vmem:[%s7029_s8 + $0x28] sm:$0xff]   ;;  %v10495_v3 = vld [vmem:[#allocation25_spill] sm:$0xff] }
 0x1a1   : > { %v8378_v21 = vadd.f32 %v6467_v37, %v8084_v59  ;;  %v2264_v62 = vpop.f32.mrf.mxu0  ;;  %v6948_v59 = vld [vmem:[%s7029_s8 + $0x30] sm:$0xff]  }
 0x1a2   : > { %v8381_v57 = vadd.f32 %v2264_v62, %v8087_v19  ;;  %v2483_v11 = vpop.f32.mrf.mxu1 }
 0x1a3   : > { %v8384_v60 = vadd.f32 %v2483_v11, %v8090_v48  ;;  %v6432_v29 = vpop.f32.mrf.mxu0  ;;  %6635 = vmatmul.mubr.msk.bf16.gmra.mxu0 %vm671_vm1, %v6947_v24 }
 0x1a4   : > { %v8389_v12 = vadd.f32 %v6432_v29, %v8095_v38  ;;  %v6470_v40 = vpop.f32.mrf.mxu1  ;;  %6673 = vmatmul.mubr.msk.bf16.gmra.mxu1 %vm671_vm1, %v10494_v15  ;;  %6638 = vmatprep.mubr.msk.bf16.mxu0 %vm671_vm1, %v6948_v59 }
 0x1a5   : > { %v8396_v19 = vadd.f32 %v6470_v40, %v8102_v22  ;;  %v2277_v48 = vpop.f32.mrf.mxu0  ;;  %6676 = vmatprep.mubr.msk.bf16.mxu1 %vm671_vm1, %v10495_v3  ;;  %v6949_v3 = vld [vmem:[%s7029_s8 + $0x38] sm:$0xff]  }
 0x1a6   : > { %v8401_v24 = vadd.f32 %v2277_v48, %v8107_v39  ;;  %v2496_v38 = vpop.f32.mrf.mxu1 }
 0x1a7   : > { %v8404_v37 = vadd.f32 %v2496_v38, %v8110_v7  ;;  %v6433_v62 = vpop.f32.mrf.mxu0  ;;  %v10496_v38 = vld [vmem:[#allocation26_spill] sm:$0xff] }
 0x1a8   : > { %v8407_v11 = vadd.f32 %v6433_v62, %v8113_v14  ;;  %v6471_v29 = vpop.f32.mrf.mxu1  ;;  %v10497_v62 = vld [vmem:[#allocation29_spill] sm:$0xff] }
 0x1a9   : > { %v8410_v22 = vadd.f32 %v6471_v29, %v8116_v46  ;;  %v2280_v40 = vpop.f32.mrf.mxu0  ;;  %v6950_v46 = vld [vmem:[%s7029_s8 + $0x40] sm:$0xff]  }
 0x1aa   : > { %v8413_v15 = vadd.f32 %v2280_v40, %v8119_v4  ;;  %v2499_v59 = vpop.f32.mrf.mxu1 }
 0x1ab   : > { %v8416_v39 = vadd.f32 %v2499_v59, %v8122_v30  ;;  %v6436_v48 = vpop.f32.mrf.mxu0  ;;  %6639 = vmatmul.mubr.msk.bf16.gmra.mxu0 %vm671_vm1, %v6949_v3 }
 0x1ac   : > { %v8421_v7 = vadd.f32 %v6436_v48, %v8127_v31  ;;  %v6474_v14 = vpop.f32.mrf.mxu1  ;;  %6677 = vmatmul.mubr.msk.bf16.gmra.mxu1 %vm671_vm1, %v10496_v38  ;;  %6642 = vmatprep.mubr.msk.bf16.mxu0 %vm671_vm1, %v6950_v46 }
 0x1ad   : > { %v8428_v4 = vadd.f32 %v6474_v14, %v8134_v33  ;;  %v2293_v30 = vpop.f32.mrf.mxu0  ;;  %6680 = vmatprep.mubr.msk.bf16.mxu1 %vm671_vm1, %v10497_v62  ;;  %v6951_v62 = vld [vmem:[%s7029_s8 + $0x48] sm:$0xff]  }
 0x1ae   : > { %v8433_v29 = vadd.f32 %v2293_v30, %v8139_v35  ;;  %v2512_v31 = vpop.f32.mrf.mxu1 }
 0x1af   : > { %v8436_v40 = vadd.f32 %v2512_v31, %v8142_v28  ;;  %v6437_v59 = vpop.f32.mrf.mxu0  ;;  %v10498_v31 = vld [vmem:[#allocation30_spill] sm:$0xff] }
 0x1b0   : > { %v8439_v48 = vadd.f32 %v6437_v59, %v8145_v49  ;;  %v6475_v3 = vpop.f32.mrf.mxu1  ;;  %v10499_v59 = vld [vmem:[#allocation33_spill] sm:$0xff] }
 0x1b1   : > { %v8442_v33 = vadd.f32 %v6475_v3, %v8148_v2  ;;  %v2296_v14 = vpop.f32.mrf.mxu0  ;;  %v6952_v2 = vld [vmem:[%s7029_s8 + $0x50] sm:$0xff]  }
 0x1b2   : > { %v8445_v38 = vadd.f32 %v2296_v14, %v8151_v53  ;;  %v2515_v46 = vpop.f32.mrf.mxu1 }
 0x1b3   : > { %v8448_v35 = vadd.f32 %v2515_v46, %v8154_v52  ;;  %v6440_v30 = vpop.f32.mrf.mxu0  ;;  %6643 = vmatmul.mubr.msk.bf16.gmra.mxu0 %vm671_vm1, %v6951_v62 }
 0x1b4   : > { %v8453_v28 = vadd.f32 %v6440_v30, %v8159_v50  ;;  %v6478_v49 = vpop.f32.mrf.mxu1  ;;  %6681 = vmatmul.mubr.msk.bf16.gmra.mxu1 %vm671_vm1, %v10498_v31  ;;  %6646 = vmatprep.mubr.msk.bf16.mxu0 %vm671_vm1, %v6952_v2 }
 0x1b5   : > { %v8460_v53 = vadd.f32 %v6478_v49, %v8166_v41  ;;  %v2309_v52 = vpop.f32.mrf.mxu0  ;;  %6684 = vmatprep.mubr.msk.bf16.mxu1 %vm671_vm1, %v10499_v59 }
 0x1b6   : > { %v8465_v3 = vadd.f32 %v2309_v52, %v8171_v43  ;;  %v2528_v50 = vpop.f32.mrf.mxu1  ;;  %v10501_v43 = vld [vmem:[#allocation45_spill] sm:$0xff] }
 0x1b7   : > { %v8468_v14 = vadd.f32 %v2528_v50, %v8174_v42  ;;  %v6441_v46 = vpop.f32.mrf.mxu0  ;;  %v10503_v42 = vld [vmem:[#allocation97_spill] sm:$0xff] }
 0x1b8   : > { %10500 = vst [vmem:[#allocation83_spill] sm:$0xff] %v8465_v3  ;;  %v8471_v30 = vadd.f32 %v6441_v46, %v8177_v9  ;;  %v6479_v62 = vpop.f32.mrf.mxu1  ;;  %v6953_v3 = vld [vmem:[%s7029_s8 + $0x58] sm:$0xff]   ;;  %v10505_v46 = vld [vmem:[#allocation34_spill] sm:$0xff] }
 0x1b9   : > { %v8474_v41 = vadd.f32 %v6479_v62, %v8180_v47  ;;  %v2312_v49 = vpop.f32.mrf.mxu0  ;;  %v6954_v47 = vld [vmem:[%s7029_s8 + $0x60] sm:$0xff]  }
 0x1ba   : > { %v8477_v31 = vadd.f32 %v2312_v49, %v8183_v6  ;;  %v2531_v2 = vpop.f32.mrf.mxu1  ;;  %v10506_v6 = vld [vmem:[#allocation93_spill] sm:$0xff] }
 0x1bb   : > { %v8480_v52 = vadd.f32 %v2531_v2, %v10501_v43  ;;  %v6444_v59 = vpop.f32.mrf.mxu0  ;;  %6647 = vmatmul.mubr.msk.bf16.gmra.mxu0 %vm671_vm1, %v6953_v3  ;;  %v10508_v2 = vld [vmem:[#allocation38_spill] sm:$0xff] }
 0x1bc   : > { %v8485_v50 = vadd.f32 %v6444_v59, %v10503_v42  ;;  %v6482_v9 = vpop.f32.mrf.mxu1  ;;  %6685 = vmatmul.mubr.msk.bf16.gmra.mxu1 %vm671_vm1, %v10505_v46  ;;  %6650 = vmatprep.mubr.msk.bf16.mxu0 %vm671_vm1, %v6954_v47 }
 0x1bd   : > { %10502 = vst [vmem:[#allocation84_spill] sm:$0xff] %v8480_v52  ;;  %v8492_v62 = vadd.f32 %v6482_v9, %v10506_v6  ;;  %v2325_v49 = vpop.f32.mrf.mxu0  ;;  %6688 = vmatprep.mubr.msk.bf16.mxu1 %vm671_vm1, %v10508_v2  ;;  %v10512_v9 = vld [vmem:[#allocation89_spill] sm:$0xff] }
 0x1be   : > { %10504 = vst [vmem:[#allocation85_spill] sm:$0xff] %v8485_v50  ;;  %v8497_v3 = vadd.f32 %v2325_v49, %v8203_v58  ;;  %v2544_v43 = vpop.f32.mrf.mxu1  ;;  %v467_v6 = vunpack.c.h.bf16 %v10512_v9  ;;  %v10514_v49 = vld [vmem:[#allocation65_spill] sm:$0xff] }
 0x1bf   : > { %10507 = vst [vmem:[#allocation17_spill] sm:$0xff] %v8492_v62  ;;  %v8500_v59 = vadd.f32 %v2544_v43, %v8209_v51  ;;  %v6445_v42 = vpop.f32.mrf.mxu0  ;;  %v10513_v62 = vld [vmem:[#allocation74_spill] sm:$0xff]  ;;  %v6955_v43 = vld [vmem:[%s7029_s8 + $0x68] sm:$0xff]  }
 0x1c0   : > { %10509 = vst [vmem:[#allocation18_spill] sm:$0xff] %v8497_v3  ;;  %v8503_v46 = vadd.f32 %v6445_v42, %v8212_v13  ;;  %v6483_v47 = vpop.f32.mrf.mxu1  ;;  %v10516_v13 = vld [vmem:[#allocation76_spill] sm:$0xff] }
 0x1c1   : > { %10510 = vst [vmem:[#allocation86_spill] sm:$0xff] %v8500_v59  ;;  %v8507_v50 = vadd.f32 %v6483_v47, %v10513_v62  ;;  %v2328_v52 = vpop.f32.mrf.mxu0  ;;  %v10518_v59 = vld [vmem:[#allocation39_spill] sm:$0xff]  ;;  %v6956_v62 = vld [vmem:[%s7029_s8 + $0x70] sm:$0xff]  }
 0x1c2   : > { %10511 = vst [vmem:[#allocation87_spill] sm:$0xff] %v8503_v46  ;;  %v8510_v2 = vadd.f32 %v2328_v52, %v8218_v17  ;;  %v2547_v58 = vpop.f32.mrf.mxu1  ;;  %v3680_v17 = vmul.f32 %v467_v6, %v467_v6  ;;  %v10519_v52 = vld [vmem:[#allocation98_spill] sm:$0xff] }
 0x1c3   : > { %v8513_v3 = vadd.f32 %v2547_v58, %v10514_v49  ;;  %v6448_v51 = vpop.f32.mrf.mxu0  ;;  %6651 = vmatmul.mubr.msk.bf16.gmra.mxu0 %vm671_vm1, %v6955_v43  ;;  %v10521_v49 = vld [vmem:[#allocation79_spill] sm:$0xff] }
 0x1c4   : > { %v8518_v42 = vadd.f32 %v6448_v51, %v10516_v13  ;;  %v6486_v46 = vpop.f32.mrf.mxu1  ;;  %6689 = vmatmul.mubr.msk.bf16.gmra.mxu1 %vm671_vm1, %v10518_v59  ;;  %6654 = vmatprep.mubr.msk.bf16.mxu0 %vm671_vm1, %v6956_v62  ;;  %v10523_v62 = vld [vmem:[#allocation90_spill] sm:$0xff] }
 0x1c5   : > { %10515 = vst [vmem:[#allocation88_spill] sm:$0xff] %v8513_v3  ;;  %v8525_v47 = vadd.f32 %v6486_v46, %v10519_v52  ;;  %v2341_v58 = vpop.f32.mrf.mxu0  ;;  %6692 = vmatprep.mubr.msk.bf16.mxu1 %vm671_vm1, %v10521_v49  ;;  %v8539_v46 = vpack.c.bf16 %v3680_v17, %v10523_v62 }
 0x1c6   : > { %10517 = vst [vmem:[#allocation19_spill] sm:$0xff] %v8518_v42  ;;  %v8530_v43 = vadd.f32 %v2341_v58, %v8247_v32  ;;  %v2560_v51 = vpop.f32.mrf.mxu1  ;;  %v10522_v42 = vld [vmem:[#allocation77_spill] sm:$0xff] }
 0x1c7   : > { %10520 = vst [vmem:[#allocation21_spill] sm:$0xff] %v8525_v47  ;;  %v8533_v13 = vadd.f32 %v2560_v51, %v8250_v34  ;;  %v6449_v59 = vpop.f32.mrf.mxu0  ;;  %v6957_v51 = vld [vmem:[%s7029_s8 + $0x78] sm:$0xff]   ;;  %s5336_s8 = sshll.u32 %s10809_s22, 2 }
 0x1c8   : > { %v8536_v3 = vadd.f32 %v6449_v59, %v10522_v42  ;;  %v6487_v6 = vpop.f32.mrf.mxu1  ;;  %v10524_v42 = vld [vmem:[#allocation70_spill] sm:$0xff]  ;;  %s9490_s24 = scalar_lea.vmem %s10175_s0, %s5336_s8  ;;  %s9748_s27 = scalar_lea.vmem %s10180_s5, %s5336_s8 }
 0x1c9   : > { %v8542_v52 = vadd.f32 %v6487_v6, %v8256_v20  ;;  %v2344_v47 = vpop.f32.mrf.mxu0  ;;  %v10526_v20 = vld [vmem:[#allocation35_spill] sm:$0xff] }
 0x1ca   : > { %v8545_v49 = vadd.f32 %v2344_v47, %v8266_v36  ;;  %v2563_v32 = vpop.f32.mrf.mxu1  ;;  %v10527_v36 = vld [vmem:[#allocation80_spill] sm:$0xff] }
 0x1cb   : > { %v8548_v58 = vadd.f32 %v2563_v32, %v8269_v0  ;;  %v6452_v34 = vpop.f32.mrf.mxu0  ;;  %6655 = vmatmul.mubr.msk.bf16.gmra.mxu0 %vm671_vm1, %v6957_v51  ;;  %v10528_v0 = vld [vmem:[#allocation20_spill] sm:$0xff] }
 0x1cc   : > { %v8553_v59 = vadd.f32 %v6452_v34, %v10524_v42  ;;  %v6490_v17 = vpop.f32.mrf.mxu1  ;;  %6693 = vmatmul.mubr.msk.bf16.gmra.mxu1 %vm671_vm1, %v8539_v46  ;;  %6658 = vmatprep.mubr.msk.bf16.mxu0 %vm671_vm1, %v10526_v20 }
 0x1cd   : > { %v8560_v47 = vadd.f32 %v6490_v17, %v10527_v36  ;;  %v2357_v6 = vpop.f32.mrf.mxu0  ;;  %6732 = vmatprep.mubr.msk.bf16.mxu1 %vm671_vm1, %v10528_v0 }
 0x1ce   : > { %10525 = vst [vmem:[#allocation22_spill] sm:$0xff] %v8553_v59  ;;  %v8565_v62 = vadd.f32 %v2357_v6, %v8286_v61  ;;  %v2576_v32 = vpop.f32.mrf.mxu1  ;;  %v4543_v61 = vsel %vm720_vm0, %v8311_v54, 0  ;;  %v10534_v54 = vld [vmem:[#allocation24_spill] sm:$0xff] }
 0x1cf   : > { %v8568_v34 = vadd.f32 %v2576_v32, %v8289_v5  ;;  %v6453_v51 = vpop.f32.mrf.mxu0  ;;  %v10533_v32 = vld [vmem:[#allocation81_spill] sm:$0xff] }
 0x1d0   : > { %v8571_v42 = vadd.f32 %v6453_v51, %v8292_v26  ;;  %v6491_v59 = vpop.f32.mrf.mxu1 }
 0x1d1   : > { %v8574_v20 = vadd.f32 %v6491_v59, %v8297_v27  ;;  %v2360_v17 = vpop.f32.mrf.mxu0  ;;  %v10531_v59 = vld [vmem:[#allocation23_spill] sm:$0xff] }
 0x1d2   : > { %v8577_v36 = vadd.f32 %v2360_v17, %v8300_v23  ;;  %v2579_v0 = vpop.f32.mrf.mxu1  ;;  %v10532_v23 = vld [vmem:[#allocation2_spill] sm:$0xff] }
 0x1d3   : > { %v8582_v6 = vadd.f32 %v2579_v0, %v8305_v18  ;;  %v6456_v5 = vpop.f32.mrf.mxu0  ;;  %6659 = vmatmul.mubr.msk.bf16.gmra.mxu0 %vm671_vm1, %v10512_v9  ;;  %v10535_v17 = vld [vmem:[#allocation94_spill] sm:$0xff] }
 0x1d4   : > { %v8587_v26 = vadd.f32 %v6456_v5, %v8314_v1  ;;  %v6530_v27 = vpop.f32.mrf.mxu1  ;;  %6733 = vmatmul.mubr.msk.bf16.vlgmr.msra.gmra.mxu1 %vm671_vm1, %v10531_v59  ;;  %6698 = vmatprep.mubr.msk.bf16.mxu0 %vm671_vm1, %v10532_v23  ;;  %v10536_v5 = vld [vmem:[#allocation15_spill] sm:$0xff] }
 0x1d5   : > { %10529 = vst [vmem:[#allocation25_spill] sm:$0xff] %v8582_v6  ;;  %v8594_v51 = vadd.f32 %v6530_v27, %v10533_v32  ;;  %6799 = vmatpush3.bf16.msra.mxu1 %v4543_v61  ;;  %v2373_v18 = vpop.f32.mrf.mxu0  ;;  %6736 = vmatprep.mubr.msk.bf16.mxu1 %vm671_vm1, %v10534_v54 }
 0x1d6   : > { %10530 = vst [vmem:[#allocation26_spill] sm:$0xff] %v8587_v26  ;;  %v8599_v0 = vadd.f32 %v2373_v18, %v10535_v17  ;;  %v2899_v1 = vpop.f32.mrf.mxu1  ;;  %v4333_v18 = vsel %vm720_vm0, %v8352_v55, 0 }
 0x1d7   : > { %v8602_v26 = vadd.f32 %v2899_v1, %v10536_v5  ;;  %v6457_v6 = vpop.f32.mrf.mxu0  ;;  %v10537_v5 = vld [vmem:[#allocation3_spill] sm:$0xff] }
 0x1d8   : > { %v8605_v59 = vadd.f32 %v6457_v6, %v8334_v25  ;;  %v6531_v23 = vpop.f32.mrf.mxu1  ;;  %v10538_v6 = vld [vmem:[#allocation27_spill] sm:$0xff] }
 0x1d9   : > { %v8608_v27 = vadd.f32 %v6531_v23, %v8337_v8  ;;  %v2376_v61 = vpop.f32.mrf.mxu0 }
 0x1da   : > { %v8611_v32 = vadd.f32 %v2376_v61, %v8340_v16  ;;  %v2902_v54 = vpop.f32.mrf.mxu1  ;;  %v10539_v16 = vld [vmem:[#allocation4_spill] sm:$0xff]  ;;  %v10542_v61 = vld [vmem:[#allocation82_spill] sm:$0xff] }
 0x1db   : > { %v8616_v17 = vadd.f32 %v2902_v54, %v8345_v44  ;;  %v6496_v1 = vpop.f32.mrf.mxu0  ;;  %6699 = vmatmul.mubr.msk.bf16.vlgmr.msra.gmra.mxu0 %vm671_vm1, %v10537_v5  ;;  %v10541_v44 = vld [vmem:[#allocation28_spill] sm:$0xff] }
 0x1dc   : > { %v8621_v25 = vadd.f32 %v6496_v1, %v8355_v56  ;;  %v6534_v8 = vpop.f32.mrf.mxu1  ;;  %6737 = vmatmul.mubr.msk.bf16.gmra.mxu1 %vm671_vm1, %v10538_v6  ;;  %6702 = vmatprep.mubr.msk.bf16.mxu0 %vm671_vm1, %v10539_v16 }
 0x1dd   : > { %v8628_v23 = vadd.f32 %v6534_v8, %v8362_v45  ;;  %v2681_v55 = vpop.f32.mrf.mxu0  ;;  %6740 = vmatprep.mubr.msk.bf16.mxu1 %vm671_vm1, %v10541_v44  ;;  %6765 = vmatpush3.bf16.msra.mxu0 %v4333_v18 }
 0x1de   : > { %v8633_v54 = vadd.f32 %v2681_v55, %v10542_v61  ;;  %v2915_v56 = vpop.f32.mrf.mxu1  ;;  %v10543_v61 = vld [vmem:[#allocation5_spill] sm:$0xff] }
 0x1df   : > { %10540 = vst [vmem:[#allocation29_spill] sm:$0xff] %v8628_v23  ;;  %v8636_v1 = vadd.f32 %v2915_v56, %v8372_v10  ;;  %v6497_v5 = vpop.f32.mrf.mxu0  ;;  %v10544_v56 = vld [vmem:[#allocation31_spill] sm:$0xff] }
 0x1e0   : > { %v8639_v6 = vadd.f32 %v6497_v5, %v8375_v63  ;;  %v6535_v16 = vpop.f32.mrf.mxu1 }
 0x1e1   : > { %v8642_v45 = vadd.f32 %v6535_v16, %v8378_v21  ;;  %v2684_v8 = vpop.f32.mrf.mxu0  ;;  %v10545_v21 = vld [vmem:[#allocation6_spill] sm:$0xff] }
 0x1e2   : > { %v8645_v23 = vadd.f32 %v2684_v8, %v8381_v57  ;;  %v2918_v18 = vpop.f32.mrf.mxu1 }
 0x1e3   : > { %v8648_v55 = vadd.f32 %v2918_v18, %v8384_v60  ;;  %v6500_v44 = vpop.f32.mrf.mxu0  ;;  %6703 = vmatmul.mubr.msk.bf16.gmra.mxu0 %vm671_vm1, %v10543_v61  ;;  %v10546_v60 = vld [vmem:[#allocation32_spill] sm:$0xff] }
 0x1e4   : > { %v8653_v10 = vadd.f32 %v6500_v44, %v8389_v12  ;;  %v6538_v63 = vpop.f32.mrf.mxu1  ;;  %6741 = vmatmul.mubr.msk.bf16.gmra.mxu1 %vm671_vm1, %v10544_v56  ;;  %6706 = vmatprep.mubr.msk.bf16.mxu0 %vm671_vm1, %v10545_v21 }
 0x1e5   : > { %v8660_v57 = vadd.f32 %v6538_v63, %v8396_v19  ;;  %v2697_v5 = vpop.f32.mrf.mxu0  ;;  %6744 = vmatprep.mubr.msk.bf16.mxu1 %vm671_vm1, %v10546_v60 }
 0x1e6   : > { %v8665_v16 = vadd.f32 %v2697_v5, %v8401_v24  ;;  %v2931_v8 = vpop.f32.mrf.mxu1  ;;  %v10547_v5 = vld [vmem:[#allocation7_spill] sm:$0xff] }
 0x1e7   : > { %v8668_v12 = vadd.f32 %v2931_v8, %v8404_v37  ;;  %v6501_v18 = vpop.f32.mrf.mxu0  ;;  %v10549_v8 = vld [vmem:[#allocation8_spill] sm:$0xff] }
 0x1e8   : > { %v8671_v44 = vadd.f32 %v6501_v18, %v8407_v11  ;;  %v6539_v61 = vpop.f32.mrf.mxu1 }
 0x1e9   : > { %v8674_v56 = vadd.f32 %v6539_v61, %v8410_v22  ;;  %v2700_v19 = vpop.f32.mrf.mxu0  ;;  %v10548_v22 = vld [vmem:[#allocation36_spill] sm:$0xff] }
 0x1ea   : > { %v8677_v63 = vadd.f32 %v2700_v19, %v8413_v15  ;;  %v2934_v24 = vpop.f32.mrf.mxu1 }
 0x1eb   : > { %v8680_v21 = vadd.f32 %v2934_v24, %v8416_v39  ;;  %v6504_v37 = vpop.f32.mrf.mxu0  ;;  %6707 = vmatmul.mubr.msk.bf16.gmra.mxu0 %vm671_vm1, %v10547_v5  ;;  %v10550_v39 = vld [vmem:[#allocation37_spill] sm:$0xff]  ;;  %v317_v24 = vld [vmem:[%s7208_s17 + $0x14] sm:$0xf] }
 0x1ec   : > { %v8685_v11 = vadd.f32 %v6504_v37, %v8421_v7  ;;  %v6542_v60 = vpop.f32.mrf.mxu1  ;;  %6745 = vmatmul.mubr.msk.bf16.gmra.mxu1 %vm671_vm1, %v10548_v22  ;;  %6710 = vmatprep.mubr.msk.bf16.mxu0 %vm671_vm1, %v10549_v8  ;;  %v8700_v7 = vld [vmem:[%s7208_s17 + $0x10] sm:$0xf] }
 0x1ed   : > { %v8692_v15 = vadd.f32 %v6542_v60, %v8428_v4  ;;  %v2713_v18 = vpop.f32.mrf.mxu0  ;;  %6748 = vmatprep.mubr.msk.bf16.mxu1 %vm671_vm1, %v10550_v39  ;;  %v5361_v39 = vcombine.low %v8700_v7, %v317_v24 }
 0x1ee   : > { %v8697_v61 = vadd.f32 %v2713_v18, %v8433_v29  ;;  %v2947_v19 = vpop.f32.mrf.mxu1 }
 0x1ef   : > { %v8704_v37 = vadd.f32 %v2947_v19, %v8436_v40  ;;  %v6505_v5 = vpop.f32.mrf.mxu0  ;;  %v10552_v19 = vld [vmem:[#allocation9_spill] sm:$0xff] }
 0x1f0   : > { %10551 = vst [vmem:[#allocation30_spill] sm:$0xff] %v8697_v61  ;;  %v8707_v22 = vadd.f32 %v6505_v5, %v8439_v48  ;;  %v6543_v4 = vpop.f32.mrf.mxu1 }
 0x1f1   : > { %v8710_v60 = vadd.f32 %v6543_v4, %v8442_v33  ;;  %v2716_v8 = vpop.f32.mrf.mxu0  ;;  %v10554_v33 = vld [vmem:[#allocation40_spill] sm:$0xff]  ;;  %v10555_v4 = vld [vmem:[#allocation10_spill] sm:$0xff] }
 0x1f2   : > { %v8714_v29 = vadd.f32 %v2716_v8, %v8445_v38  ;;  %v2950_v18 = vpop.f32.mrf.mxu1  ;;  %v468_v8 = vunpack.c.l.bf16 %v5361_v39 }
 0x1f3   : > { %v8717_v61 = vadd.f32 %v2950_v18, %v8448_v35  ;;  %v6508_v40 = vpop.f32.mrf.mxu0  ;;  %6711 = vmatmul.mubr.msk.bf16.gmra.mxu0 %vm671_vm1, %v10552_v19  ;;  %v10557_v35 = vld [vmem:[#allocation41_spill] sm:$0xff]  ;;  %v10558_v18 = vld [vmem:[#allocation83_spill] sm:$0xff] }
 0x1f4   : > { %v8722_v48 = vadd.f32 %v6508_v40, %v8453_v28  ;;  %v6546_v5 = vpop.f32.mrf.mxu1  ;;  %6749 = vmatmul.mubr.msk.bf16.gmra.mxu1 %vm671_vm1, %v10554_v33  ;;  %6714 = vmatprep.mubr.msk.bf16.mxu0 %vm671_vm1, %v10555_v4 }
 0x1f5   : > { %v8729_v38 = vadd.f32 %v6546_v5, %v8460_v53  ;;  %v2729_v24 = vpop.f32.mrf.mxu0  ;;  %6752 = vmatprep.mubr.msk.bf16.mxu1 %vm671_vm1, %v10557_v35 }
 0x1f6   : > { %10553 = vst [vmem:[#allocation33_spill] sm:$0xff] %v8722_v48  ;;  %v8734_v19 = vadd.f32 %v2729_v24, %v10558_v18  ;;  %v2963_v28 = vpop.f32.mrf.mxu1  ;;  %v4104_v24 = vshll.u32 %v8539_v46, 16  ;;  %v10563_v18 = vld [vmem:[#allocation84_spill] sm:$0xff] }
 0x1f7   : > { %10556 = vst [vmem:[#allocation45_spill] sm:$0xff] %v8729_v38  ;;  %v8737_v40 = vadd.f32 %v2963_v28, %v8468_v14  ;;  %v6509_v48 = vpop.f32.mrf.mxu0  ;;  %v4100_v38 = vmul.f32 %v468_v8, %v468_v8  ;;  %v10565_v28 = vld [vmem:[#allocation11_spill] sm:$0xff]  ;;  %v10569_v8 = vld [vmem:[#allocation12_spill] sm:$0xff] }
 0x1f8   : > { %10559 = vst [vmem:[#allocation97_spill] sm:$0xff] %v8734_v19  ;;  %v8740_v33 = vadd.f32 %v6509_v48, %v8471_v30  ;;  %v6547_v4 = vpop.f32.mrf.mxu1  ;;  %v10566_v30 = vld [vmem:[#allocation85_spill] sm:$0xff] }
 0x1f9   : > { %v8743_v53 = vadd.f32 %v6547_v4, %v8474_v41  ;;  %v2732_v5 = vpop.f32.mrf.mxu0  ;;  %v10568_v4 = vld [vmem:[#allocation42_spill] sm:$0xff] }
 0x1fa   : > { %10560 = vst [vmem:[#allocation34_spill] sm:$0xff] %v8740_v33  ;;  %v8746_v35 = vadd.f32 %v2732_v5, %v8477_v31  ;;  %v2966_v39 = vpop.f32.mrf.mxu1  ;;  %v10570_v31 = vld [vmem:[#allocation17_spill] sm:$0xff]  ;;  %v10577_v33 = vld [vmem:[#allocation87_spill] sm:$0xff] }
 0x1fb   : > { %10561 = vst [vmem:[#allocation93_spill] sm:$0xff] %v8743_v53  ;;  %v8750_v19 = vadd.f32 %v2966_v39, %v10563_v18  ;;  %v6512_v14 = vpop.f32.mrf.mxu0  ;;  %6715 = vmatmul.mubr.msk.bf16.gmra.mxu0 %vm671_vm1, %v10565_v28  ;;  %v10572_v39 = vld [vmem:[#allocation43_spill] sm:$0xff]  ;;  %v8766_v18 = vpack.c.bf16 %v4100_v38, %v4100_v38  ;;  %v10574_v28 = vld [vmem:[#allocation18_spill] sm:$0xff]  ;;  %v4108_v38 = vshrl.u32 %v8539_v46, 16 }
 0x1fc   : > { %10562 = vst [vmem:[#allocation38_spill] sm:$0xff] %v8746_v35  ;;  %v8755_v48 = vadd.f32 %v6512_v14, %v10566_v30  ;;  %v6550_v41 = vpop.f32.mrf.mxu1  ;;  %6753 = vmatmul.mubr.msk.bf16.gmra.mxu1 %vm671_vm1, %v10568_v4  ;;  %6718 = vmatprep.mubr.msk.bf16.mxu0 %vm671_vm1, %v10569_v8  ;;  %v4106_v30 = vrot.slane %v4104_v24, 1 }
 0x1fd   : > { %10564 = vst [vmem:[#allocation89_spill] sm:$0xff] %v8750_v19  ;;  %v8762_v5 = vadd.f32 %v6550_v41, %v10570_v31  ;;  %v2745_v35 = vpop.f32.mrf.mxu0  ;;  %6756 = vmatprep.mubr.msk.bf16.mxu1 %vm671_vm1, %v10572_v39  ;;  %10573 = vst [vmem:[#allocation76_spill] sm:$0xff] %v8766_v18  ;;  %v4112_v39 = vshll.u32 %v8766_v18, 16 }
 0x1fe   : > { %10567 = vst [vmem:[#allocation74_spill] sm:$0xff] %v8755_v48  ;;  %v8769_v19 = vadd.f32 %v2745_v35, %v10574_v28  ;;  %v2979_v14 = vpop.f32.mrf.mxu1  ;;  %v10575_v48 = vld [vmem:[#allocation86_spill] sm:$0xff]  ;;  %v3886_v35 = vshll.u32 %v10512_v9, 16  ;;  %v10581_v28 = vld [vmem:[#allocation95_spill] sm:$0xff] }
 0x1ff   : > { %10571 = vst [vmem:[#allocation65_spill] sm:$0xff] %v8762_v5  ;;  %v8772_v53 = vadd.f32 %v2979_v14, %v10575_v48  ;;  %v6513_v4 = vpop.f32.mrf.mxu0  ;;  %v4107_v14 = vsel %vm538_vm2, %v10581_v28, %v4106_v30 }
 0x200   : > { %v8775_v8 = vadd.f32 %v6513_v4, %v10577_v33  ;;  %v6551_v41 = vpop.f32.mrf.mxu1  ;;  %v10582_v33 = vld [vmem:[#allocation88_spill] sm:$0xff] }
 0x201   : > { %10576 = vst [vmem:[#allocation39_spill] sm:$0xff] %v8772_v53  ;;  %v8778_v31 = vadd.f32 %v6551_v41, %v8507_v50  ;;  %v2748_v5 = vpop.f32.mrf.mxu0  ;;  %v10584_v50 = vld [vmem:[#allocation13_spill] sm:$0xff]  ;;  %v10585_v41 = vld [vmem:[#allocation19_spill] sm:$0xff]  ;;  %v10587_v53 = vld [vmem:[#allocation92_spill] sm:$0xff] }
 0x202   : > { %10578 = vst [vmem:[#allocation98_spill] sm:$0xff] %v8775_v8  ;;  %v8784_v24 = vadd.f32 %v2748_v5, %v8510_v2  ;;  %v2982_v48 = vpop.f32.mrf.mxu1  ;;  %v10588_v2 = vld [vmem:[#allocation14_spill] sm:$0xff]  ;;  %v8802_v5 = vcombine.low %v8700_v7, %v8700_v7 }
 0x203   : > { %10579 = vst [vmem:[#allocation79_spill] sm:$0xff] %v8778_v31  ;;  %v8789_v4 = vadd.f32 %v2982_v48, %v10582_v33  ;;  %v6516_v8 = vpop.f32.mrf.mxu0  ;;  %6719 = vmatmul.mubr.msk.bf16.gmra.mxu0 %vm671_vm1, %v10584_v50  ;;  %v10589_v48 = vld [vmem:[#allocation21_spill] sm:$0xff]  ;;  %v3888_v50 = vrot.slane %v3886_v35, 1  ;;  %v10590_v35 = vld [vmem:[#allocation96_spill] sm:$0xff] }
 0x204   : > { %10580 = vst [vmem:[#allocation77_spill] sm:$0xff] %v8784_v24  ;;  %v8794_v31 = vadd.f32 %v6516_v8, %v10585_v41  ;;  %v6554_v18 = vpop.f32.mrf.mxu1  ;;  %6757 = vmatmul.mubr.msk.bf16.gmra.mxu1 %vm671_vm1, %v10587_v53  ;;  %6722 = vmatprep.mubr.msk.bf16.mxu0 %vm671_vm1, %v10588_v2  ;;  %v4114_v8 = vrot.slane %v4112_v39, 1 }
 0x205   : > { %10583 = vst [vmem:[#allocation90_spill] sm:$0xff] %v8789_v4  ;;  %v8805_v28 = vadd.f32 %v6554_v18, %v10589_v48  ;;  %v2761_v33 = vpop.f32.mrf.mxu0  ;;  %v4110_v4 = vor.u32 %v4108_v38, %v4106_v30  ;;  %6760 = vmatprep.mubr.msk.bf16.mxu1 %vm671_vm1, %v4107_v14  ;;  %v3890_v18 = vshrl.u32 %v10512_v9, 16  ;;  %v3894_v30 = vshll.u32 %v8802_v5, 16 }
 0x206   : > { %10586 = vst [vmem:[#allocation70_spill] sm:$0xff] %v8794_v31  ;;  %v8809_v41 = vadd.f32 %v2761_v33, %v8530_v43  ;;  %v2995_v53 = vpop.f32.mrf.mxu1  ;;  %v3889_v14 = vsel %vm538_vm2, %v10590_v35, %v3888_v50 }
 0x207   : > { %v8812_v31 = vadd.f32 %v2995_v53, %v8533_v13  ;;  %v6517_v2 = vpop.f32.mrf.mxu0  ;;  %v4115_v43 = vsel %vm538_vm2, %v4110_v4, %v4114_v8  ;;  %v10591_v53 = vld [vmem:[#allocation16_spill] sm:$0xff]  ;;  %v3892_v4 = vor.u32 %v3890_v18, %v3888_v50  ;;  %v3896_v8 = vrot.slane %v3894_v30, 1 }
 0x208   : > { %v8815_v7 = vadd.f32 %v6517_v2, %v8536_v3  ;;  %v6555_v24 = vpop.f32.mrf.mxu1  ;;  %v10592_v2 = vld [vmem:[#allocation22_spill] sm:$0xff] }
 0x209   : > { %v8820_v38 = vadd.f32 %v6555_v24, %v8542_v52  ;;  %v2764_v39 = vpop.f32.mrf.mxu0  ;;  %v3897_v30 = vsel %vm538_vm2, %v3892_v4, %v3896_v8  ;;  %v10598_v8 = vld [vmem:[#allocation48_spill] sm:$0xff] }
 0x20a   : > { %v8826_v13 = vadd.f32 %v2764_v39, %v8545_v49  ;;  %v2998_v48 = vpop.f32.mrf.mxu1 }
 0x20b   : > { %v8829_v3 = vadd.f32 %v2998_v48, %v8548_v58  ;;  %v6520_v33 = vpop.f32.mrf.mxu0  ;;  %6723 = vmatmul.mubr.msk.bf16.gmra.mxu0 %vm671_vm1, %v10591_v53  ;;  %v10593_v58 = vld [vmem:[#allocation44_spill] sm:$0xff] }
 0x20c   : > { %v8834_v52 = vadd.f32 %v6520_v33, %v10592_v2  ;;  %v6558_v24 = vpop.f32.mrf.mxu1  ;;  %6761 = vmatmul.mubr.msk.bf16.gmra.mxu1 %vm671_vm1, %v4115_v43  ;;  %6726 = vmatprep.mubr.msk.bf16.mxu0 %vm671_vm1, %v3889_v14  ;;  %v10594_v2 = vld [vmem:[#allocation25_spill] sm:$0xff] }
 0x20d   : > { %v8839_v49 = vadd.f32 %v6558_v24, %v8560_v47  ;;  %v2777_v39 = vpop.f32.mrf.mxu0  ;;  %6800 = vmatprep.mubr.msk.bf16.mxu1 %vm671_vm1, %v10593_v58 }
 0x20e   : > { %v8844_v35 = vadd.f32 %v2777_v39, %v8565_v62  ;;  %v3011_v48 = vpop.f32.mrf.mxu1  ;;  %v10595_v39 = vld [vmem:[#allocation26_spill] sm:$0xff] }
 0x20f   : > { %v8847_v33 = vadd.f32 %v3011_v48, %v8568_v34  ;;  %v6521_v53 = vpop.f32.mrf.mxu0  ;;  %v10596_v48 = vld [vmem:[#allocation46_spill] sm:$0xff] }
 0x210   : > { %v8850_v50 = vadd.f32 %v6521_v53, %v8571_v42  ;;  %v6559_v18 = vpop.f32.mrf.mxu1 }
 0x211   : > { %v8854_v47 = vadd.f32 %v6559_v18, %v8574_v20  ;;  %v2780_v43 = vpop.f32.mrf.mxu0  ;;  %v10597_v20 = vld [vmem:[#allocation47_spill] sm:$0xff] }
 0x212   : > { %v8857_v14 = vadd.f32 %v2780_v43, %v8577_v36  ;;  %v3014_v62 = vpop.f32.mrf.mxu1 }
 0x213   : > { %v8860_v24 = vadd.f32 %v3014_v62, %v10594_v2  ;;  %v6524_v34 = vpop.f32.mrf.mxu0  ;;  %6727 = vmatmul.mubr.msk.bf16.gmra.mxu0 %vm671_vm1, %v3897_v30 }
 0x214   : > { %v8864_v42 = vadd.f32 %v6524_v34, %v10595_v39  ;;  %v6598_v58 = vpop.f32.mrf.mxu1  ;;  %6801 = vmatmul.mubr.msk.bf16.vlgmr.msra.gmra.mxu1 %vm671_vm1, %v10596_v48  ;;  %6766 = vmatprep.mubr.msk.bf16.mxu0 %vm671_vm1, %v10597_v20  ;;  %v10599_v20 = vld [vmem:[#allocation49_spill] sm:$0xff] }
 0x215   : > { %v8871_v36 = vadd.f32 %v6598_v58, %v8594_v51  ;;  %v2793_v4 = vpop.f32.mrf.mxu0  ;;  %6804 = vmatprep.mubr.msk.bf16.mxu1 %vm671_vm1, %v10598_v8 }
 0x216   : > { %v8876_v53 = vadd.f32 %v2793_v4, %v8599_v0  ;;  %v3319_v18 = vpop.f32.mrf.mxu1  ;;  %v10600_v4 = vld [vmem:[#allocation50_spill] sm:$0xff] }
 0x217   : > { %v8879_v30 = vadd.f32 %v3319_v18, %v8602_v26  ;;  %v6525_v43 = vpop.f32.mrf.mxu0 }
 0x218   : > { %v8882_v62 = vadd.f32 %v6525_v43, %v8605_v59  ;;  %v6599_v2 = vpop.f32.mrf.mxu1 }
 0x219   : > { %v8885_v34 = vadd.f32 %v6599_v2, %v8608_v27  ;;  %v2796_v51 = vpop.f32.mrf.mxu0  ;;  %v10601_v27 = vld [vmem:[#allocation51_spill] sm:$0xff] }
 0x21a   : > { %v8888_v39 = vadd.f32 %v2796_v51, %v8611_v32  ;;  %v3322_v58 = vpop.f32.mrf.mxu1  ;;  %v10602_v32 = vld [vmem:[#allocation29_spill] sm:$0xff] }
 0x21b   : > { %v8891_v0 = vadd.f32 %v3322_v58, %v8616_v17  ;;  %v6564_v48 = vpop.f32.mrf.mxu0  ;;  %6767 = vmatmul.mubr.msk.bf16.vlgmr.msra.gmra.mxu0 %vm671_vm1, %v10599_v20  ;;  %v10603_v17 = vld [vmem:[#allocation52_spill] sm:$0xff] }
 0x21c   : > { %v8896_v26 = vadd.f32 %v6564_v48, %v8621_v25  ;;  %v6602_v59 = vpop.f32.mrf.mxu1  ;;  %6805 = vmatmul.mubr.msk.bf16.gmra.mxu1 %vm671_vm1, %v10600_v4  ;;  %6770 = vmatprep.mubr.msk.bf16.mxu0 %vm671_vm1, %v10601_v27 }
 0x21d   : > { %v8903_v8 = vadd.f32 %v6602_v59, %v10602_v32  ;;  %v3109_v18 = vpop.f32.mrf.mxu0  ;;  %6808 = vmatprep.mubr.msk.bf16.mxu1 %vm671_vm1, %v10603_v17  ;;  %v10605_v17 = vld [vmem:[#allocation54_spill] sm:$0xff] }
 0x21e   : > { %v8908_v43 = vadd.f32 %v3109_v18, %v8633_v54  ;;  %v3335_v2 = vpop.f32.mrf.mxu1  ;;  %v10604_v18 = vld [vmem:[#allocation53_spill] sm:$0xff] }
 0x21f   : > { %v8911_v25 = vadd.f32 %v3335_v2, %v8636_v1  ;;  %v6565_v51 = vpop.f32.mrf.mxu0 }
 0x220   : > { %v8914_v58 = vadd.f32 %v6565_v51, %v8639_v6  ;;  %v6603_v48 = vpop.f32.mrf.mxu1 }
 0x221   : > { %v8917_v20 = vadd.f32 %v6603_v48, %v8642_v45  ;;  %v3112_v59 = vpop.f32.mrf.mxu0  ;;  %v10606_v45 = vld [vmem:[#allocation55_spill] sm:$0xff] }
 0x222   : > { %v8920_v4 = vadd.f32 %v3112_v59, %v8645_v23  ;;  %v3338_v27 = vpop.f32.mrf.mxu1 }
 0x223   : > { %v8923_v54 = vadd.f32 %v3338_v27, %v8648_v55  ;;  %v6568_v32 = vpop.f32.mrf.mxu0  ;;  %6771 = vmatmul.mubr.msk.bf16.gmra.mxu0 %vm671_vm1, %v10604_v18  ;;  %v10607_v55 = vld [vmem:[#allocation56_spill] sm:$0xff] }
 0x224   : > { %v8928_v1 = vadd.f32 %v6568_v32, %v8653_v10  ;;  %v6606_v6 = vpop.f32.mrf.mxu1  ;;  %6809 = vmatmul.mubr.msk.bf16.gmra.mxu1 %vm671_vm1, %v10605_v17  ;;  %6774 = vmatprep.mubr.msk.bf16.mxu0 %vm671_vm1, %v10606_v45 }
 0x225   : > { %v8935_v23 = vadd.f32 %v6606_v6, %v8660_v57  ;;  %v3125_v2 = vpop.f32.mrf.mxu0  ;;  %6812 = vmatprep.mubr.msk.bf16.mxu1 %vm671_vm1, %v10607_v55  ;;  %v10609_v55 = vld [vmem:[#allocation58_spill] sm:$0xff] }
 0x226   : > { %v8940_v51 = vadd.f32 %v3125_v2, %v8665_v16  ;;  %v3351_v48 = vpop.f32.mrf.mxu1  ;;  %v10608_v2 = vld [vmem:[#allocation57_spill] sm:$0xff] }
 0x227   : > { %v8943_v10 = vadd.f32 %v3351_v48, %v8668_v12  ;;  %v6569_v59 = vpop.f32.mrf.mxu0 }
 0x228   : > { %v8946_v27 = vadd.f32 %v6569_v59, %v8671_v44  ;;  %v6607_v32 = vpop.f32.mrf.mxu1  ;;  %v10612_v59 = vld [vmem:[#allocation30_spill] sm:$0xff] }
 0x229   : > { %v8949_v18 = vadd.f32 %v6607_v32, %v8674_v56  ;;  %v3128_v57 = vpop.f32.mrf.mxu0  ;;  %v10610_v56 = vld [vmem:[#allocation59_spill] sm:$0xff] }
 0x22a   : > { %v8952_v6 = vadd.f32 %v3128_v57, %v8677_v63  ;;  %v3354_v17 = vpop.f32.mrf.mxu1 }
 0x22b   : > { %v8955_v16 = vadd.f32 %v3354_v17, %v8680_v21  ;;  %v6572_v45 = vpop.f32.mrf.mxu0  ;;  %6775 = vmatmul.mubr.msk.bf16.gmra.mxu0 %vm671_vm1, %v10608_v2  ;;  %v10611_v21 = vld [vmem:[#allocation60_spill] sm:$0xff] }
 0x22c   : > { %v8960_v12 = vadd.f32 %v6572_v45, %v8685_v11  ;;  %v6610_v44 = vpop.f32.mrf.mxu1  ;;  %6813 = vmatmul.mubr.msk.bf16.gmra.mxu1 %vm671_vm1, %v10609_v55  ;;  %6778 = vmatprep.mubr.msk.bf16.mxu0 %vm671_vm1, %v10610_v56 }
 0x22d   : > { %v8967_v63 = vadd.f32 %v6610_v44, %v8692_v15  ;;  %v3141_v48 = vpop.f32.mrf.mxu0  ;;  %6816 = vmatprep.mubr.msk.bf16.mxu1 %vm671_vm1, %v10611_v21 }
 0x22e   : > { %v8972_v32 = vadd.f32 %v3141_v48, %v10612_v59  ;;  %v3367_v57 = vpop.f32.mrf.mxu1  ;;  %v10617_v59 = vld [vmem:[#allocation61_spill] sm:$0xff] }
 0x22f   : > { %v8975_v11 = vadd.f32 %v3367_v57, %v8704_v37  ;;  %v6573_v17 = vpop.f32.mrf.mxu0  ;;  %v10618_v37 = vld [vmem:[#allocation33_spill] sm:$0xff] }
 0x230   : > { %v8978_v45 = vadd.f32 %v6573_v17, %v8707_v22  ;;  %v6611_v2 = vpop.f32.mrf.mxu1  ;;  %v10620_v17 = vld [vmem:[#allocation62_spill] sm:$0xff] }
 0x231   : > { %v8981_v55 = vadd.f32 %v6611_v2, %v8710_v60  ;;  %v3144_v15 = vpop.f32.mrf.mxu0  ;;  %v10621_v60 = vld [vmem:[#allocation63_spill] sm:$0xff] }
 0x232   : > { %10613 = vst [vmem:[#allocation35_spill] sm:$0xff] %v8978_v45  ;;  %v8984_v44 = vadd.f32 %v3144_v15, %v8714_v29  ;;  %v3370_v56 = vpop.f32.mrf.mxu1  ;;  %v10622_v29 = vld [vmem:[#allocation45_spill] sm:$0xff] }
 0x233   : > { %10614 = vst [vmem:[#allocation80_spill] sm:$0xff] %v8981_v55  ;;  %v8987_v48 = vadd.f32 %v3370_v56, %v8717_v61  ;;  %v6576_v21 = vpop.f32.mrf.mxu0  ;;  %6779 = vmatmul.mubr.msk.bf16.gmra.mxu0 %vm671_vm1, %v10617_v59  ;;  %v10624_v61 = vld [vmem:[#allocation64_spill] sm:$0xff]  ;;  %v10625_v56 = vld [vmem:[#allocation97_spill] sm:$0xff] }
 0x234   : > { %10615 = vst [vmem:[#allocation20_spill] sm:$0xff] %v8984_v44  ;;  %v8992_v57 = vadd.f32 %v6576_v21, %v10618_v37  ;;  %v6614_v22 = vpop.f32.mrf.mxu1  ;;  %6817 = vmatmul.mubr.msk.bf16.gmra.mxu1 %vm671_vm1, %v10620_v17  ;;  %6782 = vmatprep.mubr.msk.bf16.mxu0 %vm671_vm1, %v10621_v60  ;;  %v10629_v60 = vld [vmem:[#allocation93_spill] sm:$0xff] }
 0x235   : > { %10616 = vst [vmem:[#allocation23_spill] sm:$0xff] %v8987_v48  ;;  %v8999_v2 = vadd.f32 %v6614_v22, %v10622_v29  ;;  %v3157_v15 = vpop.f32.mrf.mxu0  ;;  %6820 = vmatprep.mubr.msk.bf16.mxu1 %vm671_vm1, %v10624_v61  ;;  %v10631_v29 = vld [vmem:[#allocation38_spill] sm:$0xff]  ;;  %v10633_v45 = vld [vmem:[#allocation89_spill] sm:$0xff] }
 0x236   : > { %10619 = vst [vmem:[#allocation2_spill] sm:$0xff] %v8992_v57  ;;  %v9004_v48 = vadd.f32 %v3157_v15, %v10625_v56  ;;  %v3383_v59 = vpop.f32.mrf.mxu1  ;;  %v10627_v57 = vld [vmem:[#allocation34_spill] sm:$0xff] }
 0x237   : > { %10623 = vst [vmem:[#allocation81_spill] sm:$0xff] %v8999_v2  ;;  %v9007_v21 = vadd.f32 %v3383_v59, %v8737_v40  ;;  %v6577_v37 = vpop.f32.mrf.mxu0  ;;  %v10636_v40 = vld [vmem:[#allocation74_spill] sm:$0xff] }
 0x238   : > { %10626 = vst [vmem:[#allocation24_spill] sm:$0xff] %v9004_v48  ;;  %v9010_v17 = vadd.f32 %v6577_v37, %v10627_v57  ;;  %v6615_v44 = vpop.f32.mrf.mxu1  ;;  %v10635_v48 = vld [vmem:[#allocation66_spill] sm:$0xff]  ;;  %v10638_v37 = vld [vmem:[#allocation67_spill] sm:$0xff] }
 0x239   : > { %v9013_v55 = vadd.f32 %v6615_v44, %v10629_v60  ;;  %v3160_v22 = vpop.f32.mrf.mxu0  ;;  %v10639_v44 = vld [vmem:[#allocation68_spill] sm:$0xff]  ;;  %v10640_v60 = vld [vmem:[#allocation65_spill] sm:$0xff] }
 0x23a   : > { %10628 = vst [vmem:[#allocation94_spill] sm:$0xff] %v9010_v17  ;;  %v9016_v2 = vadd.f32 %v3160_v22, %v10631_v29  ;;  %v3386_v61 = vpop.f32.mrf.mxu1 }
 0x23b   : > { %10630 = vst [vmem:[#allocation15_spill] sm:$0xff] %v9013_v55  ;;  %v9019_v15 = vadd.f32 %v3386_v61, %v10633_v45  ;;  %v6580_v56 = vpop.f32.mrf.mxu0  ;;  %6783 = vmatmul.mubr.msk.bf16.gmra.mxu0 %vm671_vm1, %v10635_v48  ;;  %v10642_v45 = vld [vmem:[#allocation69_spill] sm:$0xff] }
 0x23c   : > { %10632 = vst [vmem:[#allocation3_spill] sm:$0xff] %v9016_v2  ;;  %v9024_v59 = vadd.f32 %v6580_v56, %v10636_v40  ;;  %v6618_v57 = vpop.f32.mrf.mxu1  ;;  %6821 = vmatmul.mubr.msk.bf16.gmra.mxu1 %vm671_vm1, %v10638_v37  ;;  %6786 = vmatprep.mubr.msk.bf16.mxu0 %vm671_vm1, %v10639_v44  ;;  %v4532_v56 = vrot.slane %v8539_v46, 1  ;;  %v10644_v40 = vld [vmem:[#allocation39_spill] sm:$0xff]  ;;  %v10647_v55 = vld [vmem:[#allocation77_spill] sm:$0xff]  ;;  %v10649_v46 = vld [vmem:[#allocation90_spill] sm:$0xff] }
 0x23d   : > { %10634 = vst [vmem:[#allocation27_spill] sm:$0xff] %v9019_v15  ;;  %v9031_v22 = vadd.f32 %v6618_v57, %v10640_v60  ;;  %v3173_v29 = vpop.f32.mrf.mxu0  ;;  %6824 = vmatprep.mubr.msk.bf16.mxu1 %vm671_vm1, %v10642_v45  ;;  %v10645_v15 = vld [vmem:[#allocation98_spill] sm:$0xff]  ;;  %v10646_v57 = vld [vmem:[#allocation79_spill] sm:$0xff] }
 0x23e   : > { %10637 = vst [vmem:[#allocation4_spill] sm:$0xff] %v9024_v59  ;;  %v9036_v61 = vadd.f32 %v3173_v29, %v8769_v19  ;;  %v3399_v48 = vpop.f32.mrf.mxu1  ;;  %v10648_v29 = vld [vmem:[#allocation73_spill] sm:$0xff] }
 0x23f   : > { %10641 = vst [vmem:[#allocation28_spill] sm:$0xff] %v9031_v22  ;;  %v9040_v59 = vadd.f32 %v3399_v48, %v10644_v40  ;;  %v6581_v37 = vpop.f32.mrf.mxu0  ;;  %v10650_v40 = vld [vmem:[#allocation71_spill] sm:$0xff] }
 0x240   : > { %10643 = vst [vmem:[#allocation82_spill] sm:$0xff] %v9036_v61  ;;  %v9043_v2 = vadd.f32 %v6581_v37, %v10645_v15  ;;  %v6619_v44 = vpop.f32.mrf.mxu1  ;;  %v4533_v61 = vsel %vm1644_vm3, %v10648_v29, %v4532_v56  ;;  %v10651_v15 = vld [vmem:[#allocation70_spill] sm:$0xff] }
 0x241   : > { %v9046_v60 = vadd.f32 %v6619_v44, %v10646_v57  ;;  %v3176_v22 = vpop.f32.mrf.mxu0  ;;  %v10653_v57 = vld [vmem:[#allocation75_spill] sm:$0xff] }
 0x242   : > { %v9049_v45 = vadd.f32 %v3176_v22, %v10647_v55  ;;  %v3402_v19 = vpop.f32.mrf.mxu1  ;;  %v10654_v55 = vld [vmem:[#allocation72_spill] sm:$0xff] }
 0x243   : > { %v9054_v17 = vadd.f32 %v3402_v19, %v10649_v46  ;;  %v6584_v48 = vpop.f32.mrf.mxu0  ;;  %6787 = vmatmul.mubr.msk.bf16.gmra.mxu0 %vm671_vm1, %v10650_v40  ;;  %v10656_v19 = vld [vmem:[#allocation76_spill] sm:$0xff]  ;;  %v4322_v40 = vrot.slane %v10512_v9, 1 }
 0x244   : > { %v9059_v37 = vadd.f32 %v6584_v48, %v10651_v15  ;;  %v6622_v44 = vpop.f32.mrf.mxu1  ;;  %6825 = vmatmul.mubr.msk.bf16.gmra.mxu1 %vm671_vm1, %v10653_v57  ;;  %6790 = vmatprep.mubr.msk.bf16.mxu0 %vm671_vm1, %v10654_v55  ;;  %v4534_v46 = vrot.slane %v10656_v19, 1 }
 0x245   : > { %v9066_v22 = vadd.f32 %v6622_v44, %v8805_v28  ;;  %v3189_v29 = vpop.f32.mrf.mxu0  ;;  %6828 = vmatprep.mubr.msk.bf16.mxu1 %vm671_vm1, %v4533_v61 }
 0x246   : > { %10652 = vst [vmem:[#allocation5_spill] sm:$0xff] %v9059_v37  ;;  %v9072_v48 = vadd.f32 %v3189_v29, %v8809_v41  ;;  %v3415_v15 = vpop.f32.mrf.mxu1  ;;  %v4535_v19 = vsel %vm1644_vm3, %v4532_v56, %v4534_v46  ;;  %v4324_v56 = vrot.slane %v8802_v5, 1 }
 0x247   : > { %10655 = vst [vmem:[#allocation31_spill] sm:$0xff] %v9066_v22  ;;  %v9075_v37 = vadd.f32 %v3415_v15, %v8812_v31  ;;  %v6585_v57 = vpop.f32.mrf.mxu0  ;;  %v10657_v22 = vld [vmem:[#allocation91_spill] sm:$0xff] }
 0x248   : > { %v9078_v55 = vadd.f32 %v6585_v57, %v8815_v7  ;;  %v6623_v28 = vpop.f32.mrf.mxu1  ;;  %v4323_v9 = vsel %vm1644_vm3, %v10657_v22, %v4322_v40  ;;  %v10658_v7 = vld [vmem:[#allocation78_spill] sm:$0xff] }
 0x249   : > { %v9081_v44 = vadd.f32 %v6623_v28, %v8820_v38  ;;  %v3192_v61 = vpop.f32.mrf.mxu0 }
 0x24a   : > { %v9087_v41 = vadd.f32 %v3192_v61, %v8826_v13  ;;  %v3418_v29 = vpop.f32.mrf.mxu1 }
 0x24b   : > { %v9090_v31 = vadd.f32 %v3418_v29, %v8829_v3  ;;  %v6588_v15 = vpop.f32.mrf.mxu0  ;;  %6791 = vmatmul.mubr.msk.bf16.gmra.mxu0 %vm671_vm1, %v10658_v7 }
 0x24c   : > { %v9095_v38 = vadd.f32 %v6588_v15, %v8834_v52  ;;  %v6626_v57 = vpop.f32.mrf.mxu1  ;;  %6829 = vmatmul.mubr.msk.bf16.gmra.mxu1 %vm671_vm1, %v4535_v19  ;;  %6794 = vmatprep.mubr.msk.bf16.mxu0 %vm671_vm1, %v4323_v9  ;;  %v4325_v9 = vsel %vm1644_vm3, %v4322_v40, %v4324_v56 }
 0x24d   : > { %v9101_v13 = vadd.f32 %v6626_v57, %v8839_v49  ;;  %v3205_v22 = vpop.f32.mrf.mxu0 }
 0x24e   : > { %v9104_v3 = vadd.f32 %v3205_v22, %v8844_v35  ;;  %v3431_v46 = vpop.f32.mrf.mxu1 }
 0x24f   : > { %v9107_v28 = vadd.f32 %v3431_v46, %v8847_v33  ;;  %v6589_v52 = vpop.f32.mrf.mxu0 }
 0x250   : > { %v9110_v61 = vadd.f32 %v6589_v52, %v8850_v50  ;;  %v6627_v19 = vpop.f32.mrf.mxu1 }
 0x251   : > { %v9114_v5 = vadd.f32 %v6627_v19, %v8854_v47  ;;  %v3208_v49 = vpop.f32.mrf.mxu0 }
 0x252   : > { %v9117_v29 = vadd.f32 %v3208_v49, %v8857_v14  ;;  %v3434_v35 = vpop.f32.mrf.mxu1 }
 0x253   : > { %v9120_v15 = vadd.f32 %v3434_v35, %v8860_v24  ;;  %v6592_v33 = vpop.f32.mrf.mxu0  ;;  %6795 = vmatmul.mubr.msk.bf16.gmra.mxu0 %vm671_vm1, %v4325_v9 }
 0x254   : > { %v9124_v50 = vadd.f32 %v6592_v33, %v8864_v42  ;;  %v6666_v7 = vpop.f32.mrf.mxu1 }
 0x255   : > { %v9127_v40 = vadd.f32 %v6666_v7, %v8871_v36  ;;  %v3221_v47 = vpop.f32.mrf.mxu0 }
 0x256   : > { %v9130_v57 = vadd.f32 %v3221_v47, %v8876_v53  ;;  %v3724_v14 = vpop.f32.mrf.mxu1 }
 0x257   : > { %v9133_v56 = vadd.f32 %v3724_v14, %v8879_v30  ;;  %v6593_v24 = vpop.f32.mrf.mxu0 }
 0x258   : > { %v9136_v22 = vadd.f32 %v6593_v24, %v8882_v62  ;;  %v6667_v46 = vpop.f32.mrf.mxu1 }
 0x259   : > { %v9139_v42 = vadd.f32 %v6667_v46, %v8885_v34  ;;  %v3224_v52 = vpop.f32.mrf.mxu0 }
 0x25a   : > { %v9142_v36 = vadd.f32 %v3224_v52, %v8888_v39  ;;  %v3727_v19 = vpop.f32.mrf.mxu1 }
 0x25b   : > { %v9145_v53 = vadd.f32 %v3727_v19, %v8891_v0  ;;  %v6632_v9 = vpop.f32.mrf.mxu0 }
 0x25c   : > { %v9148_v30 = vadd.f32 %v6632_v9, %v8896_v26  ;;  %v6670_v49 = vpop.f32.mrf.mxu1 }
 0x25d   : > { %10659 = vst [vmem:[#allocation6_spill] sm:$0xff] %v9145_v53  ;;  %v9151_v62 = vadd.f32 %v6670_v49, %v8903_v8  ;;  %v3521_v35 = vpop.f32.mrf.mxu0  ;;  %v10685_v53 = vld [vmem:[#allocation31_spill] sm:$0xff] }
 0x25e   : > { %v9154_v34 = vadd.f32 %v3521_v35, %v8908_v43  ;;  %v3740_v33 = vpop.f32.mrf.mxu1 }
 0x25f   : > { %v9157_v39 = vadd.f32 %v3740_v33, %v8911_v25  ;;  %v6633_v7 = vpop.f32.mrf.mxu0 }
 0x260   : > { %v9160_v0 = vadd.f32 %v6633_v7, %v8914_v58  ;;  %v6671_v47 = vpop.f32.mrf.mxu1 }
 0x261   : > { %v9163_v26 = vadd.f32 %v6671_v47, %v8917_v20  ;;  %v3524_v14 = vpop.f32.mrf.mxu0 }
 0x262   : > { %10660 = vst [vmem:[#allocation32_spill] sm:$0xff] %v9160_v0  ;;  %v9166_v8 = vadd.f32 %v3524_v14, %v8920_v4  ;;  %v3743_v24 = vpop.f32.mrf.mxu1  ;;  %v10684_v0 = vld [vmem:[#allocation5_spill] sm:$0xff] }
 0x263   : > { %10661 = vst [vmem:[#allocation7_spill] sm:$0xff] %v9163_v26  ;;  %v9169_v43 = vadd.f32 %v3743_v24, %v8923_v54  ;;  %v6636_v46 = vpop.f32.mrf.mxu0  ;;  %v10683_v26 = vld [vmem:[#allocation82_spill] sm:$0xff] }
 0x264   : > { %10662 = vst [vmem:[#allocation36_spill] sm:$0xff] %v9166_v8  ;;  %v9172_v25 = vadd.f32 %v6636_v46, %v8928_v1  ;;  %v6674_v52 = vpop.f32.mrf.mxu1  ;;  %v10682_v8 = vld [vmem:[#allocation28_spill] sm:$0xff] }
 0x265   : > { %10663 = vst [vmem:[#allocation8_spill] sm:$0xff] %v9169_v43  ;;  %v9175_v58 = vadd.f32 %v6674_v52, %v8935_v23  ;;  %v3537_v19 = vpop.f32.mrf.mxu0  ;;  %v10681_v43 = vld [vmem:[#allocation4_spill] sm:$0xff] }
 0x266   : > { %v9178_v20 = vadd.f32 %v3537_v19, %v8940_v51  ;;  %v3756_v9 = vpop.f32.mrf.mxu1  ;;  %v10668_v19 = vld [vmem:[#allocation35_spill] sm:$0xff] }
 0x267   : > { %v9181_v4 = vadd.f32 %v3756_v9, %v8943_v10  ;;  %v6637_v49 = vpop.f32.mrf.mxu0 }
 0x268   : > { %v9184_v54 = vadd.f32 %v6637_v49, %v8946_v27  ;;  %v6675_v35 = vpop.f32.mrf.mxu1  ;;  %v10670_v49 = vld [vmem:[#allocation80_spill] sm:$0xff] }
 0x269   : > { %v9187_v1 = vadd.f32 %v6675_v35, %v8949_v18  ;;  %v3540_v33 = vpop.f32.mrf.mxu0 }
 0x26a   : > { %10664 = vst [vmem:[#allocation37_spill] sm:$0xff] %v9184_v54  ;;  %v9190_v23 = vadd.f32 %v3540_v33, %v8952_v6  ;;  %v3759_v7 = vpop.f32.mrf.mxu1  ;;  %v10671_v33 = vld [vmem:[#allocation20_spill] sm:$0xff]  ;;  %v10680_v54 = vld [vmem:[#allocation27_spill] sm:$0xff] }
 0x26b   : > { %10665 = vst [vmem:[#allocation9_spill] sm:$0xff] %v9187_v1  ;;  %v9193_v51 = vadd.f32 %v3759_v7, %v8955_v16  ;;  %v6640_v47 = vpop.f32.mrf.mxu0  ;;  %v10679_v1 = vld [vmem:[#allocation3_spill] sm:$0xff] }
 0x26c   : > { %10666 = vst [vmem:[#allocation40_spill] sm:$0xff] %v9190_v23  ;;  %v9196_v10 = vadd.f32 %v6640_v47, %v8960_v12  ;;  %v6678_v14 = vpop.f32.mrf.mxu1  ;;  %v10673_v47 = vld [vmem:[#allocation23_spill] sm:$0xff] }
 0x26d   : > { %10667 = vst [vmem:[#allocation10_spill] sm:$0xff] %v9193_v51  ;;  %v9199_v27 = vadd.f32 %v6678_v14, %v8967_v63  ;;  %v3553_v24 = vpop.f32.mrf.mxu0  ;;  %v10675_v51 = vld [vmem:[#allocation81_spill] sm:$0xff]  ;;  %v10678_v23 = vld [vmem:[#allocation15_spill] sm:$0xff] }
 0x26e   : > { %v9202_v18 = vadd.f32 %v3553_v24, %v8972_v32  ;;  %v3772_v46 = vpop.f32.mrf.mxu1  ;;  %v10674_v24 = vld [vmem:[#allocation2_spill] sm:$0xff] }
 0x26f   : > { %v9205_v6 = vadd.f32 %v3772_v46, %v8975_v11  ;;  %v6641_v52 = vpop.f32.mrf.mxu0 }
 0x270   : > { %v9208_v16 = vadd.f32 %v6641_v52, %v10668_v19  ;;  %v6679_v9 = vpop.f32.mrf.mxu1 }
 0x271   : > { %v9211_v12 = vadd.f32 %v6679_v9, %v10670_v49  ;;  %v3556_v35 = vpop.f32.mrf.mxu0 }
 0x272   : > { %10669 = vst [vmem:[#allocation41_spill] sm:$0xff] %v9208_v16  ;;  %v9214_v63 = vadd.f32 %v3556_v35, %v10671_v33  ;;  %v3775_v7 = vpop.f32.mrf.mxu1  ;;  %v10676_v16 = vld [vmem:[#allocation24_spill] sm:$0xff] }
 0x273   : > { %v9217_v32 = vadd.f32 %v3775_v7, %v10673_v47  ;;  %v6644_v14 = vpop.f32.mrf.mxu0 }
 0x274   : > { %10672 = vst [vmem:[#allocation83_spill] sm:$0xff] %v9214_v63  ;;  %v9220_v11 = vadd.f32 %v6644_v14, %v10674_v24  ;;  %v6682_v46 = vpop.f32.mrf.mxu1  ;;  %v10677_v63 = vld [vmem:[#allocation94_spill] sm:$0xff] }
 0x275   : > { %v9223_v52 = vadd.f32 %v6682_v46, %v10675_v51  ;;  %v3569_v19 = vpop.f32.mrf.mxu0 }
 0x276   : > { %v9226_v9 = vadd.f32 %v3569_v19, %v10676_v16  ;;  %v3788_v49 = vpop.f32.mrf.mxu1 }
 0x277   : > { %v9229_v35 = vadd.f32 %v3788_v49, %v9007_v21  ;;  %v6645_v33 = vpop.f32.mrf.mxu0 }
 0x278   : > { %v9232_v7 = vadd.f32 %v6645_v33, %v10677_v63  ;;  %v6683_v47 = vpop.f32.mrf.mxu1 }
 0x279   : > { %v9235_v14 = vadd.f32 %v6683_v47, %v10678_v23  ;;  %v3572_v24 = vpop.f32.mrf.mxu0 }
 0x27a   : > { %v9238_v51 = vadd.f32 %v3572_v24, %v10679_v1  ;;  %v3791_v46 = vpop.f32.mrf.mxu1 }
 0x27b   : > { %v9241_v16 = vadd.f32 %v3791_v46, %v10680_v54  ;;  %v6648_v19 = vpop.f32.mrf.mxu0 }
 0x27c   : > { %v9244_v21 = vadd.f32 %v6648_v19, %v10681_v43  ;;  %v6686_v49 = vpop.f32.mrf.mxu1 }
 0x27d   : > { %v9247_v63 = vadd.f32 %v6686_v49, %v10682_v8  ;;  %v3585_v33 = vpop.f32.mrf.mxu0 }
 0x27e   : > { %v9250_v23 = vadd.f32 %v3585_v33, %v10683_v26  ;;  %v3804_v47 = vpop.f32.mrf.mxu1 }
 0x27f   : > { %v9253_v1 = vadd.f32 %v3804_v47, %v9040_v59  ;;  %v6649_v24 = vpop.f32.mrf.mxu0 }
 0x280   : > { %v9256_v54 = vadd.f32 %v6649_v24, %v9043_v2  ;;  %v6687_v46 = vpop.f32.mrf.mxu1 }
 0x281   : > { %v9259_v43 = vadd.f32 %v6687_v46, %v9046_v60  ;;  %v3588_v19 = vpop.f32.mrf.mxu0 }
 0x282   : > { %v9262_v8 = vadd.f32 %v3588_v19, %v9049_v45  ;;  %v3807_v49 = vpop.f32.mrf.mxu1 }
 0x283   : > { %v9265_v26 = vadd.f32 %v3807_v49, %v9054_v17  ;;  %v6652_v33 = vpop.f32.mrf.mxu0 }
 0x284   : > { %v9268_v59 = vadd.f32 %v6652_v33, %v10684_v0  ;;  %v6690_v47 = vpop.f32.mrf.mxu1 }
 0x285   : > { %v9271_v2 = vadd.f32 %v6690_v47, %v10685_v53  ;;  %v3601_v24 = vpop.f32.mrf.mxu0 }
 0x286   : > { %v9274_v60 = vadd.f32 %v3601_v24, %v9072_v48  ;;  %v3820_v46 = vpop.f32.mrf.mxu1 }
 0x287   : > { %v9277_v45 = vadd.f32 %v3820_v46, %v9075_v37  ;;  %v6653_v19 = vpop.f32.mrf.mxu0 }
 0x288   : > { %v9280_v17 = vadd.f32 %v6653_v19, %v9078_v55  ;;  %v6691_v49 = vpop.f32.mrf.mxu1 }
 0x289   : > { %v9283_v0 = vadd.f32 %v6691_v49, %v9081_v44  ;;  %v3604_v33 = vpop.f32.mrf.mxu0 }
 0x28a   : > { %v9286_v53 = vadd.f32 %v3604_v33, %v9087_v41  ;;  %v3823_v47 = vpop.f32.mrf.mxu1 }
 0x28b   : > { %v9289_v48 = vadd.f32 %v3823_v47, %v9090_v31  ;;  %v6656_v24 = vpop.f32.mrf.mxu0 }
 0x28c   : > { %v9292_v37 = vadd.f32 %v6656_v24, %v9095_v38  ;;  %v6694_v46 = vpop.f32.mrf.mxu1 }
 0x28d   : > { %v9295_v55 = vadd.f32 %v6694_v46, %v9101_v13  ;;  %v3617_v19 = vpop.f32.mrf.mxu0 }
 0x28e   : > { %v9298_v44 = vadd.f32 %v3617_v19, %v9104_v3  ;;  %v3836_v49 = vpop.f32.mrf.mxu1 }
 0x28f   : > { %v9301_v41 = vadd.f32 %v3836_v49, %v9107_v28  ;;  %v6657_v33 = vpop.f32.mrf.mxu0 }
 0x290   : > { %v9304_v31 = vadd.f32 %v6657_v33, %v9110_v61  ;;  %v6695_v47 = vpop.f32.mrf.mxu1 }
 0x291   : > { %v9307_v38 = vadd.f32 %v6695_v47, %v9114_v5  ;;  %v3620_v24 = vpop.f32.mrf.mxu0 }
 0x292   : > { %v9310_v13 = vadd.f32 %v3620_v24, %v9117_v29  ;;  %v3839_v46 = vpop.f32.mrf.mxu1 }
 0x293   : > { %v9313_v3 = vadd.f32 %v3839_v46, %v9120_v15  ;;  %v6660_v19 = vpop.f32.mrf.mxu0 }
 0x294   : > { %v9316_v28 = vadd.f32 %v6660_v19, %v9124_v50  ;;  %v6734_v49 = vpop.f32.mrf.mxu1 }
 0x295   : > { %v9319_v61 = vadd.f32 %v6734_v49, %v9127_v40  ;;  %v3633_v33 = vpop.f32.mrf.mxu0 }
 0x296   : > { %v9322_v5 = vadd.f32 %v3633_v33, %v9130_v57  ;;  %v4159_v47 = vpop.f32.mrf.mxu1 }
 0x297   : > { %v9325_v29 = vadd.f32 %v4159_v47, %v9133_v56  ;;  %v6661_v24 = vpop.f32.mrf.mxu0 }
 0x298   : > { %v9328_v15 = vadd.f32 %v6661_v24, %v9136_v22  ;;  %v9330_v46 = vpop.f32.mrf.mxu1 }
 0x299   : > { %v3636_v50 = vpop.f32.mrf.mxu0 }
 0x29a   : > { %10686 = vst [vmem:[#allocation84_spill] sm:$0xff] %v9328_v15  ;;  %v9333_v19 = vadd.f32 %v3636_v50, %v9142_v36  ;;  %v9335_v40 = vpop.f32.mrf.mxu1 }
 0x29b   : > { %v6700_v49 = vpop.f32.mrf.mxu0 }
 0x29c   : > { %10687 = vst [vmem:[#allocation11_spill] sm:$0xff] %v9333_v19  ;;  %v9338_v57 = vadd.f32 %v6700_v49, %v9148_v30  ;;  %v6738_v33 = vpop.f32.mrf.mxu1 }
 0x29d   : > { %v9341_v56 = vadd.f32 %v6738_v33, %v9151_v62  ;;  %v3941_v47 = vpop.f32.mrf.mxu0 }
 0x29e   : > { %10688 = vst [vmem:[#allocation85_spill] sm:$0xff] %v9338_v57  ;;  %v9344_v22 = vadd.f32 %v3941_v47, %v9154_v34  ;;  %v4175_v24 = vpop.f32.mrf.mxu1 }
 0x29f   : > { %v9347_v15 = vadd.f32 %v4175_v24, %v9157_v39  ;;  %v9349_v36 = vpop.f32.mrf.mxu0 }
 0x2a0   : > { %10689 = vst [vmem:[#allocation42_spill] sm:$0xff] %v9344_v22  ;;  %v9351_v50 = vpop.f32.mrf.mxu1 }
 0x2a1   : > { %10690 = vst [vmem:[#allocation12_spill] sm:$0xff] %v9347_v15  ;;  %v9353_v19 = vpop.f32.mrf.mxu0 }
 0x2a2   : > { %v9355_v30 = vpop.f32.mrf.mxu1 }
 0x2a3   : > { %10691 = vst [vmem:[#allocation17_spill] sm:$0xff] %v9355_v30  ;;  %v6704_v49 = vpop.f32.mrf.mxu0 }
 0x2a4   : > { %v9358_v62 = vadd.f32 %v6704_v49, %v9172_v25  ;;  %v6742_v33 = vpop.f32.mrf.mxu1 }
 0x2a5   : > { %v9361_v34 = vadd.f32 %v6742_v33, %v9175_v58  ;;  %v3957_v47 = vpop.f32.mrf.mxu0 }
 0x2a6   : > { %10692 = vst [vmem:[#allocation43_spill] sm:$0xff] %v9358_v62  ;;  %v9364_v39 = vadd.f32 %v3957_v47, %v9178_v20  ;;  %v4191_v24 = vpop.f32.mrf.mxu1 }
 0x2a7   : > { %10693 = vst [vmem:[#allocation18_spill] sm:$0xff] %v9361_v34  ;;  %v9367_v22 = vadd.f32 %v4191_v24, %v9181_v4  ;;  %v9369_v57 = vpop.f32.mrf.mxu0 }
 0x2a8   : > { %10694 = vst [vmem:[#allocation86_spill] sm:$0xff] %v9364_v39  ;;  %v9371_v15 = vpop.f32.mrf.mxu1 }
 0x2a9   : > { %10695 = vst [vmem:[#allocation87_spill] sm:$0xff] %v9367_v22  ;;  %v9373_v30 = vpop.f32.mrf.mxu0 }
 0x2aa   : > { %v9375_v25 = vpop.f32.mrf.mxu1 }
 0x2ab   : > { %v6708_v49 = vpop.f32.mrf.mxu0 }
 0x2ac   : > { %v9378_v58 = vadd.f32 %v6708_v49, %v9196_v10  ;;  %v6746_v33 = vpop.f32.mrf.mxu1 }
 0x2ad   : > { %v9381_v20 = vadd.f32 %v6746_v33, %v9199_v27  ;;  %v3973_v47 = vpop.f32.mrf.mxu0 }
 0x2ae   : > { %v9384_v4 = vadd.f32 %v3973_v47, %v9202_v18  ;;  %v4207_v24 = vpop.f32.mrf.mxu1 }
 0x2af   : > { %v9387_v39 = vadd.f32 %v4207_v24, %v9205_v6  ;;  %v9389_v62 = vpop.f32.mrf.mxu0 }
 0x2b0   : > { %v6747_v22 = vpop.f32.mrf.mxu1 }
 0x2b1   : > { %10696 = vst [vmem:[#allocation95_spill] sm:$0xff] %v9387_v39  ;;  %v9392_v34 = vadd.f32 %v6747_v22, %v9211_v12  ;;  %v9394_v10 = vpop.f32.mrf.mxu0 }
 0x2b2   : > { %v4210_v49 = vpop.f32.mrf.mxu1 }
 0x2b3   : > { %10697 = vst [vmem:[#allocation88_spill] sm:$0xff] %v9392_v34  ;;  %v9397_v27 = vadd.f32 %v4210_v49, %v9217_v32  ;;  %v6712_v33 = vpop.f32.mrf.mxu0 }
 0x2b4   : > { %v9400_v18 = vadd.f32 %v6712_v33, %v9220_v11  ;;  %v6750_v47 = vpop.f32.mrf.mxu1 }
 0x2b5   : > { %v9403_v6 = vadd.f32 %v6750_v47, %v9223_v52  ;;  %v3989_v24 = vpop.f32.mrf.mxu0 }
 0x2b6   : > { %v9406_v39 = vadd.f32 %v3989_v24, %v9226_v9  ;;  %v4223_v12 = vpop.f32.mrf.mxu1 }
 0x2b7   : > { %v9409_v22 = vadd.f32 %v4223_v12, %v9229_v35  ;;  %v6713_v34 = vpop.f32.mrf.mxu0 }
 0x2b8   : > { %v9412_v32 = vadd.f32 %v6713_v34, %v9232_v7  ;;  %v6751_v49 = vpop.f32.mrf.mxu1 }
 0x2b9   : > { %v9415_v11 = vadd.f32 %v6751_v49, %v9235_v14  ;;  %v3992_v33 = vpop.f32.mrf.mxu0 }
 0x2ba   : > { %v9418_v52 = vadd.f32 %v3992_v33, %v9238_v51  ;;  %v4226_v47 = vpop.f32.mrf.mxu1 }
 0x2bb   : > { %v9421_v9 = vadd.f32 %v4226_v47, %v9241_v16  ;;  %v6716_v24 = vpop.f32.mrf.mxu0 }
 0x2bc   : > { %v9424_v35 = vadd.f32 %v6716_v24, %v9244_v21  ;;  %v6754_v12 = vpop.f32.mrf.mxu1 }
 0x2bd   : > { %v9427_v7 = vadd.f32 %v6754_v12, %v9247_v63  ;;  %v4005_v34 = vpop.f32.mrf.mxu0 }
 0x2be   : > { %v9430_v14 = vadd.f32 %v4005_v34, %v9250_v23  ;;  %v4239_v49 = vpop.f32.mrf.mxu1 }
 0x2bf   : > { %v9433_v51 = vadd.f32 %v4239_v49, %v9253_v1  ;;  %v6717_v33 = vpop.f32.mrf.mxu0 }
 0x2c0   : > { %10698 = vst [vmem:[#allocation13_spill] sm:$0xff] %v9430_v14  ;;  %v9436_v16 = vadd.f32 %v6717_v33, %v9256_v54  ;;  %v6755_v47 = vpop.f32.mrf.mxu1 }
 0x2c1   : > { %10699 = vst [vmem:[#allocation19_spill] sm:$0xff] %v9433_v51  ;;  %v9439_v21 = vadd.f32 %v6755_v47, %v9259_v43  ;;  %v4008_v24 = vpop.f32.mrf.mxu0 }
 0x2c2   : > { %10700 = vst [vmem:[#allocation92_spill] sm:$0xff] %v9436_v16  ;;  %v9442_v63 = vadd.f32 %v4008_v24, %v9262_v8  ;;  %v4242_v12 = vpop.f32.mrf.mxu1 }
 0x2c3   : > { %10701 = vst [vmem:[#allocation14_spill] sm:$0xff] %v9439_v21  ;;  %v9445_v23 = vadd.f32 %v4242_v12, %v9265_v26  ;;  %v6720_v34 = vpop.f32.mrf.mxu0 }
 0x2c4   : > { %10702 = vst [vmem:[#allocation21_spill] sm:$0xff] %v9442_v63  ;;  %v9449_v1 = vadd.f32 %v6720_v34, %v9268_v59  ;;  %v6758_v54 = vpop.f32.mrf.mxu1 }
 0x2c5   : > { %10703 = vst [vmem:[#allocation96_spill] sm:$0xff] %v9445_v23  ;;  %v9452_v49 = vadd.f32 %v6758_v54, %v9271_v2  ;;  %v4021_v33 = vpop.f32.mrf.mxu0 }
 0x2c6   : > { %10704 = vst [vmem:[#allocation16_spill] sm:$0xff] %v9449_v1  ;;  %v9455_v43 = vadd.f32 %v4021_v33, %v9274_v60  ;;  %v4255_v47 = vpop.f32.mrf.mxu1 }
 0x2c7   : > { %10705 = vst [vmem:[#allocation22_spill] sm:$0xff] %v9452_v49  ;;  %v9458_v8 = vadd.f32 %v4255_v47, %v9277_v45  ;;  %v6721_v24 = vpop.f32.mrf.mxu0 }
 0x2c8   : > { %10706 = vst [vmem:[#allocation44_spill] sm:$0xff] %v9455_v43  ;;  %v9464_v26 = vadd.f32 %v6721_v24, %v9280_v17  ;;  %v6759_v59 = vpop.f32.mrf.mxu1 }
 0x2c9   : > { %10707 = vst [vmem:[#allocation25_spill] sm:$0xff] %v9458_v8  ;;  %v9467_v2 = vadd.f32 %v6759_v59, %v9283_v0  ;;  %v4024_v12 = vpop.f32.mrf.mxu0 }
 0x2ca   : > { %10708 = vst [vmem:[#allocation26_spill] sm:$0xff] %v9464_v26  ;;  %v9470_v60 = vadd.f32 %v4024_v12, %v9286_v53  ;;  %v4258_v34 = vpop.f32.mrf.mxu1 }
 0x2cb   : > { %10709 = vst [vmem:[#allocation46_spill] sm:$0xff] %v9467_v2  ;;  %v9473_v45 = vadd.f32 %v4258_v34, %v9289_v48  ;;  %v6724_v54 = vpop.f32.mrf.mxu0  ;;  %v9502_v34 = vld [vmem:[%s9490_s24 + $0x8] sm:$0xff]   ;;  %v10734_v2 = vld [vmem:[#allocation17_spill] sm:$0xff] }
 0x2cc   : > { %10710 = vst [vmem:[#allocation47_spill] sm:$0xff] %v9470_v60  ;;  %v9477_v33 = vadd.f32 %v6724_v54, %v9292_v37  ;;  %v6762_v47 = vpop.f32.mrf.mxu1  ;;  %v10732_v60 = vld [vmem:[#allocation36_spill] sm:$0xff]  ;;  %v10747_v21 = vunpack.c.l.bf16 %v9502_v34 }
 0x2cd   : > { %10711 = vst [vmem:[#allocation48_spill] sm:$0xff] %v9473_v45  ;;  %v9480_v17 = vadd.f32 %v6762_v47, %v9295_v55  ;;  %v4037_v24 = vpop.f32.mrf.mxu0 }
 0x2ce   : > { %10712 = vst [vmem:[#allocation49_spill] sm:$0xff] %v9477_v33  ;;  %v9483_v0 = vadd.f32 %v4037_v24, %v9298_v44  ;;  %v4271_v59 = vpop.f32.mrf.mxu1  ;;  %v9508_v24 = vld [vmem:[%s9490_s24] sm:$0xff]  }
 0x2cf   : > { %10713 = vst [vmem:[#allocation50_spill] sm:$0xff] %v9480_v17  ;;  %v9493_v53 = vadd.f32 %v4271_v59, %v9301_v41  ;;  %v6725_v48 = vpop.f32.mrf.mxu0  ;;  %v10733_v17 = vld [vmem:[#allocation8_spill] sm:$0xff] }
 0x2d0   : > { %10714 = vst [vmem:[#allocation51_spill] sm:$0xff] %v9483_v0  ;;  %v9496_v37 = vadd.f32 %v6725_v48, %v9304_v31  ;;  %v6763_v55 = vpop.f32.mrf.mxu1  ;;  %v9514_v0 = vld [vmem:[%s9490_s24 + $0x18] sm:$0xff]   ;;  %v9517_v31 = vld [vmem:[%s9490_s24 + $0x10] sm:$0xff]   ;;  %v4291_v26 = vadd.f32 %v10734_v2, %v10733_v17  ;;  %v10739_v17 = vld [vmem:[#allocation10_spill] sm:$0xff] }
 0x2d1   : > { %10715 = vst [vmem:[#allocation29_spill] sm:$0xff] %v9493_v53  ;;  %v9499_v44 = vadd.f32 %v6763_v55, %v9307_v38  ;;  %v4040_v12 = vpop.f32.mrf.mxu0  ;;  %v10722_v55 = vld [vmem:[#allocation84_spill] sm:$0xff]  ;;  %v4069_v53 = vadd.f32 %v9353_v19, %v10732_v60 }
 0x2d2   : > { %10716 = vst [vmem:[#allocation52_spill] sm:$0xff] %v9496_v37  ;;  %v9505_v54 = vadd.f32 %v4040_v12, %v9310_v13  ;;  %v4274_v47 = vpop.f32.mrf.mxu1  ;;  %v10738_v60 = vld [vmem:[#allocation40_spill] sm:$0xff] }
 0x2d3   : > { %10717 = vst [vmem:[#allocation53_spill] sm:$0xff] %v9499_v44  ;;  %v9511_v41 = vadd.f32 %v4274_v47, %v9313_v3  ;;  %v6728_v59 = vpop.f32.mrf.mxu0  ;;  %v9621_v2 = vadd.f32 %v9373_v30, %v10738_v60  ;;  %v10742_v60 = vld [vmem:[#allocation85_spill] sm:$0xff] }
 0x2d4   : > { %10718 = vst [vmem:[#allocation54_spill] sm:$0xff] %v9505_v54  ;;  %v9520_v38 = vadd.f32 %v6728_v59, %v9316_v28  ;;  %v6802_v48 = vpop.f32.mrf.mxu1  ;;  %v9546_v59 = vld [vmem:[%s9490_s24 + $0x20] sm:$0xff]  }
 0x2d5   : > { %10719 = vst [vmem:[#allocation55_spill] sm:$0xff] %v9511_v41  ;;  %v9524_v13 = vadd.f32 %v6802_v48, %v9319_v61  ;;  %v4053_v12 = vpop.f32.mrf.mxu0  ;;  %v4289_v61 = vadd.f32 %v9330_v46, %v9139_v42  ;;  %v10725_v42 = vld [vmem:[#allocation11_spill] sm:$0xff] }
 0x2d6   : > { %10720 = vst [vmem:[#allocation56_spill] sm:$0xff] %v9520_v38  ;;  %v9530_v37 = vadd.f32 %v4053_v12, %v9322_v5  ;;  %v4579_v28 = vpop.f32.mrf.mxu1  ;;  %v9543_v12 = vld [vmem:[%s9490_s24 + $0x28] sm:$0xff]  }
 0x2d7   : > { %6880 = vrsqrt.f32 %v9524_v13  ;;  %v9539_v48 = vadd.f32 %v4579_v28, %v9325_v29  ;;  %v6729_v54 = vpop.f32.mrf.mxu0  ;;  %v10724_v28 = vld [vmem:[#allocation6_spill] sm:$0xff]  ;;  %vm4754_vm4 = vcmp.eq.f32.partialorder %v9524_v13, inf  ;;  %vm4756_vm5 = vcmp.eq.f32.partialorder %v9524_v13, 0.0 }
 0x2d8   : > { %10721 = vst [vmem:[#allocation57_spill] sm:$0xff] %v9530_v37  ;;  %v9549_v47 = vadd.f32 %v6729_v54, %v10722_v55  ;;  %v6803_v38 = vpop.f32.mrf.mxu1  ;;  %v4287_v3 = vadd.f32 %v9335_v40, %v10724_v28  ;;  %v9561_v55 = vld [vmem:[%s9490_s24 + $0x38] sm:$0xff]   ;;  %v10731_v40 = vld [vmem:[#allocation7_spill] sm:$0xff] }
 0x2d9   : > { %6882 = vrsqrt.f32 %v9539_v48  ;;  %v9557_v5 = vadd.f32 %v6803_v38, %v4289_v61  ;;  %v4056_v37 = vpop.f32.mrf.mxu0  ;;  %v9573_v61 = vld [vmem:[%s9490_s24 + $0x48] sm:$0xff]   ;;  %v4293_v38 = vadd.f32 %v9351_v50, %v10731_v40  ;;  %v10737_v50 = vld [vmem:[#allocation12_spill] sm:$0xff]  ;;  %vm4740_vm6 = vcmp.eq.f32.partialorder %v9539_v48, inf }
 0x2da   : > { %10723 = vst [vmem:[#allocation58_spill] sm:$0xff] %v9549_v47  ;;  %v9564_v47 = vld [vmem:[%s9490_s24 + $0x30] sm:$0xff]   ;;  %v9567_v46 = vadd.f32 %v4056_v37, %v10725_v42  ;;  %v4582_v29 = vpop.f32.mrf.mxu1  ;;  %10727 = vst [vmem:[#allocation60_spill] sm:$0xff] %v9573_v61  ;;  %v9581_v42 = vld [vmem:[%s9490_s24 + $0x40] sm:$0xff]   ;;  %vm4742_vm7 = vcmp.eq.f32.partialorder %v9539_v48, 0.0 }
 0x2db   : > { %6884 = vrsqrt.f32 %v9557_v5  ;;  %v9576_v28 = vadd.f32 %v4582_v29, %v4287_v3  ;;  %v6768_v54 = vpop.f32.mrf.mxu0  ;;  %10728 = vst [vmem:[#allocation30_spill] sm:$0xff] %v9581_v42  ;;  %v9591_v3 = vld [vmem:[%s9490_s24 + $0x50] sm:$0xff]   ;;  %vm4761_vm8 = vcmp.eq.f32.partialorder %v9557_v5, inf  ;;  %vm4763_vm9 = vcmp.eq.f32.partialorder %v9557_v5, 0.0 }
 0x2dc   : > { %10726 = vst [vmem:[#allocation59_spill] sm:$0xff] %v9567_v46  ;;  %v9584_v46 = vld [vmem:[%s9490_s24 + $0x58] sm:$0xff]   ;;  %v6806_v41 = vpop.f32.mrf.mxu1  ;;  %v10730_v29 = vld [vmem:[#allocation32_spill] sm:$0xff] }
 0x2dd   : > { %10729 = vst [vmem:[#allocation61_spill] sm:$0xff] %v9584_v46  ;;  %v4071_v44 = vadd.f32 %v9349_v36, %v10730_v29  ;;  %6886 = vrsqrt.f32 %v9576_v28  ;;  %v9597_v37 = vadd.f32 %v6806_v41, %v9341_v56  ;;  %v4369_v33 = vpop.f32.mrf.mxu0  ;;  %v10735_v29 = vld [vmem:[#allocation37_spill] sm:$0xff]  ;;  %v9625_v36 = vadd.f32 %v9375_v25, %v10739_v17 }
 0x2de   : > { %v4595_v42 = vpop.f32.mrf.mxu1  ;;  %v9609_v43 = vadd.f32 %v9369_v57, %v10735_v29  ;;  %v10736_v56 = vld [vmem:[#allocation9_spill] sm:$0xff]  ;;  %v4757_v25 = vand.u32 2147483648, %v9524_v13  ;;  %v4498_v17 = vadd.f32 %v6768_v54, %v10742_v60  ;;  %v4764_v46 = vand.u32 2147483648, %v9557_v5 }
 0x2df   : > { %v9613_v41 = vadd.f32 %v9371_v15, %v10736_v56  ;;  %6888 = vrsqrt.f32 %v9597_v37  ;;  %v9617_v40 = vadd.f32 %v4595_v42, %v10737_v50  ;;  %v6769_v19 = vpop.f32.mrf.mxu0  ;;  %v10740_v57 = vld [vmem:[#allocation41_spill] sm:$0xff]  ;;  %v10741_v15 = vld [vmem:[#allocation83_spill] sm:$0xff]  ;;  %vm4747_vm10 = vcmp.eq.f32.partialorder %v9576_v28, inf }
 0x2e0   : > { %v9629_v29 = vadd.f32 %v9389_v62, %v10740_v57  ;;  %v9633_v56 = vadd.f32 %v9394_v10, %v10741_v15  ;;  %v6807_v45 = vpop.f32.mrf.mxu1  ;;  %v4743_v62 = vand.u32 2147483648, %v9539_v48  ;;  %v10743_v57 = vld [vmem:[#allocation42_spill] sm:$0xff]  ;;  %vm4749_vm11 = vcmp.eq.f32.partialorder %v9576_v28, 0.0 }
 0x2e1   : > { %6890 = vrsqrt.f32 %v9617_v40  ;;  %v9638_v30 = vadd.f32 %v6807_v45, %v4293_v38  ;;  %v4372_v42 = vpop.f32.mrf.mxu0  ;;  %v4496_v15 = vadd.f32 %v4369_v33, %v10743_v57  ;;  %v4750_v1 = vand.u32 2147483648, %v9576_v28 }
 0x2e2   : > { %v4598_v10 = vpop.f32.mrf.mxu1  ;;  %v4499_v60 = vadd.f32 %v6769_v19, %v4071_v44  ;;  %v9660_v33 = vadd.f32 %v4372_v42, %v4069_v53  ;;  %vm4782_vm12 = vcmp.eq.f32.partialorder %v9597_v37, inf  ;;  %vm4784_vm13 = vcmp.eq.f32.partialorder %v9597_v37, 0.0  ;;  %v10746_v42 = vld [vmem:[#allocation43_spill] sm:$0xff] }
 0x2e3   : > { %6892 = vrsqrt.f32 %v9638_v30  ;;  %v9647_v50 = vadd.f32 %v4598_v10, %v4291_v26  ;;  %v6772_v45 = vpop.f32.mrf.mxu0  ;;  %v10744_v26 = vld [vmem:[#allocation18_spill] sm:$0xff]  ;;  %vm4768_vm14 = vcmp.eq.f32.partialorder %v9617_v40, inf  ;;  %vm4770_vm15 = vcmp.eq.f32.partialorder %v9617_v40, 0.0 }
 0x2e4   : > { %v6881_v38 = vpop.eup %6880  ;;  %v6810_v8 = vpop.f32.mrf.mxu1  ;;  %v9676_v57 = vadd.f32 %v6772_v45, %v10746_v42  ;;  %vm4789_vm0 = vcmp.eq.f32.partialorder %v9638_v30, inf  ;;  %vm4791_vm1 = vcmp.eq.f32.partialorder %v9638_v30, 0.0 }
 0x2e5   : > { %v4753_v61 = vmul.f32 %v6881_v38, %v9524_v13  ;;  %6894 = vrsqrt.f32 %v9647_v50  ;;  %v9658_v10 = vadd.f32 %v6810_v8, %v10744_v26  ;;  %v4385_v49 = vpop.f32.mrf.mxu0  ;;  %v10745_v8 = vld [vmem:[#allocation87_spill] sm:$0xff]  ;;  %vm4775_vm2 = vcmp.eq.f32.partialorder %v9647_v50, inf }
 0x2e6   : > { %v6883_v54 = vpop.eup %6882  ;;  %v4611_v23 = vpop.f32.mrf.mxu1  ;;  %vm4777_vm3 = vcmp.eq.f32.partialorder %v9647_v50, 0.0 }
 0x2e7   : > { %v4755_v38 = vsel %vm4754_vm4, %v9524_v13, %v4753_v61  ;;  %v4739_v63 = vmul.f32 %v6883_v54, %v9539_v48  ;;  %6896 = vrsqrt.f32 %v9658_v10  ;;  %v9671_v26 = vadd.f32 %v4611_v23, %v10745_v8  ;;  %v6773_v53 = vpop.f32.mrf.mxu0  ;;  %v10748_v8 = vld [vmem:[#allocation86_spill] sm:$0xff] }
 0x2e8   : > { %v6885_v44 = vpop.eup %6884  ;;  %v4758_v19 = vsel %vm4756_vm5, %v4757_v25, %v4755_v38  ;;  %v6811_v16 = vpop.f32.mrf.mxu1  ;;  %v9692_v42 = vadd.f32 %v4385_v49, %v10748_v8  ;;  %vm4810_vm4 = vcmp.eq.f32.partialorder %v9658_v10, inf  ;;  %vm4812_vm5 = vcmp.eq.f32.partialorder %v9658_v10, 0.0 }
 0x2e9   : > { %v5028_v14 = vmul.f32 %v10747_v21, %v4758_v19  ;;  %v4741_v23 = vsel %vm4740_vm6, %v9539_v48, %v4739_v63  ;;  %v4760_v13 = vmul.f32 %v6885_v44, %v9557_v5  ;;  %6898 = vrsqrt.f32 %v9671_v26  ;;  %v4388_v25 = vpop.f32.mrf.mxu0 }
 0x2ea   : > { %v6887_v45 = vpop.eup %6886  ;;  %v4744_v38 = vsel %vm4742_vm7, %v4743_v62, %v4741_v23  ;;  %v9695_v21 = vadd.f32 %v6811_v16, %v9613_v41  ;;  %v4614_v63 = vpop.f32.mrf.mxu1  ;;  %v10749_v44 = vunpack.c.l.bf16 %v9508_v24  ;;  %v9708_v41 = vadd.f32 %v6773_v53, %v9609_v43 }
 0x2eb   : > { %v5060_v54 = vadd.f32 %v5028_v14, %v4498_v17  ;;  %v4762_v51 = vsel %vm4761_vm8, %v9557_v5, %v4760_v13  ;;  %v4746_v48 = vmul.f32 %v6887_v45, %v9576_v28  ;;  %v6776_v49 = vpop.f32.mrf.mxu0  ;;  %v9714_v14 = vadd.f32 %v4614_v63, %v9625_v36 }
 0x2ec   : > { %v5026_v61 = vmul.f32 %v10749_v44, %v4744_v38  ;;  %v6889_v62 = vpop.eup %6888  ;;  %v4765_v16 = vsel %vm4763_vm9, %v4764_v46, %v4762_v51  ;;  %6900 = vrsqrt.f32 %v9695_v21  ;;  %v6814_v17 = vpop.f32.mrf.mxu1  ;;  %v10750_v13 = vunpack.c.h.bf16 %v9502_v34 }
 0x2ed   : > { %v4748_v51 = vsel %vm4747_vm10, %v9576_v28, %v4746_v48  ;;  %v4781_v43 = vmul.f32 %v6889_v62, %v9597_v37  ;;  %v4401_v5 = vpop.f32.mrf.mxu0  ;;  %6902 = vrsqrt.f32 %v9714_v14  ;;  %v9731_v34 = vadd.f32 %v6814_v17, %v9381_v20  ;;  %v9760_v62 = vld [vmem:[%s9490_s24 + $0x60] sm:$0xff]   ;;  %v9766_v17 = vld [vmem:[%s9490_s24 + $0x70] sm:$0xff]  }
 0x2ee   : > { %v5058_v23 = vadd.f32 %v5026_v61, %v4496_v15  ;;  %v5029_v45 = vmul.f32 %v10750_v13, %v4765_v16  ;;  %v6891_v46 = vpop.eup %6890  ;;  %v4751_v36 = vsel %vm4749_vm11, %v4750_v1, %v4748_v51  ;;  %v9726_v15 = vadd.f32 %v4388_v25, %v9621_v2  ;;  %v4627_v53 = vpop.f32.mrf.mxu1  ;;  %v9741_v25 = vld [vmem:[%s9490_s24 + $0x68] sm:$0xff]   ;;  %v9763_v16 = vld [vmem:[%s9490_s24 + $0x78] sm:$0xff]  }
 0x2ef   : > { %v10751_v38 = vunpack.c.h.bf16 %v9508_v24  ;;  %v4783_v1 = vsel %vm4782_vm12, %v9597_v37, %v4781_v43  ;;  %v4767_v28 = vmul.f32 %v6891_v46, %v9617_v40  ;;  %v6777_v2 = vpop.f32.mrf.mxu0  ;;  %v10752_v24 = vand.u32 2147483648, %v9597_v37 }
 0x2f0   : > { %v5061_v61 = vadd.f32 %v5029_v45, %v4499_v60  ;;  %v6893_v20 = vpop.eup %6892  ;;  %v9755_v63 = vadd.f32 %v6776_v49, %v9378_v58  ;;  %v4813_v44 = vand.u32 2147483648, %v9658_v10  ;;  %6904 = vrsqrt.f32 %v9731_v34  ;;  %v6815_v48 = vpop.f32.mrf.mxu1 }
 0x2f1   : > { %v5027_v8 = vmul.f32 %v10751_v38, %v4751_v36  ;;  %v4786_v60 = vsel %vm4784_vm13, %v10752_v24, %v4783_v1  ;;  %v10753_v37 = vunpack.c.l.bf16 %v9514_v0  ;;  %v4769_v58 = vsel %vm4768_vm14, %v9617_v40, %v4767_v28  ;;  %v4404_v49 = vpop.f32.mrf.mxu0 }
 0x2f2   : > { %v5812_v13 = vpack.c.bf16 %v5061_v61, %v5060_v54  ;;  %v6895_v43 = vpop.eup %6894  ;;  %v10754_v46 = vand.u32 2147483648, %v9617_v40  ;;  %v4788_v38 = vmul.f32 %v6893_v20, %v9638_v30  ;;  %v4504_v54 = vadd.f32 %v4401_v5, %v9384_v4  ;;  %v10755_v61 = vld [vmem:[#allocation95_spill] sm:$0xff] }
 0x2f3   : > { %v5059_v45 = vadd.f32 %v5027_v8, %v9660_v33  ;;  %v5032_v51 = vmul.f32 %v10753_v37, %v4786_v60  ;;  %v9781_v33 = vadd.f32 %v4627_v53, %v10755_v61  ;;  %v4630_v8 = vpop.f32.mrf.mxu1  ;;  %v10756_v28 = vunpack.c.l.bf16 %v9517_v31  ;;  %v9787_v19 = vpop.f32.mrf.mxu0 }
 0x2f4   : > { %v4772_v36 = vsel %vm4770_vm15, %v10754_v46, %v4769_v58  ;;  %v4774_v37 = vmul.f32 %v6895_v43, %v9647_v50  ;;  %5899 = vst [vmem:[%s9748_s27 + $0x8] sm:$0xff] %v5812_v13   ;;  %v6897_v40 = vpop.eup %6896  ;;  %v4790_v4 = vsel %vm4789_vm0, %v9638_v30, %v4788_v38  ;;  %vm4796_vm6 = vcmp.eq.f32.partialorder %v9671_v26, inf }
 0x2f5   : > { %v5807_v1 = vpack.c.bf16 %v5059_v45, %v5058_v23  ;;  %v5064_v24 = vadd.f32 %v5032_v51, %v9676_v57  ;;  %v5030_v60 = vmul.f32 %v10756_v28, %v4772_v36  ;;  %vm4798_vm7 = vcmp.eq.f32.partialorder %v9671_v26, 0.0  ;;  %v6818_v57 = vpop.f32.mrf.mxu1  ;;  %v9805_v45 = vpop.f32.mrf.mxu0 }
 0x2f6   : > { %6906 = vrsqrt.f32 %v9781_v33  ;;  %v10757_v5 = vand.u32 2147483648, %v9638_v30  ;;  %v4776_v20 = vsel %vm4775_vm2, %v9647_v50, %v4774_v37  ;;  %v4809_v13 = vmul.f32 %v6897_v40, %v9658_v10  ;;  %v6899_v51 = vpop.eup %6898 }
 0x2f7   : > { %v5062_v23 = vadd.f32 %v5030_v60, %v9692_v42  ;;  %5808 = vst [vmem:[%s9748_s27] sm:$0xff] %v5807_v1   ;;  %v10758_v58 = vunpack.c.h.bf16 %v9514_v0  ;;  %v10759_v42 = vand.u32 2147483648, %v9647_v50  ;;  %v4799_v30 = vand.u32 2147483648, %v9671_v26  ;;  %v9816_v38 = vpop.f32.mrf.mxu1  ;;  %v10761_v60 = vld [vmem:[#allocation88_spill] sm:$0xff]  ;;  %v9827_v50 = vpop.f32.mrf.mxu0 }
 0x2f8   : > { %v4793_v53 = vsel %vm4791_vm1, %v10757_v5, %v4790_v4  ;;  %v4507_v36 = vadd.f32 %v6777_v2, %v9629_v29  ;;  %v10760_v61 = vunpack.c.h.bf16 %v9517_v31  ;;  %v4811_v1 = vsel %vm4810_vm4, %v9658_v10, %v4809_v13 }
 0x2f9   : > { %v5033_v43 = vmul.f32 %v10758_v58, %v4793_v53  ;;  %v4779_v46 = vsel %vm4777_vm3, %v10759_v42, %v4776_v20  ;;  %v4795_v0 = vmul.f32 %v6899_v51, %v9671_v26  ;;  %v9825_v37 = vadd.f32 %v6815_v48, %v10761_v60  ;;  %v9834_v31 = vpop.f32.mrf.mxu1  ;;  %v6901_v2 = vpop.eup %6900 }
 0x2fa   : > { %v5031_v28 = vmul.f32 %v10760_v61, %v4779_v46  ;;  %v4814_v29 = vsel %vm4812_vm5, %v4813_v44, %v4811_v1  ;;  %vm4817_vm8 = vcmp.eq.f32.partialorder %v9695_v21, inf  ;;  %vm4819_vm9 = vcmp.eq.f32.partialorder %v9695_v21, 0.0  ;;  %v9843_v10 = vpop.f32.mrf.mxu0  ;;  %v6903_v51 = vpop.eup %6902 }
 0x2fb   : > { %v5065_v40 = vadd.f32 %v5033_v43, %v9708_v41  ;;  %v10762_v5 = vunpack.c.l.bf16 %v9543_v12  ;;  %v4797_v53 = vsel %vm4796_vm6, %v9671_v26, %v4795_v0  ;;  %6908 = vrsqrt.f32 %v9825_v37  ;;  %v9849_v13 = vpop.f32.mrf.mxu1 }
 0x2fc   : > { %v5063_v4 = vadd.f32 %v5031_v28, %v9726_v15  ;;  %v4800_v44 = vsel %vm4798_vm7, %v4799_v30, %v4797_v53  ;;  %v4816_v20 = vmul.f32 %v6901_v2, %v9695_v21  ;;  %v4820_v15 = vand.u32 2147483648, %v9695_v21 }
 0x2fd   : > { %v5036_v48 = vmul.f32 %v10762_v5, %v4814_v29  ;;  %v5822_v41 = vpack.c.bf16 %v5065_v40, %v5064_v24  ;;  %v10763_v42 = vunpack.c.l.bf16 %v9546_v59  ;;  %v4505_v61 = vadd.f32 %v4404_v49, %v9633_v56  ;;  %v6784_v49 = vpop.f32.mrf.mxu0 }
 0x2fe   : > { %v5817_v58 = vpack.c.bf16 %v5063_v4, %v5062_v23  ;;  %v4818_v26 = vsel %vm4817_vm8, %v9695_v21, %v4816_v20  ;;  %v4802_v24 = vmul.f32 %v6903_v51, %v9714_v14  ;;  %vm4803_vm10 = vcmp.eq.f32.partialorder %v9714_v14, inf  ;;  %v9863_v23 = vpop.f32.mrf.mxu1 }
 0x2ff   : > { %v5068_v43 = vadd.f32 %v5036_v48, %v9755_v63  ;;  %v5034_v46 = vmul.f32 %v10763_v42, %v4800_v44  ;;  %v9861_v30 = vadd.f32 %v4630_v8, %v9397_v27  ;;  %5901 = vst [vmem:[%s9748_s27 + $0x18] sm:$0xff] %v5822_v41   ;;  %v6905_v63 = vpop.eup %6904  ;;  %v4821_v1 = vsel %vm4819_vm9, %v4820_v15, %v4818_v26  ;;  %v4433_v41 = vpop.f32.mrf.mxu0 }
 0x300   : > { %vm4805_vm11 = vcmp.eq.f32.partialorder %v9714_v14, 0.0  ;;  %v4806_v56 = vand.u32 2147483648, %v9714_v14  ;;  %5900 = vst [vmem:[%s9748_s27 + $0x10] sm:$0xff] %v5817_v58   ;;  %v10764_v0 = vunpack.c.h.bf16 %v9543_v12  ;;  %v4804_v27 = vsel %vm4803_vm10, %v9714_v14, %v4802_v24  ;;  %v4659_v29 = vpop.f32.mrf.mxu1 }
 0x301   : > { %v5066_v28 = vadd.f32 %v5034_v46, %v4504_v54  ;;  %6910 = vrsqrt.f32 %v9861_v30  ;;  %v4837_v8 = vmul.f32 %v6905_v63, %v9731_v34  ;;  %vm4838_vm12 = vcmp.eq.f32.partialorder %v9731_v34, inf }
 0x302   : > { %v5037_v60 = vmul.f32 %v10764_v0, %v4821_v1  ;;  %v4807_v40 = vsel %vm4805_vm11, %v4806_v56, %v4804_v27  ;;  %v4841_v21 = vand.u32 2147483648, %v9731_v34  ;;  %v9879_v54 = vadd.f32 %v6818_v57, %v9403_v6 }
 0x303   : > { %v10765_v4 = vunpack.c.h.bf16 %v9546_v59  ;;  %v4839_v5 = vsel %vm4838_vm12, %v9731_v34, %v4837_v8  ;;  %vm4840_vm13 = vcmp.eq.f32.partialorder %v9731_v34, 0.0  ;;  %v6907_v14 = vpop.eup %6906  ;;  %v4510_v48 = vadd.f32 %v9787_v19, %v9400_v18  ;;  %v6823_v19 = vpop.f32.mrf.mxu1 }
 0x304   : > { %v5069_v2 = vadd.f32 %v5037_v60, %v4507_v36  ;;  %v4842_v53 = vsel %vm4840_vm13, %v4841_v21, %v4839_v5  ;;  %6912 = vrsqrt.f32 %v9879_v54  ;;  %v5783_v6 = vunpack.c.h.bf16 %v9591_v3  ;;  %v10769_v60 = vld [vmem:[#allocation19_spill] sm:$0xff]  ;;  %v10771_v21 = vld [vmem:[#allocation14_spill] sm:$0xff]  ;;  %v10772_v5 = vld [vmem:[#allocation92_spill] sm:$0xff] }
 0x305   : > { %v5035_v12 = vmul.f32 %v10765_v4, %v4807_v40  ;;  %v10766_v59 = vunpack.c.l.bf16 %v9561_v55  ;;  %v4823_v20 = vmul.f32 %v6907_v14, %v9781_v33  ;;  %vm4824_vm14 = vcmp.eq.f32.partialorder %v9781_v33, inf  ;;  %v10770_v40 = vld [vmem:[#allocation13_spill] sm:$0xff] }
 0x306   : > { %v5832_v57 = vpack.c.bf16 %v5069_v2, %v5068_v43  ;;  %v4827_v34 = vand.u32 2147483648, %v9781_v33  ;;  %v9896_v18 = vadd.f32 %v9816_v38, %v9409_v22  ;;  %v5794_v15 = vunpack.c.l.bf16 %v9741_v25  ;;  %v6785_v22 = vpop.f32.mrf.mxu0 }
 0x307   : > { %v5067_v36 = vadd.f32 %v5035_v12, %v4505_v61  ;;  %v5040_v44 = vmul.f32 %v10766_v59, %v4842_v53  ;;  %v4825_v43 = vsel %vm4824_vm14, %v9781_v33, %v4823_v20  ;;  %vm4826_vm15 = vcmp.eq.f32.partialorder %v9781_v33, 0.0  ;;  %v10774_v20 = vld [vmem:[#allocation21_spill] sm:$0xff] }
 0x308   : > { %5903 = vst [vmem:[%s9748_s27 + $0x28] sm:$0xff] %v5832_v57   ;;  %v4828_v42 = vsel %vm4826_vm15, %v4827_v34, %v4825_v43  ;;  %6914 = vrsqrt.f32 %v9896_v18  ;;  %v9907_v46 = vadd.f32 %v9834_v31, %v9415_v11  ;;  %v5790_v38 = vunpack.c.l.bf16 %v9760_v62  ;;  %v6909_v61 = vpop.eup %6908  ;;  %v10776_v43 = vld [vmem:[#allocation22_spill] sm:$0xff] }
 0x309   : > { %v5827_v51 = vpack.c.bf16 %v5067_v36, %v5066_v28  ;;  %v9899_v58 = vadd.f32 %v5040_v44, %v4510_v48  ;;  %v4508_v26 = vadd.f32 %v9805_v45, %v9406_v39  ;;  %v10767_v24 = vunpack.c.l.bf16 %v9564_v47  ;;  %v4662_v39 = vpop.f32.mrf.mxu1 }
 0x30a   : > { %v4511_v33 = vadd.f32 %v9827_v50, %v9412_v32  ;;  %vm4845_vm0 = vcmp.eq.f32.partialorder %v9825_v37, inf  ;;  %v4844_v28 = vmul.f32 %v6909_v61, %v9825_v37  ;;  %vm4847_vm1 = vcmp.eq.f32.partialorder %v9825_v37, 0.0 }
 0x30b   : > { %v5038_v63 = vmul.f32 %v10767_v24, %v4828_v42  ;;  %5902 = vst [vmem:[%s9748_s27 + $0x20] sm:$0xff] %v5827_v51   ;;  %6916 = vrsqrt.f32 %v9907_v46  ;;  %v9923_v11 = vadd.f32 %v9849_v13, %v9421_v9  ;;  %v4848_v31 = vand.u32 2147483648, %v9825_v37  ;;  %v4436_v13 = vpop.f32.mrf.mxu0  ;;  %v10777_v24 = vld [vmem:[#allocation16_spill] sm:$0xff] }
 0x30c   : > { %v4509_v32 = vadd.f32 %v9843_v10, %v9418_v52  ;;  %vm4831_vm2 = vcmp.eq.f32.partialorder %v9861_v30, inf  ;;  %v4846_v50 = vsel %vm4845_vm0, %v9825_v37, %v4844_v28  ;;  %vm4833_vm3 = vcmp.eq.f32.partialorder %v9861_v30, 0.0 }
 0x30d   : > { %v9925_v45 = vadd.f32 %v5038_v63, %v4508_v26  ;;  %6918 = vrsqrt.f32 %v9923_v11  ;;  %v9936_v9 = vadd.f32 %v9863_v23, %v9427_v7  ;;  %v4849_v1 = vsel %vm4847_vm1, %v4848_v31, %v4846_v50  ;;  %v6826_v7 = vpop.f32.mrf.mxu1  ;;  %v6788_v2 = vpop.f32.mrf.mxu0 }
 0x30e   : > { %v4834_v56 = vand.u32 2147483648, %v9861_v30  ;;  %v4514_v0 = vadd.f32 %v6784_v49, %v9424_v35  ;;  %vm4866_vm4 = vcmp.eq.f32.partialorder %v9879_v54, inf  ;;  %v6911_v52 = vpop.eup %6910  ;;  %v10768_v10 = vunpack.c.h.bf16 %v9561_v55 }
 0x30f   : > { %vm4868_vm5 = vcmp.eq.f32.partialorder %v9879_v54, 0.0  ;;  %6920 = vrsqrt.f32 %v9936_v9  ;;  %v9946_v27 = vadd.f32 %v4659_v29, %v10769_v60  ;;  %v4830_v23 = vmul.f32 %v6911_v52, %v9861_v30  ;;  %v4675_v36 = vpop.f32.mrf.mxu1  ;;  %v10781_v60 = vld [vmem:[#allocation44_spill] sm:$0xff] }
 0x310   : > { %v5041_v37 = vmul.f32 %v10768_v10, %v4849_v1  ;;  %v4869_v8 = vand.u32 2147483648, %v9879_v54  ;;  %v9951_v35 = vadd.f32 %v4433_v41, %v10770_v40  ;;  %vm4852_vm6 = vcmp.eq.f32.partialorder %v9896_v18, inf  ;;  %v10780_v1 = vld [vmem:[#allocation25_spill] sm:$0xff] }
 0x311   : > { %vm4854_vm7 = vcmp.eq.f32.partialorder %v9896_v18, 0.0  ;;  %v4855_v55 = vand.u32 2147483648, %v9896_v18  ;;  %6922 = vrsqrt.f32 %v9946_v27  ;;  %v9958_v29 = vadd.f32 %v6823_v19, %v10771_v21  ;;  %v6913_v4 = vpop.eup %6912  ;;  %v10775_v19 = vld [vmem:[#allocation96_spill] sm:$0xff]  ;;  %v6827_v50 = vpop.f32.mrf.mxu1 }
 0x312   : > { %v5073_v49 = vadd.f32 %v5041_v37, %v4511_v33  ;;  %v4832_v12 = vsel %vm4831_vm2, %v9861_v30, %v4830_v23  ;;  %v9964_v14 = vadd.f32 %v6785_v22, %v10772_v5  ;;  %vm4873_vm8 = vcmp.eq.f32.partialorder %v9907_v46, inf  ;;  %v10778_v33 = vld [vmem:[#allocation60_spill] sm:$0xff]  ;;  %v10784_v5 = vld [vmem:[#allocation26_spill] sm:$0xff] }
 0x313   : > { %v4876_v48 = vand.u32 2147483648, %v9907_v46  ;;  %v4835_v41 = vsel %vm4833_vm3, %v4834_v56, %v4832_v12  ;;  %v4865_v57 = vmul.f32 %v6913_v4, %v9879_v54  ;;  %vm4875_vm9 = vcmp.eq.f32.partialorder %v9907_v46, 0.0 }
 0x314   : > { %v5842_v53 = vpack.c.bf16 %v5073_v49, %v9899_v58  ;;  %6924 = vrsqrt.f32 %v9958_v29  ;;  %v10773_v59 = vunpack.c.h.bf16 %v9564_v47  ;;  %v9977_v34 = vadd.f32 %v4436_v13, %v10774_v20  ;;  %v4449_v47 = vpop.f32.mrf.mxu0 }
 0x315   : > { %vm4859_vm10 = vcmp.eq.f32.partialorder %v9923_v11, inf  ;;  %v9981_v51 = vadd.f32 %v4662_v39, %v10775_v19  ;;  %v4867_v30 = vsel %vm4866_vm4, %v9879_v54, %v4865_v57  ;;  %vm4861_vm11 = vcmp.eq.f32.partialorder %v9923_v11, 0.0  ;;  %v6915_v22 = vpop.eup %6914 }
 0x316   : > { %v5039_v44 = vmul.f32 %v10773_v59, %v4835_v41  ;;  %v4862_v58 = vand.u32 2147483648, %v9923_v11  ;;  %v9989_v42 = vadd.f32 %v6826_v7, %v10776_v43  ;;  %5905 = vst [vmem:[%s9748_s27 + $0x38] sm:$0xff] %v5842_v53   ;;  %v4870_v26 = vsel %vm4868_vm5, %v4869_v8, %v4867_v30  ;;  %v6789_v23 = vpop.f32.mrf.mxu0  ;;  %v10785_v41 = vld [vmem:[#allocation46_spill] sm:$0xff] }
 0x317   : > { %6926 = vrsqrt.f32 %v9981_v51  ;;  %v9996_v63 = vadd.f32 %v6788_v2, %v10777_v24  ;;  %v10779_v28 = vunpack.c.l.bf16 %v10778_v33  ;;  %v4851_v31 = vmul.f32 %v6915_v22, %v9896_v18 }
 0x318   : > { %v5071_v61 = vadd.f32 %v5039_v44, %v4509_v32  ;;  %vm4894_vm12 = vcmp.eq.f32.partialorder %v9936_v9, inf  ;;  %6928 = vrsqrt.f32 %v9989_v42  ;;  %v6917_v32 = vpop.eup %6916  ;;  %vm4896_vm13 = vcmp.eq.f32.partialorder %v9936_v9, 0.0 }
 0x319   : > { %v5044_v39 = vmul.f32 %v10779_v28, %v4870_v26  ;;  %v4897_v13 = vand.u32 2147483648, %v9936_v9  ;;  %v10007_v56 = vadd.f32 %v4675_v36, %v10780_v1  ;;  %v4853_v10 = vsel %vm4852_vm6, %v9896_v18, %v4851_v31  ;;  %v4678_v18 = vpop.f32.mrf.mxu1 }
 0x31a   : > { %v5837_v54 = vpack.c.bf16 %v5071_v61, %v9925_v45  ;;  %v4872_v37 = vmul.f32 %v6917_v32, %v9907_v46  ;;  %v4516_v7 = vadd.f32 %v4449_v47, %v10781_v60  ;;  %v6919_v8 = vpop.eup %6918  ;;  %v4856_v45 = vsel %vm4854_vm7, %v4855_v55, %v4853_v10  ;;  %v10790_v32 = vld [vmem:[#allocation61_spill] sm:$0xff] }
 0x31b   : > { %v5076_v52 = vadd.f32 %v5044_v39, %v4514_v0  ;;  %vm4880_vm14 = vcmp.eq.f32.partialorder %v9946_v27, inf  ;;  %vm4882_vm15 = vcmp.eq.f32.partialorder %v9946_v27, 0.0  ;;  %6930 = vrsqrt.f32 %v10007_v56  ;;  %v10782_v0 = vld [vmem:[#allocation30_spill] sm:$0xff]  ;;  %v6830_v24 = vpop.f32.mrf.mxu1  ;;  %v10789_v39 = vld [vmem:[#allocation48_spill] sm:$0xff] }
 0x31c   : > { %5904 = vst [vmem:[%s9748_s27 + $0x30] sm:$0xff] %v5837_v54   ;;  %v10783_v40 = vunpack.c.l.bf16 %v10782_v0  ;;  %v4874_v21 = vsel %vm4873_vm8, %v9907_v46, %v4872_v37  ;;  %v4858_v2 = vmul.f32 %v6919_v8, %v9923_v11  ;;  %v4883_v4 = vand.u32 2147483648, %v9946_v27  ;;  %v6921_v55 = vpop.eup %6920  ;;  %v4452_v46 = vpop.f32.mrf.mxu0 }
 0x31d   : > { %v4877_v12 = vsel %vm4875_vm9, %v4876_v48, %v4874_v21  ;;  %v4519_v53 = vadd.f32 %v6789_v23, %v10784_v5  ;;  %vm4901_vm0 = vcmp.eq.f32.partialorder %v9958_v29, inf  ;;  %v10032_v57 = vadd.f32 %v6827_v50, %v10785_v41  ;;  %v10793_v21 = vld [vmem:[#allocation49_spill] sm:$0xff] }
 0x31e   : > { %v5042_v49 = vmul.f32 %v10783_v40, %v4856_v45  ;;  %v10786_v59 = vunpack.c.h.bf16 %v10778_v33  ;;  %v4860_v20 = vsel %vm4859_vm10, %v9923_v11, %v4858_v2  ;;  %v4893_v19 = vmul.f32 %v6921_v55, %v9936_v9  ;;  %v6923_v48 = vpop.eup %6922  ;;  %v10788_v33 = vld [vmem:[#allocation47_spill] sm:$0xff] }
 0x31f   : > { %v4863_v30 = vsel %vm4861_vm11, %v4862_v58, %v4860_v20  ;;  %vm4903_vm1 = vcmp.eq.f32.partialorder %v9958_v29, 0.0  ;;  %v4904_v43 = vand.u32 2147483648, %v9958_v29  ;;  %6932 = vrsqrt.f32 %v10032_v57 }
 0x320   : > { %v5074_v36 = vadd.f32 %v5042_v49, %v9951_v35  ;;  %v5045_v44 = vmul.f32 %v10786_v59, %v4877_v12  ;;  %v10787_v47 = vunpack.c.h.bf16 %v10782_v0  ;;  %v4895_v61 = vsel %vm4894_vm12, %v9936_v9, %v4893_v19  ;;  %v6792_v9 = vpop.f32.mrf.mxu0  ;;  %v4691_v0 = vpop.f32.mrf.mxu1  ;;  %v10796_v19 = vld [vmem:[#allocation29_spill] sm:$0xff] }
 0x321   : > { %v4879_v26 = vmul.f32 %v6923_v48, %v9946_v27  ;;  %v6925_v11 = vpop.eup %6924  ;;  %v4898_v58 = vsel %vm4896_vm13, %v4897_v13, %v4895_v61  ;;  %v4517_v28 = vadd.f32 %v4452_v46, %v10788_v33  ;;  %vm4887_vm2 = vcmp.eq.f32.partialorder %v9981_v51, inf }
 0x322   : > { %v5077_v35 = vadd.f32 %v5045_v44, %v9964_v14  ;;  %v5043_v22 = vmul.f32 %v10787_v47, %v4863_v30  ;;  %v10058_v14 = vadd.f32 %v4678_v18, %v10789_v39  ;;  %v10791_v54 = vunpack.c.l.bf16 %v10790_v32  ;;  %v4465_v20 = vpop.f32.mrf.mxu0  ;;  %v6831_v48 = vpop.f32.mrf.mxu1 }
 0x323   : > { %v4881_v10 = vsel %vm4880_vm14, %v9946_v27, %v4879_v26  ;;  %v4900_v37 = vmul.f32 %v6925_v11, %v9958_v29  ;;  %vm4889_vm3 = vcmp.eq.f32.partialorder %v9981_v51, 0.0  ;;  %v10792_v23 = vunpack.c.l.bf16 %v9591_v3  ;;  %v10797_v11 = vld [vmem:[#allocation53_spill] sm:$0xff] }
 0x324   : > { %v5852_v31 = vpack.c.bf16 %v5077_v35, %v5076_v52  ;;  %v5075_v50 = vadd.f32 %v5043_v22, %v9977_v34  ;;  %v5048_v1 = vmul.f32 %v10791_v54, %v4898_v58  ;;  %v4884_v13 = vsel %vm4882_vm15, %v4883_v4, %v4881_v10  ;;  %v6927_v52 = vpop.eup %6926  ;;  %v10794_v4 = vld [vmem:[#allocation50_spill] sm:$0xff]  ;;  %v4694_v33 = vpop.f32.mrf.mxu1 }
 0x325   : > { %6934 = vrsqrt.f32 %v10058_v14  ;;  %v5046_v8 = vmul.f32 %v10792_v23, %v4884_v13  ;;  %v4890_v45 = vand.u32 2147483648, %v9981_v51  ;;  %v6929_v27 = vpop.eup %6928  ;;  %v4902_v40 = vsel %vm4901_vm0, %v9958_v29, %v4900_v37 }
 0x326   : > { %v5847_v34 = vpack.c.bf16 %v5075_v50, %v5074_v36  ;;  %v5080_v60 = vadd.f32 %v5048_v1, %v9996_v63  ;;  %5907 = vst [vmem:[%s9748_s27 + $0x48] sm:$0xff] %v5852_v31   ;;  %v4886_v49 = vmul.f32 %v6927_v52, %v9981_v51  ;;  %v4522_v2 = vadd.f32 %v6792_v9, %v10793_v21  ;;  %v10798_v31 = vld [vmem:[#allocation51_spill] sm:$0xff]  ;;  %v10800_v52 = vld [vmem:[#allocation52_spill] sm:$0xff]  ;;  %v10801_v21 = vld [vmem:[#allocation54_spill] sm:$0xff] }
 0x327   : > { %v10082_v18 = vadd.f32 %v6830_v24, %v10794_v4  ;;  %v5078_v63 = vadd.f32 %v5046_v8, %v4516_v7  ;;  %v4905_v55 = vsel %vm4903_vm1, %v4904_v43, %v4902_v40  ;;  %v4921_v12 = vmul.f32 %v6929_v27, %v9989_v42  ;;  %v6793_v24 = vpop.f32.mrf.mxu0  ;;  %v10799_v1 = vld [vmem:[#allocation55_spill] sm:$0xff] }
 0x328   : > { %vm4922_vm4 = vcmp.eq.f32.partialorder %v9989_v42, inf  ;;  %5906 = vst [vmem:[%s9748_s27 + $0x40] sm:$0xff] %v5847_v34   ;;  %v10795_v5 = vunpack.c.h.bf16 %v10790_v32  ;;  %v4888_v36 = vsel %vm4887_vm2, %v9981_v51, %v4886_v49  ;;  %v4925_v59 = vand.u32 2147483648, %v9989_v42  ;;  %v6931_v7 = vpop.eup %6930 }
 0x329   : > { %6936 = vrsqrt.f32 %v10082_v18  ;;  %v4891_v29 = vsel %vm4889_vm3, %v4890_v45, %v4888_v36  ;;  %v4923_v44 = vsel %vm4922_vm4, %v9989_v42, %v4921_v12  ;;  %vm4924_vm5 = vcmp.eq.f32.partialorder %v9989_v42, 0.0  ;;  %v4468_v13 = vpop.f32.mrf.mxu0 }
 0x32a   : > { %v5049_v41 = vmul.f32 %v10795_v5, %v4905_v55  ;;  %v10101_v46 = vadd.f32 %v4691_v0, %v10796_v19  ;;  %v5047_v43 = vmul.f32 %v5783_v6, %v4891_v29  ;;  %v4926_v35 = vsel %vm4924_vm5, %v4925_v59, %v4923_v44 }
 0x32b   : > { %v4907_v47 = vmul.f32 %v6931_v7, %v10007_v56  ;;  %v5052_v51 = vmul.f32 %v5794_v15, %v4926_v35  ;;  %vm4908_vm6 = vcmp.eq.f32.partialorder %v10007_v56, inf  ;;  %v4911_v22 = vand.u32 2147483648, %v10007_v56 }
 0x32c   : > { %v5081_v30 = vadd.f32 %v5049_v41, %v4519_v53  ;;  %6938 = vrsqrt.f32 %v10101_v46  ;;  %v5079_v61 = vadd.f32 %v5047_v43, %v4517_v28  ;;  %vm4910_vm7 = vcmp.eq.f32.partialorder %v10007_v56, 0.0  ;;  %v6933_v3 = vpop.eup %6932 }
 0x32d   : > { %v4909_v53 = vsel %vm4908_vm6, %v10007_v56, %v4907_v47  ;;  %v5084_v6 = vadd.f32 %v5052_v51, %v4522_v2  ;;  %v5795_v15 = vunpack.c.h.bf16 %v9741_v25  ;;  %v10115_v58 = vadd.f32 %v6831_v48, %v10797_v11  ;;  %v10803_v47 = vld [vmem:[#allocation57_spill] sm:$0xff] }
 0x32e   : > { %v5862_v42 = vpack.c.bf16 %v5081_v30, %v5080_v60  ;;  %v4912_v26 = vsel %vm4910_vm7, %v4911_v22, %v4909_v53  ;;  %v5857_v39 = vpack.c.bf16 %v5079_v61, %v5078_v63  ;;  %v4520_v50 = vadd.f32 %v4465_v20, %v10798_v31 }
 0x32f   : > { %v5050_v28 = vmul.f32 %v5790_v38, %v4912_v26  ;;  %v4928_v32 = vmul.f32 %v6933_v3, %v10032_v57  ;;  %vm4929_vm8 = vcmp.eq.f32.partialorder %v10032_v57, inf  ;;  %v4932_v56 = vand.u32 2147483648, %v10032_v57 }
 0x330   : > { %5909 = vst [vmem:[%s9748_s27 + $0x58] sm:$0xff] %v5862_v42   ;;  %6940 = vrsqrt.f32 %v10115_v58  ;;  %vm4931_vm9 = vcmp.eq.f32.partialorder %v10032_v57, 0.0  ;;  %v10128_v10 = vadd.f32 %v4694_v33, %v10799_v1  ;;  %5908 = vst [vmem:[%s9748_s27 + $0x50] sm:$0xff] %v5857_v39   ;;  %v5791_v37 = vunpack.c.h.bf16 %v9760_v62  ;;  %v6796_v62 = vpop.f32.mrf.mxu0  ;;  %v10804_v33 = vld [vmem:[#allocation58_spill] sm:$0xff] }
 0x331   : > { %v5082_v25 = vadd.f32 %v5050_v28, %v4520_v50  ;;  %v4930_v54 = vsel %vm4929_vm8, %v10032_v57, %v4928_v32  ;;  %v4523_v34 = vadd.f32 %v6793_v24, %v10800_v52  ;;  %vm4915_vm10 = vcmp.eq.f32.partialorder %v10058_v14, inf }
 0x332   : > { %v6935_v9 = vpop.eup %6934  ;;  %v4933_v38 = vsel %vm4931_vm9, %v4932_v56, %v4930_v54  ;;  %6942 = vrsqrt.f32 %v10128_v10  ;;  %v4918_v57 = vand.u32 2147483648, %v10058_v14  ;;  %vm4917_vm11 = vcmp.eq.f32.partialorder %v10058_v14, 0.0  ;;  %v4481_v7 = vpop.f32.mrf.mxu0  ;;  %v10805_v56 = vld [vmem:[#allocation59_spill] sm:$0xff] }
 0x333   : > { %v5053_v60 = vmul.f32 %v5795_v15, %v4933_v38  ;;  %v4914_v23 = vmul.f32 %v6935_v9, %v10058_v14  ;;  %v5802_v40 = vunpack.c.l.bf16 %v9763_v16  ;;  %v4521_v2 = vadd.f32 %v4468_v13, %v10801_v21 }
 0x334   : > { %vm4950_vm12 = vcmp.eq.f32.partialorder %v10082_v18, inf  ;;  %v4953_v55 = vand.u32 2147483648, %v10082_v18  ;;  %vm4952_vm13 = vcmp.eq.f32.partialorder %v10082_v18, 0.0  ;;  %v5798_v44 = vunpack.c.l.bf16 %v9766_v17  ;;  %v6797_v42 = vpop.f32.mrf.mxu0 }
 0x335   : > { %v5085_v8 = vadd.f32 %v5053_v60, %v4523_v34  ;;  %v4916_v45 = vsel %vm4915_vm10, %v10058_v14, %v4914_v23  ;;  %v10802_v14 = vld [vmem:[#allocation56_spill] sm:$0xff]  ;;  %vm4936_vm14 = vcmp.eq.f32.partialorder %v10101_v46, inf  ;;  %v4939_v48 = vand.u32 2147483648, %v10101_v46 }
 0x336   : > { %v6937_v0 = vpop.eup %6936  ;;  %v4919_v27 = vsel %vm4917_vm11, %v4918_v57, %v4916_v45  ;;  %v4526_v36 = vadd.f32 %v6796_v62, %v10802_v14  ;;  %vm4938_vm15 = vcmp.eq.f32.partialorder %v10101_v46, 0.0  ;;  %v4524_v51 = vadd.f32 %v4481_v7, %v10803_v47  ;;  %v4484_v31 = vpop.f32.mrf.mxu0 }
 0x337   : > { %v5872_v49 = vpack.c.bf16 %v5085_v8, %v5084_v6  ;;  %v5051_v4 = vmul.f32 %v5791_v37, %v4919_v27  ;;  %v4949_v63 = vmul.f32 %v6937_v0, %v10082_v18  ;;  %v5803_v53 = vunpack.c.h.bf16 %v9763_v16 }
 0x338   : > { %vm4957_vm0 = vcmp.eq.f32.partialorder %v10115_v58, inf  ;;  %v4960_v3 = vand.u32 2147483648, %v10115_v58  ;;  %vm4959_vm1 = vcmp.eq.f32.partialorder %v10115_v58, 0.0  ;;  %v5799_v11 = vunpack.c.h.bf16 %v9766_v17 }
 0x339   : > { %v6939_v12 = vpop.eup %6938  ;;  %v5083_v5 = vadd.f32 %v5051_v4, %v4521_v2  ;;  %v4951_v41 = vsel %vm4950_vm12, %v10082_v18, %v4949_v63  ;;  %5911 = vst [vmem:[%s9748_s27 + $0x68] sm:$0xff] %v5872_v49   ;;  %v4527_v39 = vadd.f32 %v6797_v42, %v10804_v33  ;;  %vm4943_vm2 = vcmp.eq.f32.partialorder %v10128_v10, inf }
 0x33a   : > { %v4954_v59 = vsel %vm4952_vm13, %v4953_v55, %v4951_v41  ;;  %v4935_v29 = vmul.f32 %v6939_v12, %v10101_v46  ;;  %v4946_v50 = vand.u32 2147483648, %v10128_v10  ;;  %vm4945_vm3 = vcmp.eq.f32.partialorder %v10128_v10, 0.0 }
 0x33b   : > { %v5867_v20 = vpack.c.bf16 %v5083_v5, %v5082_v25  ;;  %v5056_v19 = vmul.f32 %v5802_v40, %v4954_v59  ;;  %v4525_v25 = vadd.f32 %v4484_v31, %v10805_v56 }
 0x33c   : > { %v4937_v30 = vsel %vm4936_vm14, %v10101_v46, %v4935_v29 }
 0x33d   : > { %v6941_v18 = vpop.eup %6940  ;;  %v5088_v43 = vadd.f32 %v5056_v19, %v4526_v36  ;;  %v4940_v35 = vsel %vm4938_vm15, %v4939_v48, %v4937_v30  ;;  %5910 = vst [vmem:[%s9748_s27 + $0x60] sm:$0xff] %v5867_v20  }
 0x33e   : > { %v5054_v22 = vmul.f32 %v5798_v44, %v4940_v35  ;;  %v4956_v61 = vmul.f32 %v6941_v18, %v10115_v58 }
 0x33f   : > { %v6943_v6 = vpop.eup %6942 }
 0x340   : > { %v5086_v26 = vadd.f32 %v5054_v22, %v4524_v51  ;;  %v4958_v46 = vsel %vm4957_vm0, %v10115_v58, %v4956_v61  ;;  %v4942_v15 = vmul.f32 %v6943_v6, %v10128_v10 }
 0x341   : > { %v4961_v24 = vsel %vm4959_vm1, %v4960_v3, %v4958_v46 }
 0x342   : > { %v5057_v16 = vmul.f32 %v5803_v53, %v4961_v24  ;;  %v4944_v28 = vsel %vm4943_vm2, %v10128_v10, %v4942_v15 }
 0x343   : > { %v4947_v32 = vsel %vm4945_vm3, %v4946_v50, %v4944_v28 }
 0x344   : > { %v5089_v58 = vadd.f32 %v5057_v16, %v4527_v39  ;;  %v5055_v54 = vmul.f32 %v5799_v11, %v4947_v32 }
 0x346   : > { %v5882_v1 = vpack.c.bf16 %v5089_v58, %v5088_v43  ;;  %v5087_v17 = vadd.f32 %v5055_v54, %v4525_v25 }
 0x348   : > { %5913 = vst [vmem:[%s9748_s27 + $0x78] sm:$0xff] %v5882_v1   ;;  %v5877_v9 = vpack.c.bf16 %v5087_v17, %v5086_v26 }
 0x34a   : > { %5912 = vst [vmem:[%s9748_s27 + $0x70] sm:$0xff] %v5877_v9  }
 0x34b PF: > { %s15_s18 = sadd.s32 1, %s6964_s18  }
 0x34c   : > { %p12_p6 = scmp.ge.s32.totalorder %s15_s18, 4  }
 0x34e   :  { %14 = sbr.rel (!%p12_p6) target bundleno = 1 (0x1), region = 92 }

</bundles_post_ra>
